<compile_context>
chip_gen: v7x
topology: tpu7x:2x2x1
jax: 0.10.0
libtpu: 0.0.40
codegen_flags: <defaults>
</compile_context>

<pallas_src>
import math
import functools

import jax
import jax.numpy as jnp
from jax.experimental import pallas as pl
from jax.experimental.pallas import tpu as pltpu


_LN_EPS = 1e-5                        # PyTorch nn.LayerNorm default


def _round_up(n: int, m: int) -> int:
    return ((n + m - 1) // m) * m


def _vmem_cap_bytes() -> int:
    """Generation-aware usable-VMEM cap (leave headroom for the compiler)."""
    try:
        phys = int(pltpu.get_tpu_info().vmem_capacity_bytes)
    except Exception:
        phys = 64 * 1024 * 1024        # conservative (v7x-sized) fallback
    return max(24 * 1024 * 1024,
               min(int(phys * 0.78), phys - 24 * 1024 * 1024))


def _plan_row_tile(rows, dim, hidden, x_bytes, w_bytes, tm_req, const_bufs,
                   vmem_cap):
    """Largest MXU-aligned row tile <= tm_req whose pipeline fits vmem_cap."""
    # 256 keeps every systolic pass full on v6e/v7x (2x256 MXU) and is also a
    # multiple of v5e's 128 MXU M-dim; fall back to 128 / 8 for small inputs.
    small = min(rows, tm_req)
    align = 256 if small >= 256 else (128 if small >= 128 else 8)
    tm = min(tm_req, _round_up(rows, align))
    tm = max(align, (tm // align) * align)
    while True:
        io = 2 * 2 * tm * dim * x_bytes                    # x + out, double-buffered
        wts = const_bufs * (2 * dim * hidden) * w_bytes    # W1' + W2
        vecs = const_bufs * (hidden + dim) * 4             # b1' + b2
        scratch = 4 * tm * hidden * 4                      # h / GELU f32 temporaries
        budget = io + wts + vecs + scratch
        if budget <= vmem_cap or tm <= align:
            return tm, budget
        tm = max(align, _round_up(tm // 2, align))


def _adapter_kernel(x_ref, w1_ref, b1_ref, w2_ref, b2_ref, o_ref, *,
                    matmul_dtype, gelu_exact):
    # --- LayerNorm(dim), eps=1e-5.  Two-pass (centered) variance matches the
    #     PyTorch formulation; affine is already folded into W1'/b1'. ---
    x = x_ref[...].astype(jnp.float32)                     # (TM, dim)
    mean = jnp.mean(x, axis=-1, keepdims=True)
    xc = x - mean
    var = jnp.mean(xc * xc, axis=-1, keepdims=True)
    xn = xc * jax.lax.rsqrt(var + _LN_EPS)

    # --- Linear(dim -> hidden) on the MXU, f32 accumulation. ---
    h = jnp.dot(xn.astype(matmul_dtype), w1_ref[...],
                preferred_element_type=jnp.float32) + b1_ref[...]

    # --- GELU. Exact erf (VPU polynomial) for bit parity, tanh (EUP slot)
    #     on the fast path. ---
    if gelu_exact:
        h = 0.5 * h * (1.0 + jax.lax.erf(h * (1.0 / math.sqrt(2.0))))
    else:
        h = jax.nn.gelu(h, approximate=True)

    # --- Linear(hidden -> dim) on the MXU, f32 accumulation. ---
    y = jnp.dot(h.astype(matmul_dtype), w2_ref[...],
                preferred_element_type=jnp.float32) + b2_ref[...]

    o_ref[...] = y.astype(o_ref.dtype)


@functools.partial(jax.jit, static_argnames=("tm", "matmul_in_bf16",
                                              "gelu_exact",
                                              "single_buffer_consts"))
def _adapter_impl(x, gamma, beta, w1, b1, w2, b2, *, tm, matmul_in_bf16,
                  gelu_exact, single_buffer_consts):
    B, S, dim = x.shape
    hidden = w1.shape[1]
    rows = B * S

    matmul_dtype = jnp.bfloat16 if matmul_in_bf16 else jnp.float32

    # Fold LayerNorm's affine into the first Linear (wrapper-side, once):
    #   (xn*gamma + beta) @ W1 + b1 == xn @ (gamma*W1) + (beta@W1 + b1)
    w1_eff = (w1 * gamma.reshape(dim, 1)).astype(matmul_dtype)
    b1_eff = (b1 + beta.reshape(1, dim) @ w1).astype(jnp.float32)
    w2_eff = w2.astype(matmul_dtype)
    b2_eff = b2.astype(jnp.float32)

    x_bytes = jnp.dtype(x.dtype).itemsize
    w_bytes = jnp.dtype(matmul_dtype).itemsize
    const_bufs = 1 if single_buffer_consts else 2

    vmem_cap = _vmem_cap_bytes()
    tm_req = tm if tm is not None else (1024 if vmem_cap >= 64 * 1024 * 1024
                                        else 512)
    tm_eff, budget = _plan_row_tile(rows, dim, hidden, x_bytes, w_bytes,
                                    tm_req, const_bufs, vmem_cap)

    x2d = x.reshape(rows, dim)
    grid = (pl.cdiv(rows, tm_eff),)   # ragged last block: OOB writes masked

    def const_spec(shape):
        idx = lambda i: (0,) * len(shape)   # constant block -> DMA'd once
        if single_buffer_consts:
            return pl.BlockSpec(shape, idx, pipeline_mode=pl.Buffered(1))
        return pl.BlockSpec(shape, idx)

    cost = pl.CostEstimate(
        flops=int(4 * rows * dim * hidden),                 # two matmuls
        transcendentals=int(rows * hidden + rows),          # gelu + rsqrt
        bytes_accessed=int(2 * rows * dim * x_bytes
                           + 2 * dim * hidden * w_bytes
                           + (hidden + dim) * 4),
    )

    out2d = pl.pallas_call(
        functools.partial(_adapter_kernel, matmul_dtype=matmul_dtype,
                          gelu_exact=gelu_exact),
        out_shape=jax.ShapeDtypeStruct((rows, dim), x.dtype),
        grid_spec=pltpu.PrefetchScalarGridSpec(
            num_scalar_prefetch=0,
            grid=grid,
            in_specs=[
                pl.BlockSpec((tm_eff, dim), lambda i: (i, 0)),   # x row tile
                const_spec((dim, hidden)),                       # W1' (in, out)
                const_spec((1, hidden)),                         # b1'
                const_spec((hidden, dim)),                       # W2 (in, out)
                const_spec((1, dim)),                            # b2
            ],
            out_specs=pl.BlockSpec((tm_eff, dim), lambda i: (i, 0)),
        ),
        compiler_params=pltpu.CompilerParams(
            dimension_semantics=("parallel",),   # row tiles shard across TCs
            vmem_limit_bytes=int(min(max(budget * 5 // 4, 32 * 1024 * 1024),
                                     vmem_cap)),
        ),
        cost_estimate=cost,
    )(x2d, w1_eff, b1_eff, w2_eff, b2_eff)

    return out2d.reshape(B, S, dim)


_SINGLE_BUFFER_OK = True   # flips to False if pl.Buffered(1) is rejected


def parallel_adapter(x, gamma, beta, w1, b1, w2, b2, *, tm=None,
                     matmul_in_bf16=True, gelu_exact=None):
    """x: (batch, seq, dim) float32. Returns ff(x), same shape/dtype.

    matmul_in_bf16: bf16 MXU operands with f32 accumulation (default/fast).
                    Set False for strict f32 parity with the PyTorch module.
    gelu_exact:     None -> exact erf only on the f32 parity path.
    tm:             requested row tile (None -> auto: 512/1024 by VMEM size).
    """
    global _SINGLE_BUFFER_OK
    if gelu_exact is None:
        gelu_exact = not matmul_in_bf16

    if _SINGLE_BUFFER_OK:
        try:
            return _adapter_impl(x, gamma, beta, w1, b1, w2, b2, tm=tm,
                                 matmul_in_bf16=matmul_in_bf16,
                                 gelu_exact=gelu_exact,
                                 single_buffer_consts=True)
        except Exception:
            # TODO(synk): pl.Buffered(1) on constant operands not supported by
            # this JAX version; fall back to default double-buffered constants.
            _SINGLE_BUFFER_OK = False
    return _adapter_impl(x, gamma, beta, w1, b1, w2, b2, tm=tm,
                         matmul_in_bf16=matmul_in_bf16,
                         gelu_exact=gelu_exact,
                         single_buffer_consts=False)


def init_params(key, dim, hidden):
    """Matches the PyTorch module init:
       LayerNorm: gamma=1, beta=0
       Linear: xavier_uniform_(weight, gain=0.01), bias=0
    Weights are stored transposed (in, out) so the kernel does x @ W."""
    k1, k2 = jax.random.split(key)

    def xavier_uniform(k, fan_in, fan_out, gain):
        bound = gain * math.sqrt(6.0 / (fan_in + fan_out))
        # PyTorch weight is (fan_out, fan_in); sample there then transpose.
        w = jax.random.uniform(k, (fan_out, fan_in), jnp.float32, -bound, bound)
        return w.T  # (fan_in, fan_out)

    gamma = jnp.ones((1, dim), jnp.float32)
    beta = jnp.zeros((1, dim), jnp.float32)
    w1 = xavier_uniform(k1, dim, hidden, 0.01)          # (dim, hidden)
    b1 = jnp.zeros((1, hidden), jnp.float32)
    w2 = xavier_uniform(k2, hidden, dim, 0.01)          # (hidden, dim)
    b2 = jnp.zeros((1, dim), jnp.float32)
    return gamma, beta, w1, b1, w2, b2


def _reference(x, gamma, beta, w1, b1, w2, b2):
    mean = jnp.mean(x, axis=-1, keepdims=True)
    var = jnp.mean(jnp.square(x - mean), axis=-1, keepdims=True)
    xn = (x - mean) / jnp.sqrt(var + _LN_EPS)
    xn = xn * gamma[0] + beta[0]
    h = xn @ w1 + b1[0]
    h = 0.5 * h * (1.0 + jax.lax.erf(h / math.sqrt(2.0)))
    return h @ w2 + b2[0]


if __name__ == "__main__":
    key = jax.random.PRNGKey(0)
    kx, kp = jax.random.split(key)

    # Small shapes consistent with the module; dim a multiple of 128 so the
    # output stores are lane-dense, hidden is the module default (1024).
    B, S, dim, hidden = 2, 8, 256, 1024
    x = jax.random.normal(kx, (B, S, dim), jnp.float32)
    params = init_params(kp, dim, hidden)

    y_ref = _reference(x, *params)

    # Exact parity path: f32 matmuls + erf GELU (matches nn.GELU() default).
    y_exact = jax.block_until_ready(
        parallel_adapter(x, *params, matmul_in_bf16=False))
    assert y_exact.shape == x.shape and y_exact.dtype == x.dtype
    assert jnp.allclose(y_exact, y_ref, atol=1e-5, rtol=1e-5), \
        "f32 kernel mismatch vs reference"

    # Default fast path: bf16 MXU operands (f32 accumulation) + tanh GELU.
    y_fast = jax.block_until_ready(parallel_adapter(x, *params))
    assert y_fast.shape == x.shape and y_fast.dtype == x.dtype
    rel = jnp.linalg.norm(y_fast - y_ref) / (jnp.linalg.norm(y_ref) + 1e-30)
    assert float(rel) < 2e-2, \
        f"fast-path relative error too large: {float(rel)}"

    print("KERNEL_OK")
</pallas_src>

<mosaic_0001>
module attributes {stable_mosaic.version = 11 : i64} {
  func.func @_adapter_kernel(%arg0: i32, %arg1: memref<16x256xf32, #tpu.memory_space<vmem>>, %arg2: memref<256x1024xf32, #tpu.memory_space<vmem>>, %arg3: memref<1x1024xf32, #tpu.memory_space<vmem>>, %arg4: memref<1024x256xf32, #tpu.memory_space<vmem>>, %arg5: memref<1x256xf32, #tpu.memory_space<vmem>>, %arg6: memref<16x256xf32, #tpu.memory_space<vmem>>) attributes {dimension_semantics = [#tpu.dimension_semantics<parallel>], iteration_bounds = array<i64: 1>, scalar_prefetch = 0 : i64, scratch_operands = 0 : i64, tpu.core_type = #tpu.core_type<tc>, window_params = [{transform_indices = @transform_0, window_bounds = array<i64: 16, 256>}, {pipeline_mode = #tpu.pipeline_mode<synchronous>, transform_indices = @transform_1, window_bounds = array<i64: 256, 1024>}, {pipeline_mode = #tpu.pipeline_mode<synchronous>, transform_indices = @transform_2, window_bounds = array<i64: 1, 1024>}, {pipeline_mode = #tpu.pipeline_mode<synchronous>, transform_indices = @transform_3, window_bounds = array<i64: 1024, 256>}, {pipeline_mode = #tpu.pipeline_mode<synchronous>, transform_indices = @transform_4, window_bounds = array<i64: 1, 256>}, {transform_indices = @transform_5, window_bounds = array<i64: 16, 256>}]} {
    %c0 = arith.constant 0 : index
    %c0_0 = arith.constant 0 : index
    %0 = vector.load %arg1[%c0, %c0_0] : memref<16x256xf32, #tpu.memory_space<vmem>>, vector<16x256xf32>
    %cst = arith.constant dense<0.000000e+00> : vector<16xf32>
    %1 = vector.multi_reduction <add>, %0, %cst [1] : vector<16x256xf32> to vector<16xf32>
    %2 = vector.shape_cast %1 : vector<16xf32> to vector<16x1xf32>
    %cst_1 = arith.constant 2.560000e+02 : f32
    %3 = vector.broadcast %cst_1 : f32 to vector<16x1xf32>
    %4 = arith.divf %2, %3 : vector<16x1xf32>
    %5 = vector.broadcast %4 : vector<16x1xf32> to vector<16x256xf32>
    %6 = arith.subf %0, %5 : vector<16x256xf32>
    %7 = arith.mulf %6, %6 : vector<16x256xf32>
    %cst_2 = arith.constant dense<0.000000e+00> : vector<16xf32>
    %8 = vector.multi_reduction <add>, %7, %cst_2 [1] : vector<16x256xf32> to vector<16xf32>
    %9 = vector.shape_cast %8 : vector<16xf32> to vector<16x1xf32>
    %cst_3 = arith.constant 2.560000e+02 : f32
    %10 = vector.broadcast %cst_3 : f32 to vector<16x1xf32>
    %11 = arith.divf %9, %10 : vector<16x1xf32>
    %cst_4 = arith.constant 9.99999974E-6 : f32
    %12 = vector.broadcast %cst_4 : f32 to vector<16x1xf32>
    %13 = arith.addf %11, %12 : vector<16x1xf32>
    %14 = math.rsqrt %13 : vector<16x1xf32>
    %15 = vector.broadcast %14 : vector<16x1xf32> to vector<16x256xf32>
    %16 = arith.mulf %6, %15 : vector<16x256xf32>
    %c0_5 = arith.constant 0 : index
    %c0_6 = arith.constant 0 : index
    %17 = vector.load %arg2[%c0_5, %c0_6] : memref<256x1024xf32, #tpu.memory_space<vmem>>, vector<256x1024xf32>
    %cst_7 = arith.constant dense<0.000000e+00> : vector<16x1024xf32>
    %18 = tpu.matmul %16, %17, %cst_7 {dimension_numbers = #tpu.dot_dimension_numbers<[1], [0], [0], [1], [0, 0, 1, 1], [], []>} : vector<16x256xf32>, vector<256x1024xf32>, vector<16x1024xf32> -> vector<16x1024xf32>
    %c0_8 = arith.constant 0 : index
    %c0_9 = arith.constant 0 : index
    %19 = vector.load %arg3[%c0_8, %c0_9] : memref<1x1024xf32, #tpu.memory_space<vmem>>, vector<1x1024xf32>
    %20 = vector.broadcast %19 : vector<1x1024xf32> to vector<16x1024xf32>
    %21 = arith.addf %18, %20 : vector<16x1024xf32>
    %cst_10 = arith.constant 5.000000e-01 : f32
    %22 = vector.broadcast %cst_10 : f32 to vector<16x1024xf32>
    %23 = arith.mulf %22, %21 : vector<16x1024xf32>
    %cst_11 = arith.constant 0.707106769 : f32
    %24 = vector.broadcast %cst_11 : f32 to vector<16x1024xf32>
    %25 = arith.mulf %21, %24 : vector<16x1024xf32>
    %26 = math.erf %25 : vector<16x1024xf32>
    %cst_12 = arith.constant 1.000000e+00 : f32
    %27 = vector.broadcast %cst_12 : f32 to vector<16x1024xf32>
    %28 = arith.addf %27, %26 : vector<16x1024xf32>
    %29 = arith.mulf %23, %28 : vector<16x1024xf32>
    %c0_13 = arith.constant 0 : index
    %c0_14 = arith.constant 0 : index
    %30 = vector.load %arg4[%c0_13, %c0_14] : memref<1024x256xf32, #tpu.memory_space<vmem>>, vector<1024x256xf32>
    %cst_15 = arith.constant dense<0.000000e+00> : vector<16x256xf32>
    %31 = tpu.matmul %29, %30, %cst_15 {dimension_numbers = #tpu.dot_dimension_numbers<[1], [0], [0], [1], [0, 0, 1, 1], [], []>} : vector<16x1024xf32>, vector<1024x256xf32>, vector<16x256xf32> -> vector<16x256xf32>
    %c0_16 = arith.constant 0 : index
    %c0_17 = arith.constant 0 : index
    %32 = vector.load %arg5[%c0_16, %c0_17] : memref<1x256xf32, #tpu.memory_space<vmem>>, vector<1x256xf32>
    %33 = vector.broadcast %32 : vector<1x256xf32> to vector<16x256xf32>
    %34 = arith.addf %31, %33 : vector<16x256xf32>
    %c0_18 = arith.constant 0 : index
    %c0_19 = arith.constant 0 : index
    %35 = vector.load %arg6[%c0_18, %c0_19] : memref<16x256xf32, #tpu.memory_space<vmem>>, vector<16x256xf32>
    tpu.vector_store %arg6[%c0_18, %c0_19], %34 {strides = array<i32>} : memref<16x256xf32, #tpu.memory_space<vmem>>, vector<16x256xf32>,
    return
  }
  func.func @transform_0(%arg0: i32) -> (i32, i32) {
    %c0_i32 = arith.constant 0 : i32
    %c0_i32_0 = arith.constant 0 : i32
    return %arg0, %c0_i32 : i32, i32
  }
  func.func @transform_1(%arg0: i32) -> (i32, i32) {
    %c0_i32 = arith.constant 0 : i32
    %c0_i32_0 = arith.constant 0 : i32
    %c0_i32_1 = arith.constant 0 : i32
    return %c0_i32, %c0_i32_0 : i32, i32
  }
  func.func @transform_2(%arg0: i32) -> (i32, i32) {
    %c0_i32 = arith.constant 0 : i32
    %c0_i32_0 = arith.constant 0 : i32
    %c0_i32_1 = arith.constant 0 : i32
    return %c0_i32, %c0_i32_0 : i32, i32
  }
  func.func @transform_3(%arg0: i32) -> (i32, i32) {
    %c0_i32 = arith.constant 0 : i32
    %c0_i32_0 = arith.constant 0 : i32
    %c0_i32_1 = arith.constant 0 : i32
    return %c0_i32, %c0_i32_0 : i32, i32
  }
  func.func @transform_4(%arg0: i32) -> (i32, i32) {
    %c0_i32 = arith.constant 0 : i32
    %c0_i32_0 = arith.constant 0 : i32
    %c0_i32_1 = arith.constant 0 : i32
    return %c0_i32, %c0_i32_0 : i32, i32
  }
  func.func @transform_5(%arg0: i32) -> (i32, i32) {
    %c0_i32 = arith.constant 0 : i32
    %c0_i32_0 = arith.constant 0 : i32
    return %arg0, %c0_i32 : i32, i32
  }
}

module attributes {stable_mosaic.version = 11 : i64} {
  func.func @_adapter_kernel(%arg0: i32, %arg1: memref<16x256xf32, #tpu.memory_space<vmem>>, %arg2: memref<256x1024xf32, #tpu.memory_space<vmem>>, %arg3: memref<1x1024xf32, #tpu.memory_space<vmem>>, %arg4: memref<1024x256xf32, #tpu.memory_space<vmem>>, %arg5: memref<1x256xf32, #tpu.memory_space<vmem>>, %arg6: memref<16x256xf32, #tpu.memory_space<vmem>>) attributes {dimension_semantics = [#tpu.dimension_semantics<parallel>], iteration_bounds = array<i64: 1>, scalar_prefetch = 0 : i64, scratch_operands = 0 : i64, tpu.core_type = #tpu.core_type<tc>, window_params = [{transform_indices = @transform_0, window_bounds = array<i64: 16, 256>}, {pipeline_mode = #tpu.pipeline_mode<synchronous>, transform_indices = @transform_1, window_bounds = array<i64: 256, 1024>}, {pipeline_mode = #tpu.pipeline_mode<synchronous>, transform_indices = @transform_2, window_bounds = array<i64: 1, 1024>}, {pipeline_mode = #tpu.pipeline_mode<synchronous>, transform_indices = @transform_3, window_bounds = array<i64: 1024, 256>}, {pipeline_mode = #tpu.pipeline_mode<synchronous>, transform_indices = @transform_4, window_bounds = array<i64: 1, 256>}, {transform_indices = @transform_5, window_bounds = array<i64: 16, 256>}]} {
    %c0 = arith.constant 0 : index
    %c0_0 = arith.constant 0 : index
    %0 = vector.load %arg1[%c0, %c0_0] : memref<16x256xf32, #tpu.memory_space<vmem>>, vector<16x256xf32>
    %cst = arith.constant dense<0.000000e+00> : vector<16xf32>
    %1 = vector.multi_reduction <add>, %0, %cst [1] : vector<16x256xf32> to vector<16xf32>
    %2 = vector.shape_cast %1 : vector<16xf32> to vector<16x1xf32>
    %cst_1 = arith.constant 2.560000e+02 : f32
    %3 = vector.broadcast %cst_1 : f32 to vector<16x1xf32>
    %4 = arith.divf %2, %3 : vector<16x1xf32>
    %5 = vector.broadcast %4 : vector<16x1xf32> to vector<16x256xf32>
    %6 = arith.subf %0, %5 : vector<16x256xf32>
    %7 = arith.mulf %6, %6 : vector<16x256xf32>
    %cst_2 = arith.constant dense<0.000000e+00> : vector<16xf32>
    %8 = vector.multi_reduction <add>, %7, %cst_2 [1] : vector<16x256xf32> to vector<16xf32>
    %9 = vector.shape_cast %8 : vector<16xf32> to vector<16x1xf32>
    %cst_3 = arith.constant 2.560000e+02 : f32
    %10 = vector.broadcast %cst_3 : f32 to vector<16x1xf32>
    %11 = arith.divf %9, %10 : vector<16x1xf32>
    %cst_4 = arith.constant 9.99999974E-6 : f32
    %12 = vector.broadcast %cst_4 : f32 to vector<16x1xf32>
    %13 = arith.addf %11, %12 : vector<16x1xf32>
    %14 = math.rsqrt %13 : vector<16x1xf32>
    %15 = vector.broadcast %14 : vector<16x1xf32> to vector<16x256xf32>
    %16 = arith.mulf %6, %15 : vector<16x256xf32>
    %c0_5 = arith.constant 0 : index
    %c0_6 = arith.constant 0 : index
    %17 = vector.load %arg2[%c0_5, %c0_6] : memref<256x1024xf32, #tpu.memory_space<vmem>>, vector<256x1024xf32>
    %cst_7 = arith.constant dense<0.000000e+00> : vector<16x1024xf32>
    %18 = tpu.matmul %16, %17, %cst_7 {dimension_numbers = #tpu.dot_dimension_numbers<[1], [0], [0], [1], [0, 0, 1, 1], [], []>} : vector<16x256xf32>, vector<256x1024xf32>, vector<16x1024xf32> -> vector<16x1024xf32>
    %c0_8 = arith.constant 0 : index
    %c0_9 = arith.constant 0 : index
    %19 = vector.load %arg3[%c0_8, %c0_9] : memref<1x1024xf32, #tpu.memory_space<vmem>>, vector<1x1024xf32>
    %20 = vector.broadcast %19 : vector<1x1024xf32> to vector<16x1024xf32>
    %21 = arith.addf %18, %20 : vector<16x1024xf32>
    %cst_10 = arith.constant 5.000000e-01 : f32
    %22 = vector.broadcast %cst_10 : f32 to vector<16x1024xf32>
    %23 = arith.mulf %22, %21 : vector<16x1024xf32>
    %cst_11 = arith.constant 0.707106769 : f32
    %24 = vector.broadcast %cst_11 : f32 to vector<16x1024xf32>
    %25 = arith.mulf %21, %24 : vector<16x1024xf32>
    %26 = math.erf %25 : vector<16x1024xf32>
    %cst_12 = arith.constant 1.000000e+00 : f32
    %27 = vector.broadcast %cst_12 : f32 to vector<16x1024xf32>
    %28 = arith.addf %27, %26 : vector<16x1024xf32>
    %29 = arith.mulf %23, %28 : vector<16x1024xf32>
    %c0_13 = arith.constant 0 : index
    %c0_14 = arith.constant 0 : index
    %30 = vector.load %arg4[%c0_13, %c0_14] : memref<1024x256xf32, #tpu.memory_space<vmem>>, vector<1024x256xf32>
    %cst_15 = arith.constant dense<0.000000e+00> : vector<16x256xf32>
    %31 = tpu.matmul %29, %30, %cst_15 {dimension_numbers = #tpu.dot_dimension_numbers<[1], [0], [0], [1], [0, 0, 1, 1], [], []>} : vector<16x1024xf32>, vector<1024x256xf32>, vector<16x256xf32> -> vector<16x256xf32>
    %c0_16 = arith.constant 0 : index
    %c0_17 = arith.constant 0 : index
    %32 = vector.load %arg5[%c0_16, %c0_17] : memref<1x256xf32, #tpu.memory_space<vmem>>, vector<1x256xf32>
    %33 = vector.broadcast %32 : vector<1x256xf32> to vector<16x256xf32>
    %34 = arith.addf %31, %33 : vector<16x256xf32>
    %c0_18 = arith.constant 0 : index
    %c0_19 = arith.constant 0 : index
    %35 = vector.load %arg6[%c0_18, %c0_19] : memref<16x256xf32, #tpu.memory_space<vmem>>, vector<16x256xf32>
    tpu.vector_store %arg6[%c0_18, %c0_19], %34 {strides = array<i32>} : memref<16x256xf32, #tpu.memory_space<vmem>>, vector<16x256xf32>,
    return
  }
  func.func @transform_0(%arg0: i32) -> (i32, i32) {
    %c0_i32 = arith.constant 0 : i32
    %c0_i32_0 = arith.constant 0 : i32
    return %arg0, %c0_i32 : i32, i32
  }
  func.func @transform_1(%arg0: i32) -> (i32, i32) {
    %c0_i32 = arith.constant 0 : i32
    %c0_i32_0 = arith.constant 0 : i32
    %c0_i32_1 = arith.constant 0 : i32
    return %c0_i32, %c0_i32_0 : i32, i32
  }
  func.func @transform_2(%arg0: i32) -> (i32, i32) {
    %c0_i32 = arith.constant 0 : i32
    %c0_i32_0 = arith.constant 0 : i32
    %c0_i32_1 = arith.constant 0 : i32
    return %c0_i32, %c0_i32_0 : i32, i32
  }
  func.func @transform_3(%arg0: i32) -> (i32, i32) {
    %c0_i32 = arith.constant 0 : i32
    %c0_i32_0 = arith.constant 0 : i32
    %c0_i32_1 = arith.constant 0 : i32
    return %c0_i32, %c0_i32_0 : i32, i32
  }
  func.func @transform_4(%arg0: i32) -> (i32, i32) {
    %c0_i32 = arith.constant 0 : i32
    %c0_i32_0 = arith.constant 0 : i32
    %c0_i32_1 = arith.constant 0 : i32
    return %c0_i32, %c0_i32_0 : i32, i32
  }
  func.func @transform_5(%arg0: i32) -> (i32, i32) {
    %c0_i32 = arith.constant 0 : i32
    %c0_i32_0 = arith.constant 0 : i32
    return %arg0, %c0_i32 : i32, i32
  }
}

</mosaic_0001>

<bundles_post_ra>
// kernel: _adapter_impl.1
= control target key start
LH: loop header
LB: loop body
LE: loop exit
PB: predicated region body
PF: predicated region fallthrough
CT: control target
= control target key end

     0   :  { %s3613_s0 = inlined_call_operand.vmem [shape: f32[16,256], index: 0, kind: input, shape index: {}]   ;;  %s3614_s1 = inlined_call_operand.vmem [shape: f32[256,1024], index: 1, kind: input, shape index: {}]   ;;  %s3615_s2 = inlined_call_operand.vmem [shape: f32[1,1024], index: 2, kind: input, shape index: {}]   ;;  %s3616_s3 = inlined_call_operand.vmem [shape: f32[1024,256], index: 3, kind: input, shape index: {}]   ;;  %s3617_s4 = inlined_call_operand.vmem [shape: f32[1,256], index: 4, kind: input, shape index: {}]   ;;  %s3618_s5 = inlined_call_operand.hbm [shape: f32[16,256], index: 5, kind: output, shape index: {}]  }
   0x1   :  { %v1967_v0 = vld [vmem:[%s3613_s0] sm:$0xff]  ;;  %v1972_v1 = vld [vmem:[%s3613_s0 + $0x8] sm:$0xff]  ;;  %v1977_v2 = vld [vmem:[%s3613_s0 + $0x10] sm:$0xff] }
   0x2   :  { %v25_v3 = vadd.f32 %v1972_v1, %v1967_v0  ;;  %v1984_v4 = vld [vmem:[%s3613_s0 + $0x18] sm:$0xff] }
   0x3   :  { %10 = vsyncpa [#allocation3], 0  ;;  %v28_v5 = vadd.f32 %v1984_v4, %v1977_v2  ;;  %v59_v6 = vld [vmem:[%s3614_s1 + $0x8] sm:$0xff]  ;;  %v58_v8 = vld [vmem:[%s3614_s1] sm:$0xff]  ;;  %s1931_s11 = smov [#allocation2]  }
   0x4   :  { %26 = vadd.xlane.f32.xlu0 %v25_v3  ;;  %v67_v7 = vld [vmem:[%s3614_s1 + $0x48] sm:$0xff]  ;;  %v66_v10 = vld [vmem:[%s3614_s1 + $0x40] sm:$0xff]  ;;  %s1329_s12 = sshll.u32 %s1931_s11, 4  ;;  %s1330_s12 = int_to_ptr.vmem [resolvable:$true] %s1329_s12 }
   0x5   :  { %v1340_v9 = vpack.c.bf16 %v67_v7, %v59_v6  ;;  %v75_v11 = vld [vmem:[%s3614_s1 + $0x88] sm:$0xff]  ;;  %v1342_v13 = vpack.c.bf16 %v66_v10, %v58_v8  ;;  %v74_v15 = vld [vmem:[%s3614_s1 + $0x80] sm:$0xff]  ;;  %p1912_p1 = scmp.lt.s32.totalorder %s1330_s12, %s1330_s12 }
   0x6   :  { %v83_v12 = vld [vmem:[%s3614_s1 + $0xc8] sm:$0xff]  ;;  %v82_v16 = vld [vmem:[%s3614_s1 + $0xc0] sm:$0xff] }
   0x7   :  { %v1344_v14 = vpack.c.bf16 %v83_v12, %v75_v11  ;;  %v91_v17 = vld [vmem:[%s3614_s1 + $0x108] sm:$0xff]  ;;  %1341 = vmatprep.subr.bf16.mxu1 %v1340_v9  ;;  %v1346_v19 = vpack.c.bf16 %v82_v16, %v74_v15  ;;  %v90_v21 = vld [vmem:[%s3614_s1 + $0x100] sm:$0xff] }
   0x8   :  { %29 = vadd.xlane.f32.xlu0 %v28_v5  ;;  %v99_v18 = vld [vmem:[%s3614_s1 + $0x148] sm:$0xff]  ;;  %1343 = vmatpush1.bf16.msra.mxu1 %v1342_v13  ;;  %v98_v22 = vld [vmem:[%s3614_s1 + $0x140] sm:$0xff] }
   0x9   :  { %1345 = vmatprep.subr.bf16.mxu1 %v1344_v14  ;;  %v1348_v20 = vpack.c.bf16 %v99_v18, %v91_v17  ;;  %v107_v23 = vld [vmem:[%s3614_s1 + $0x188] sm:$0xff]  ;;  %v1350_v25 = vpack.c.bf16 %v98_v22, %v90_v21  ;;  %v106_v27 = vld [vmem:[%s3614_s1 + $0x180] sm:$0xff] }
   0xa   :  { %v115_v24 = vld [vmem:[%s3614_s1 + $0x1c8] sm:$0xff]  ;;  %v114_v28 = vld [vmem:[%s3614_s1 + $0x1c0] sm:$0xff] }
   0xb   :  { %v1352_v26 = vpack.c.bf16 %v115_v24, %v107_v23  ;;  %v123_v29 = vld [vmem:[%s3614_s1 + $0x208] sm:$0xff]  ;;  %v1354_v31 = vpack.c.bf16 %v114_v28, %v106_v27  ;;  %v122_v33 = vld [vmem:[%s3614_s1 + $0x200] sm:$0xff] }
   0xc   :  { %1347 = vmatpush1.bf16.msra.mxu1 %v1346_v19  ;;  %v131_v30 = vld [vmem:[%s3614_s1 + $0x248] sm:$0xff]  ;;  %v130_v34 = vld [vmem:[%s3614_s1 + $0x240] sm:$0xff] }
   0xd   :  { %1349 = vmatprep.subr.bf16.mxu1 %v1348_v20  ;;  %v1356_v32 = vpack.c.bf16 %v131_v30, %v123_v29  ;;  %v139_v35 = vld [vmem:[%s3614_s1 + $0x288] sm:$0xff]  ;;  %v1358_v37 = vpack.c.bf16 %v130_v34, %v122_v33  ;;  %v138_v39 = vld [vmem:[%s3614_s1 + $0x280] sm:$0xff] }
   0xe   :  { %v147_v36 = vld [vmem:[%s3614_s1 + $0x2c8] sm:$0xff]  ;;  %v146_v40 = vld [vmem:[%s3614_s1 + $0x2c0] sm:$0xff] }
   0xf   :  { %v1360_v38 = vpack.c.bf16 %v147_v36, %v139_v35  ;;  %v155_v41 = vld [vmem:[%s3614_s1 + $0x308] sm:$0xff]  ;;  %v1362_v43 = vpack.c.bf16 %v146_v40, %v138_v39  ;;  %v154_v45 = vld [vmem:[%s3614_s1 + $0x300] sm:$0xff] }
  0x10   :  { %1351 = vmatpush1.bf16.msra.mxu1 %v1350_v25  ;;  %v163_v42 = vld [vmem:[%s3614_s1 + $0x348] sm:$0xff]  ;;  %v162_v46 = vld [vmem:[%s3614_s1 + $0x340] sm:$0xff] }
  0x11   :  { %1353 = vmatprep.subr.bf16.mxu1 %v1352_v26  ;;  %v1364_v44 = vpack.c.bf16 %v163_v42, %v155_v41  ;;  %v171_v47 = vld [vmem:[%s3614_s1 + $0x388] sm:$0xff]  ;;  %v1366_v49 = vpack.c.bf16 %v162_v46, %v154_v45  ;;  %v170_v51 = vld [vmem:[%s3614_s1 + $0x380] sm:$0xff] }
  0x12   :  { %v179_v48 = vld [vmem:[%s3614_s1 + $0x3c8] sm:$0xff]  ;;  %v178_v52 = vld [vmem:[%s3614_s1 + $0x3c0] sm:$0xff] }
  0x13   :  { %v1368_v50 = vpack.c.bf16 %v179_v48, %v171_v47  ;;  %v187_v53 = vld [vmem:[%s3614_s1 + $0x408] sm:$0xff]  ;;  %v1370_v55 = vpack.c.bf16 %v178_v52, %v170_v51  ;;  %v186_v57 = vld [vmem:[%s3614_s1 + $0x400] sm:$0xff]  ;;  %v61_v52 = vld [vmem:[%s3614_s1 + $0x18] sm:$0xff] }
  0x14   :  { %1355 = vmatpush1.bf16.msra.mxu1 %v1354_v31  ;;  %v195_v54 = vld [vmem:[%s3614_s1 + $0x448] sm:$0xff]  ;;  %v194_v58 = vld [vmem:[%s3614_s1 + $0x440] sm:$0xff] }
  0x15   :  { %1357 = vmatprep.subr.bf16.mxu1 %v1356_v32  ;;  %v1372_v56 = vpack.c.bf16 %v195_v54, %v187_v53  ;;  %v203_v59 = vld [vmem:[%s3614_s1 + $0x488] sm:$0xff]  ;;  %v1374_v61 = vpack.c.bf16 %v194_v58, %v186_v57  ;;  %v202_v63 = vld [vmem:[%s3614_s1 + $0x480] sm:$0xff]  ;;  %v69_v53 = vld [vmem:[%s3614_s1 + $0x58] sm:$0xff] }
  0x16   :  { %v211_v60 = vld [vmem:[%s3614_s1 + $0x4c8] sm:$0xff]  ;;  %v210_v3 = vld [vmem:[%s3614_s1 + $0x4c0] sm:$0xff]  ;;  %v1404_v54 = vpack.c.bf16 %v69_v53, %v61_v52  ;;  %v196_v52 = vld [vmem:[%s3614_s1 + $0x450] sm:$0xff] }
  0x17   :  { %v1376_v62 = vpack.c.bf16 %v211_v60, %v203_v59  ;;  %v219_v5 = vld [vmem:[%s3614_s1 + $0x508] sm:$0xff]  ;;  %v1378_v7 = vpack.c.bf16 %v210_v3, %v202_v63  ;;  %v218_v9 = vld [vmem:[%s3614_s1 + $0x500] sm:$0xff]  ;;  %v77_v63 = vld [vmem:[%s3614_s1 + $0x98] sm:$0xff] }
  0x18   :  { %1359 = vmatpush1.bf16.msra.mxu1 %v1358_v37  ;;  %v227_v6 = vld [vmem:[%s3614_s1 + $0x548] sm:$0xff]  ;;  %v226_v10 = vld [vmem:[%s3614_s1 + $0x540] sm:$0xff]  ;;  %v85_v3 = vld [vmem:[%s3614_s1 + $0xd8] sm:$0xff] }
  0x19   :  { %1361 = vmatprep.subr.bf16.mxu1 %v1360_v38  ;;  %v1380_v8 = vpack.c.bf16 %v227_v6, %v219_v5  ;;  %v235_v11 = vld [vmem:[%s3614_s1 + $0x588] sm:$0xff]  ;;  %v1382_v13 = vpack.c.bf16 %v226_v10, %v218_v9  ;;  %v234_v15 = vld [vmem:[%s3614_s1 + $0x580] sm:$0xff]  ;;  %v1408_v9 = vpack.c.bf16 %v85_v3, %v77_v63  ;;  %v76_v10 = vld [vmem:[%s3614_s1 + $0x90] sm:$0xff] }
  0x1a   :  { %v243_v12 = vld [vmem:[%s3614_s1 + $0x5c8] sm:$0xff]  ;;  %v242_v16 = vld [vmem:[%s3614_s1 + $0x5c0] sm:$0xff]  ;;  %v205_v53 = vld [vmem:[%s3614_s1 + $0x498] sm:$0xff] }
  0x1b   :  { %v1384_v14 = vpack.c.bf16 %v243_v12, %v235_v11  ;;  %v1386_v17 = vpack.c.bf16 %v242_v16, %v234_v15  ;;  %v251_v30 = vld [vmem:[%s3614_s1 + $0x608] sm:$0xff]  ;;  %v250_v31 = vld [vmem:[%s3614_s1 + $0x600] sm:$0xff]  ;;  %v84_v11 = vld [vmem:[%s3614_s1 + $0xd0] sm:$0xff] }
  0x1c   :  { %1363 = vmatpush1.bf16.msra.mxu1 %v1362_v43  ;;  %v258_v32 = vld [vmem:[%s3614_s1 + $0x640] sm:$0xff]  ;;  %v267_v34 = vld [vmem:[%s3614_s1 + $0x688] sm:$0xff]  ;;  %v93_v12 = vld [vmem:[%s3614_s1 + $0x118] sm:$0xff] }
  0x1d   :  { %1365 = vmatprep.subr.bf16.mxu1 %v1364_v44  ;;  %v1390_v33 = vpack.c.bf16 %v258_v32, %v250_v31  ;;  %v275_v35 = vld [vmem:[%s3614_s1 + $0x6c8] sm:$0xff]  ;;  %v266_v37 = vld [vmem:[%s3614_s1 + $0x680] sm:$0xff]  ;;  %v220_v63 = vld [vmem:[%s3614_s1 + $0x510] sm:$0xff] }
  0x1e   :  { %v1392_v36 = vpack.c.bf16 %v275_v35, %v267_v34  ;;  %v274_v38 = vld [vmem:[%s3614_s1 + $0x6c0] sm:$0xff]  ;;  %v283_v40 = vld [vmem:[%s3614_s1 + $0x708] sm:$0xff]  ;;  %v148_v34 = vld [vmem:[%s3614_s1 + $0x2d0] sm:$0xff] }
  0x1f   :  { %v1394_v39 = vpack.c.bf16 %v274_v38, %v266_v37  ;;  %v291_v41 = vld [vmem:[%s3614_s1 + $0x748] sm:$0xff]  ;;  %v282_v43 = vld [vmem:[%s3614_s1 + $0x700] sm:$0xff]  ;;  %v157_v35 = vld [vmem:[%s3614_s1 + $0x318] sm:$0xff] }
  0x20   :  { %1367 = vmatpush1.bf16.msra.mxu1 %v1366_v49  ;;  %v1396_v42 = vpack.c.bf16 %v291_v41, %v283_v40  ;;  %v290_v44 = vld [vmem:[%s3614_s1 + $0x740] sm:$0xff]  ;;  %v299_v46 = vld [vmem:[%s3614_s1 + $0x788] sm:$0xff]  ;;  %v164_v40 = vld [vmem:[%s3614_s1 + $0x350] sm:$0xff] }
  0x21   :  { %1369 = vmatprep.subr.bf16.mxu1 %v1368_v50  ;;  %v1398_v45 = vpack.c.bf16 %v290_v44, %v282_v43  ;;  %v307_v47 = vld [vmem:[%s3614_s1 + $0x7c8] sm:$0xff]  ;;  %v298_v48 = vld [vmem:[%s3614_s1 + $0x780] sm:$0xff]  ;;  %v173_v41 = vld [vmem:[%s3614_s1 + $0x398] sm:$0xff] }
  0x22   :  { %v1400_v49 = vpack.c.bf16 %v307_v47, %v299_v46  ;;  %v306_v50 = vld [vmem:[%s3614_s1 + $0x7c0] sm:$0xff]  ;;  %v180_v46 = vld [vmem:[%s3614_s1 + $0x3d0] sm:$0xff]  ;;  %v189_v47 = vld [vmem:[%s3614_s1 + $0x418] sm:$0xff] }
  0x23   :  { %v1402_v51 = vpack.c.bf16 %v306_v50, %v298_v48  ;;  %v197_v48 = vld [vmem:[%s3614_s1 + $0x458] sm:$0xff]  ;;  %v228_v3 = vld [vmem:[%s3614_s1 + $0x550] sm:$0xff] }
  0x24   :  { %1371 = vmatpush1.bf16.msra.mxu1 %v1370_v55  ;;  %v1436_v50 = vpack.c.bf16 %v197_v48, %v189_v47  ;;  %v301_v47 = vld [vmem:[%s3614_s1 + $0x798] sm:$0xff] }
  0x25   :  { %1373 = vmatprep.subr.bf16.mxu1 %v1372_v56  ;;  %v309_v48 = vld [vmem:[%s3614_s1 + $0x7d8] sm:$0xff] }
  0x28   :  { %1375 = vmatpush1.bf16.msra.mxu1 %v1374_v61  ;;  %v60_v61 = vld [vmem:[%s3614_s1 + $0x10] sm:$0xff] }
  0x29   :  { %1377 = vmatprep.subr.bf16.mxu1 %v1376_v62  ;;  %v68_v62 = vld [vmem:[%s3614_s1 + $0x50] sm:$0xff] }
  0x2c   :  { %1379 = vmatpush1.bf16.msra.mxu1 %v1378_v7 }
  0x2d   :  { %1381 = vmatprep.subr.bf16.mxu1 %v1380_v8  ;;  %v1406_v8 = vpack.c.bf16 %v68_v62, %v60_v61 }
  0x30   :  { %1383 = vmatpush1.bf16.msra.mxu1 %v1382_v13  ;;  %v101_v13 = vld [vmem:[%s3614_s1 + $0x158] sm:$0xff] }
  0x31   :  { %1385 = vmatprep.subr.bf16.mxu1 %v1384_v14 }
  0x34   :  { %1387 = vmatpush1.bf16.msra.mxu1 %v1386_v17  ;;  %v1410_v17 = vpack.c.bf16 %v84_v11, %v76_v10  ;;  %v236_v10 = vld [vmem:[%s3614_s1 + $0x590] sm:$0xff] }
  0x35   :  { %v244_v11 = vld [vmem:[%s3614_s1 + $0x5d0] sm:$0xff] }
  0x91   :  { %v27_v18 = vpop.xlane.xlu0 %26 }
  0x92   :  { %v32_v19 = vmul.f32 0.00390625, %v27_v18  ;;  %v1412_v18 = vpack.c.bf16 %v101_v13, %v93_v12  ;;  %v253_v13 = vld [vmem:[%s3614_s1 + $0x618] sm:$0xff] }
  0x94   :  { %v2133_v20 = vsub.f32 %v1967_v0, %v32_v19  ;;  %v35_v21 = vsub.f32 %v1972_v1, %v32_v19  ;;  %v92_v19 = vld [vmem:[%s3614_s1 + $0x110] sm:$0xff] }
  0x95   :  { %v30_v22 = vpop.xlane.xlu0 %29 }
  0x96   :  { %v33_v23 = vmul.f32 0.00390625, %v30_v22  ;;  %v38_v24 = vmul.f32 %v2133_v20, %v2133_v20  ;;  %v39_v25 = vmul.f32 %v35_v21, %v35_v21  ;;  %v117_v22 = vld [vmem:[%s3614_s1 + $0x1d8] sm:$0xff] }
  0x98   :  { %v2139_v26 = vsub.f32 %v1977_v2, %v33_v23  ;;  %v2142_v27 = vsub.f32 %v1984_v4, %v33_v23  ;;  %v42_v28 = vadd.f32 %v39_v25, %v38_v24  ;;  %v259_v2 = vld [vmem:[%s3614_s1 + $0x648] sm:$0xff]  ;;  %v108_v25 = vld [vmem:[%s3614_s1 + $0x190] sm:$0xff] }
  0x99   :  { %v1388_v4 = vpack.c.bf16 %v259_v2, %v251_v30  ;;  %v132_v30 = vld [vmem:[%s3614_s1 + $0x250] sm:$0xff]  ;;  %v141_v2 = vld [vmem:[%s3614_s1 + $0x298] sm:$0xff] }
  0x9a   :  { %43 = vadd.xlane.f32.xlu1 %v42_v28  ;;  %v40_v0 = vmul.f32 %v2139_v26, %v2139_v26  ;;  %v41_v1 = vmul.f32 %v2142_v27, %v2142_v27  ;;  %v133_v28 = vld [vmem:[%s3614_s1 + $0x258] sm:$0xff] }
  0x9b   :  { %1389 = vmatprep.subr.bf16.mxu1 %v1388_v4  ;;  %v149_v4 = vld [vmem:[%s3614_s1 + $0x2d8] sm:$0xff] }
  0x9c   :  { %v45_v29 = vadd.f32 %v41_v1, %v40_v0  ;;  %1391 = vmatpush1.bf16.msra.mxu1 %v1390_v33  ;;  %v1424_v32 = vpack.c.bf16 %v149_v4, %v141_v2  ;;  %v140_v33 = vld [vmem:[%s3614_s1 + $0x290] sm:$0xff] }
  0x9d   :  { %1393 = vmatprep.subr.bf16.mxu1 %v1392_v36  ;;  %v165_v36 = vld [vmem:[%s3614_s1 + $0x358] sm:$0xff]  ;;  %v1426_v37 = vpack.c.bf16 %v148_v34, %v140_v33  ;;  %v276_v33 = vld [vmem:[%s3614_s1 + $0x6d0] sm:$0xff] }
  0x9e   :  { %46 = vadd.xlane.f32.xlu1 %v45_v29  ;;  %v124_v29 = vld [vmem:[%s3614_s1 + $0x210] sm:$0xff]  ;;  %v1428_v38 = vpack.c.bf16 %v165_v36, %v157_v35  ;;  %v285_v35 = vld [vmem:[%s3614_s1 + $0x718] sm:$0xff] }
  0x9f   :  { %v1422_v31 = vpack.c.bf16 %v132_v30, %v124_v29  ;;  %v748_v29 = vld [vmem:[%s3616_s3 + $0x20] sm:$0xff]  ;;  %v750_v30 = vld [vmem:[%s3616_s3 + $0x30] sm:$0xff]  ;;  %v293_v36 = vld [vmem:[%s3614_s1 + $0x758] sm:$0xff] }
  0xa0   :  { %1395 = vmatpush1.bf16.msra.mxu1 %v1394_v39  ;;  %v156_v39 = vld [vmem:[%s3614_s1 + $0x310] sm:$0xff]  ;;  %v1602_v4 = vpack.c.bf16 %v750_v30, %v748_v29  ;;  %v768_v30 = vld [vmem:[%s3616_s3 + $0xc0] sm:$0xff] }
  0xa1   :  { %1397 = vmatprep.subr.bf16.mxu1 %v1396_v42  ;;  %v181_v42 = vld [vmem:[%s3614_s1 + $0x3d8] sm:$0xff]  ;;  %v1430_v43 = vpack.c.bf16 %v164_v40, %v156_v39  ;;  %v752_v39 = vld [vmem:[%s3616_s3 + $0x40] sm:$0xff]  ;;  %v754_v40 = vld [vmem:[%s3616_s3 + $0x50] sm:$0xff] }
  0xa2   :  { %v1432_v44 = vpack.c.bf16 %v181_v42, %v173_v41  ;;  %v1606_v42 = vpack.c.bf16 %v754_v40, %v752_v39  ;;  %v772_v40 = vld [vmem:[%s3616_s3 + $0xe0] sm:$0xff] }
  0xa4   :  { %1399 = vmatpush1.bf16.msra.mxu1 %v1398_v45  ;;  %v172_v45 = vld [vmem:[%s3614_s1 + $0x390] sm:$0xff] }
  0xa5   :  { %1401 = vmatprep.subr.bf16.mxu1 %v1400_v49  ;;  %v1434_v49 = vpack.c.bf16 %v180_v46, %v172_v45  ;;  %v292_v45 = vld [vmem:[%s3614_s1 + $0x750] sm:$0xff]  ;;  %v1460_v46 = vpack.c.bf16 %v293_v36, %v285_v35  ;;  %v111_v35 = vld [vmem:[%s3614_s1 + $0x1a8] sm:$0xff] }
  0xa6   :  { %v773_v36 = vld [vmem:[%s3616_s3 + $0xe8] sm:$0xff] }
  0xa8   :  { %1403 = vmatpush1.bf16.msra.mxu1 %v1402_v51  ;;  %v188_v51 = vld [vmem:[%s3614_s1 + $0x410] sm:$0xff] }
  0xa9   :  { %1405 = vmatprep.subr.bf16.mxu1 %v1404_v54  ;;  %v213_v54 = vld [vmem:[%s3614_s1 + $0x4d8] sm:$0xff] }
 0x127   :  { %v44_v55 = vpop.xlane.xlu1 %43 }
 0x128   :  { %v48_v56 = vmul.f32 0.00390625, %v44_v55  ;;  %v1438_v55 = vpack.c.bf16 %v196_v52, %v188_v51  ;;  %v756_v51 = vld [vmem:[%s3616_s3 + $0x60] sm:$0xff]  ;;  %v758_v52 = vld [vmem:[%s3616_s3 + $0x70] sm:$0xff] }
 0x12a   :  { %v50_v57 = vadd.f32 1e-05, %v48_v56  ;;  %v1440_v56 = vpack.c.bf16 %v213_v54, %v205_v53  ;;  %v1610_v54 = vpack.c.bf16 %v758_v52, %v756_v51  ;;  %v110_v52 = vld [vmem:[%s3614_s1 + $0x1a0] sm:$0xff] }
 0x12b   :  { %v47_v58 = vpop.xlane.xlu1 %46 }
 0x12c   :  { %1871 = vrsqrt.f32 %v50_v57  ;;  %v49_v59 = vmul.f32 0.00390625, %v47_v58  ;;  %v204_v57 = vld [vmem:[%s3614_s1 + $0x490] sm:$0xff] }
 0x12d   :  { %v212_v58 = vld [vmem:[%s3614_s1 + $0x4d0] sm:$0xff] }
 0x12e   :  { %v51_v60 = vadd.f32 1e-05, %v49_v59  ;;  %v221_v59 = vld [vmem:[%s3614_s1 + $0x518] sm:$0xff]  ;;  %v1442_v61 = vpack.c.bf16 %v212_v58, %v204_v57  ;;  %v308_v57 = vld [vmem:[%s3614_s1 + $0x7d0] sm:$0xff]  ;;  %v1464_v58 = vpack.c.bf16 %v309_v48, %v301_v47 }
 0x12f   :  { %v778_v48 = vld [vmem:[%s3616_s3 + $0x110] sm:$0xff] }
 0x130   :  { %1873 = vrsqrt.f32 %v51_v60  ;;  %v229_v60 = vld [vmem:[%s3614_s1 + $0x558] sm:$0xff] }
 0x131   :  { %v1444_v62 = vpack.c.bf16 %v229_v60, %v221_v59  ;;  %v63_v59 = vld [vmem:[%s3614_s1 + $0x28] sm:$0xff] }
 0x132   :  { %v71_v60 = vld [vmem:[%s3614_s1 + $0x68] sm:$0xff] }
 0x136   :  { %v1872_v5 = vpop.eup %1871 }
 0x137   :  { %v2214_v6 = vmul.f32 %v1872_v5, %v35_v21  ;;  %v2217_v7 = vmul.f32 %v1872_v5, %v2133_v20  ;;  %v100_v20 = vld [vmem:[%s3614_s1 + $0x150] sm:$0xff]  ;;  %v109_v21 = vld [vmem:[%s3614_s1 + $0x198] sm:$0xff] }
 0x138   :  { %v1414_v23 = vpack.c.bf16 %v100_v20, %v92_v19  ;;  %v1416_v24 = vpack.c.bf16 %v117_v22, %v109_v21  ;;  %v237_v5 = vld [vmem:[%s3614_s1 + $0x598] sm:$0xff]  ;;  %v744_v19 = vld [vmem:[%s3616_s3] sm:$0xff]  ;;  %v746_v20 = vld [vmem:[%s3616_s3 + $0x10] sm:$0xff] }
 0x139   :  { %420 = vmatprep.mubr.f32.mxu1 %v2214_v6  ;;  %v1598_v22 = vpack.c.bf16 %v746_v20, %v744_v19  ;;  %v764_v19 = vld [vmem:[%s3616_s3 + $0xa0] sm:$0xff]  ;;  %v766_v20 = vld [vmem:[%s3616_s3 + $0xb0] sm:$0xff] }
 0x13a   :  { %v1874_v14 = vpop.eup %1873  ;;  %421 = vmatmul.mubr.f32.vlgmr.msra.gmra.mrb[0].mxu1 %v2217_v7 }
 0x13b   :  { %1407 = vmatpush1.bf16.msra.mxu1 %v1406_v8  ;;  %v2234_v15 = vmul.f32 %v1874_v14, %v2142_v27  ;;  %v2237_v16 = vmul.f32 %v1874_v14, %v2139_v26  ;;  %v116_v26 = vld [vmem:[%s3614_s1 + $0x1d0] sm:$0xff]  ;;  %v125_v27 = vld [vmem:[%s3614_s1 + $0x218] sm:$0xff] }
 0x13c   :  { %1409 = vmatprep.subr.bf16.mxu1 %v1408_v9  ;;  %v1418_v0 = vpack.c.bf16 %v116_v26, %v108_v25  ;;  %v1420_v1 = vpack.c.bf16 %v133_v28, %v125_v27  ;;  %v245_v8 = vld [vmem:[%s3614_s1 + $0x5d8] sm:$0xff]  ;;  %v1446_v9 = vpack.c.bf16 %v228_v3, %v220_v63  ;;  %v260_v25 = vld [vmem:[%s3614_s1 + $0x650] sm:$0xff]  ;;  %v760_v63 = vld [vmem:[%s3616_s3 + $0x80] sm:$0xff] }
 0x13d   :  { %426 = vmatprep.mubr.f32.mxu1 %v2234_v15  ;;  %v1448_v12 = vpack.c.bf16 %v245_v8, %v237_v5  ;;  %v261_v14 = vld [vmem:[%s3614_s1 + $0x658] sm:$0xff]  ;;  %v762_v3 = vld [vmem:[%s3616_s3 + $0x90] sm:$0xff] }
 0x13e   :  { %427 = vmatmul.mubr.f32.gmra.mrb[2].mxu1 %v2237_v16  ;;  %v1452_v26 = vpack.c.bf16 %v261_v14, %v253_v13  ;;  %v269_v27 = vld [vmem:[%s3614_s1 + $0x698] sm:$0xff]  ;;  %v1614_v8 = vpack.c.bf16 %v762_v3, %v760_v63  ;;  %v79_v13 = vld [vmem:[%s3614_s1 + $0xa8] sm:$0xff]  ;;  %v126_v3 = vld [vmem:[%s3614_s1 + $0x220] sm:$0xff] }
 0x13f   :  { %1411 = vmatpush1.bf16.msra.mxu1 %v1410_v17  ;;  %497 = vmatprep.mubr.f32.mxu1 %v2214_v6  ;;  %v745_v17 = vld [vmem:[%s3616_s3 + $0x8] sm:$0xff]  ;;  %v277_v28 = vld [vmem:[%s3614_s1 + $0x6d8] sm:$0xff] }
 0x140   :  { %1413 = vmatprep.subr.bf16.mxu1 %v1412_v18  ;;  %v747_v18 = vld [vmem:[%s3616_s3 + $0x18] sm:$0xff]  ;;  %v1456_v34 = vpack.c.bf16 %v277_v28, %v269_v27  ;;  %v87_v14 = vld [vmem:[%s3614_s1 + $0xe8] sm:$0xff] }
 0x141   :  { %v1596_v21 = vpack.c.bf16 %v747_v18, %v745_v17  ;;  %v765_v17 = vld [vmem:[%s3616_s3 + $0xa8] sm:$0xff]  ;;  %v767_v18 = vld [vmem:[%s3616_s3 + $0xb8] sm:$0xff] }
 0x142   :  { %v95_v27 = vld [vmem:[%s3614_s1 + $0x128] sm:$0xff] }
 0x143   :  { %1415 = vmatpush1.bf16.msra.mxu1 %v1414_v23  ;;  %v1450_v23 = vpack.c.bf16 %v244_v11, %v236_v10  ;;  %1597 = vmatprep.subr.bf16.mxu0 %v1596_v21  ;;  %v62_v10 = vld [vmem:[%s3614_s1 + $0x20] sm:$0xff]  ;;  %v1616_v21 = vpack.c.bf16 %v767_v18, %v765_v17  ;;  %v769_v28 = vld [vmem:[%s3616_s3 + $0xc8] sm:$0xff] }
 0x144   :  { %1417 = vmatprep.subr.bf16.mxu1 %v1416_v24  ;;  %v252_v24 = vld [vmem:[%s3614_s1 + $0x610] sm:$0xff]  ;;  %1599 = vmatpush1.bf16.msra.mxu0 %v1598_v22  ;;  %v70_v11 = vld [vmem:[%s3614_s1 + $0x60] sm:$0xff]  ;;  %v1618_v22 = vpack.c.bf16 %v766_v20, %v764_v19  ;;  %v159_v20 = vld [vmem:[%s3614_s1 + $0x328] sm:$0xff] }
 0x145   :  { %v142_v18 = vld [vmem:[%s3614_s1 + $0x2a0] sm:$0xff] }
 0x146   :  { %v150_v19 = vld [vmem:[%s3614_s1 + $0x2e0] sm:$0xff] }
 0x147   :  { %1419 = vmatpush1.bf16.msra.mxu1 %v1418_v0  ;;  %v749_v0 = vld [vmem:[%s3616_s3 + $0x28] sm:$0xff] }
 0x148   :  { %1421 = vmatprep.subr.bf16.mxu1 %v1420_v1  ;;  %v751_v1 = vld [vmem:[%s3616_s3 + $0x38] sm:$0xff] }
 0x149   :  { %v1600_v2 = vpack.c.bf16 %v751_v1, %v749_v0  ;;  %v771_v0 = vld [vmem:[%s3616_s3 + $0xd8] sm:$0xff]  ;;  %v103_v1 = vld [vmem:[%s3614_s1 + $0x168] sm:$0xff] }
 0x14a   :  { %v1620_v29 = vpack.c.bf16 %v771_v0, %v769_v28  ;;  %v789_v28 = vld [vmem:[%s3616_s3 + $0x168] sm:$0xff]  ;;  %v791_v0 = vld [vmem:[%s3616_s3 + $0x178] sm:$0xff] }
 0x14b   :  { %1423 = vmatpush1.bf16.msra.mxu1 %v1422_v31  ;;  %v1454_v31 = vpack.c.bf16 %v260_v25, %v252_v24  ;;  %1601 = vmatprep.subr.bf16.mxu0 %v1600_v2  ;;  %v78_v24 = vld [vmem:[%s3614_s1 + $0xa0] sm:$0xff]  ;;  %v770_v2 = vld [vmem:[%s3616_s3 + $0xd0] sm:$0xff] }
 0x14c   :  { %1425 = vmatprep.subr.bf16.mxu1 %v1424_v32  ;;  %v268_v32 = vld [vmem:[%s3614_s1 + $0x690] sm:$0xff]  ;;  %1603 = vmatpush1.bf16.msra.mxu0 %v1602_v4  ;;  %v86_v25 = vld [vmem:[%s3614_s1 + $0xe0] sm:$0xff]  ;;  %v1622_v4 = vpack.c.bf16 %v770_v2, %v768_v30 }
 0x14d   :  { %v788_v30 = vld [vmem:[%s3616_s3 + $0x160] sm:$0xff]  ;;  %v790_v2 = vld [vmem:[%s3616_s3 + $0x170] sm:$0xff] }
 0x14f   :  { %1427 = vmatpush1.bf16.msra.mxu1 %v1426_v37  ;;  %v753_v37 = vld [vmem:[%s3616_s3 + $0x48] sm:$0xff] }
 0x150   :  { %1429 = vmatprep.subr.bf16.mxu1 %v1428_v38  ;;  %v755_v38 = vld [vmem:[%s3616_s3 + $0x58] sm:$0xff] }
 0x151   :  { %v1604_v41 = vpack.c.bf16 %v755_v38, %v753_v37  ;;  %v775_v37 = vld [vmem:[%s3616_s3 + $0xf8] sm:$0xff]  ;;  %v119_v38 = vld [vmem:[%s3614_s1 + $0x1e8] sm:$0xff] }
 0x152   :  { %v1624_v39 = vpack.c.bf16 %v775_v37, %v773_v36  ;;  %v1480_v51 = vpack.c.bf16 %v119_v38, %v111_v35  ;;  %v191_v35 = vld [vmem:[%s3614_s1 + $0x428] sm:$0xff]  ;;  %v795_v37 = vld [vmem:[%s3616_s3 + $0x198] sm:$0xff] }
 0x153   :  { %1431 = vmatpush1.bf16.msra.mxu1 %v1430_v43  ;;  %v1458_v43 = vpack.c.bf16 %v276_v33, %v268_v32  ;;  %1605 = vmatprep.subr.bf16.mxu0 %v1604_v41  ;;  %v94_v32 = vld [vmem:[%s3614_s1 + $0x120] sm:$0xff]  ;;  %v774_v41 = vld [vmem:[%s3616_s3 + $0xf0] sm:$0xff]  ;;  %v793_v36 = vld [vmem:[%s3616_s3 + $0x188] sm:$0xff] }
 0x154   :  { %1433 = vmatprep.subr.bf16.mxu1 %v1432_v44  ;;  %v284_v44 = vld [vmem:[%s3614_s1 + $0x710] sm:$0xff]  ;;  %1607 = vmatpush1.bf16.msra.mxu0 %v1606_v42  ;;  %v102_v33 = vld [vmem:[%s3614_s1 + $0x160] sm:$0xff]  ;;  %v1626_v42 = vpack.c.bf16 %v774_v41, %v772_v40  ;;  %v199_v38 = vld [vmem:[%s3614_s1 + $0x468] sm:$0xff] }
 0x155   :  { %v792_v40 = vld [vmem:[%s3616_s3 + $0x180] sm:$0xff]  ;;  %v794_v41 = vld [vmem:[%s3616_s3 + $0x190] sm:$0xff] }
 0x157   :  { %1435 = vmatpush1.bf16.msra.mxu1 %v1434_v49  ;;  %v757_v49 = vld [vmem:[%s3616_s3 + $0x68] sm:$0xff] }
 0x158   :  { %1437 = vmatprep.subr.bf16.mxu1 %v1436_v50  ;;  %v759_v50 = vld [vmem:[%s3616_s3 + $0x78] sm:$0xff] }
 0x159   :  { %v1608_v53 = vpack.c.bf16 %v759_v50, %v757_v49  ;;  %v781_v49 = vld [vmem:[%s3616_s3 + $0x128] sm:$0xff]  ;;  %v783_v50 = vld [vmem:[%s3616_s3 + $0x138] sm:$0xff] }
 0x15b   :  { %1439 = vmatpush1.bf16.msra.mxu1 %v1438_v55  ;;  %v1462_v55 = vpack.c.bf16 %v292_v45, %v284_v44  ;;  %1609 = vmatprep.subr.bf16.mxu0 %v1608_v53  ;;  %v779_v44 = vld [vmem:[%s3616_s3 + $0x118] sm:$0xff]  ;;  %v776_v45 = vld [vmem:[%s3616_s3 + $0x100] sm:$0xff] }
 0x15c   :  { %1441 = vmatprep.subr.bf16.mxu1 %v1440_v56  ;;  %v300_v56 = vld [vmem:[%s3614_s1 + $0x790] sm:$0xff]  ;;  %1611 = vmatpush1.bf16.msra.mxu0 %v1610_v54  ;;  %v118_v53 = vld [vmem:[%s3614_s1 + $0x1e0] sm:$0xff]  ;;  %v127_v54 = vld [vmem:[%s3614_s1 + $0x228] sm:$0xff] }
 0x15f   :  { %1443 = vmatpush1.bf16.msra.mxu1 %v1442_v61  ;;  %v761_v61 = vld [vmem:[%s3616_s3 + $0x88] sm:$0xff] }
 0x160   :  { %1445 = vmatprep.subr.bf16.mxu1 %v1444_v62  ;;  %v763_v62 = vld [vmem:[%s3616_s3 + $0x98] sm:$0xff] }
 0x161   :  { %v1612_v5 = vpack.c.bf16 %v763_v62, %v761_v61  ;;  %v785_v61 = vld [vmem:[%s3616_s3 + $0x148] sm:$0xff]  ;;  %v787_v62 = vld [vmem:[%s3616_s3 + $0x158] sm:$0xff] }
 0x163   :  { %1447 = vmatpush1.bf16.msra.mxu1 %v1446_v9  ;;  %v1466_v9 = vpack.c.bf16 %v308_v57, %v300_v56  ;;  %1613 = vmatprep.subr.bf16.mxu0 %v1612_v5  ;;  %v1630_v56 = vpack.c.bf16 %v778_v48, %v776_v45  ;;  %v1632_v57 = vpack.c.bf16 %v783_v50, %v781_v49  ;;  %v134_v5 = vld [vmem:[%s3614_s1 + $0x260] sm:$0xff]  ;;  %v797_v48 = vld [vmem:[%s3616_s3 + $0x1a8] sm:$0xff]  ;;  %v799_v49 = vld [vmem:[%s3616_s3 + $0x1b8] sm:$0xff] }
 0x164   :  { %1449 = vmatprep.subr.bf16.mxu1 %v1448_v12  ;;  %v1468_v12 = vpack.c.bf16 %v71_v60, %v63_v59  ;;  %1615 = vmatpush1.bf16.msra.mxu0 %v1614_v8  ;;  %v782_v59 = vld [vmem:[%s3616_s3 + $0x130] sm:$0xff]  ;;  %v1482_v60 = vpack.c.bf16 %v118_v53, %v110_v52  ;;  %v143_v8 = vld [vmem:[%s3614_s1 + $0x2a8] sm:$0xff]  ;;  %v198_v45 = vld [vmem:[%s3614_s1 + $0x460] sm:$0xff] }
 0x165   :  { %1617 = vmatprep.subr.bf16.mxu0 %v1616_v21  ;;  %v167_v21 = vld [vmem:[%s3614_s1 + $0x368] sm:$0xff]  ;;  %v796_v52 = vld [vmem:[%s3616_s3 + $0x1a0] sm:$0xff]  ;;  %v798_v53 = vld [vmem:[%s3616_s3 + $0x1b0] sm:$0xff] }
 0x166   :  { %v215_v50 = vld [vmem:[%s3614_s1 + $0x4e8] sm:$0xff] }
 0x167   :  { %1451 = vmatpush1.bf16.msra.mxu1 %v1450_v23  ;;  %v1470_v23 = vpack.c.bf16 %v70_v11, %v62_v10  ;;  %v1636_v11 = vpack.c.bf16 %v787_v62, %v785_v61  ;;  %v803_v61 = vld [vmem:[%s3616_s3 + $0x1d8] sm:$0xff]  ;;  %v231_v62 = vld [vmem:[%s3614_s1 + $0x568] sm:$0xff] }
 0x168   :  { %1453 = vmatprep.subr.bf16.mxu1 %v1452_v26  ;;  %v1472_v26 = vpack.c.bf16 %v87_v14, %v79_v13  ;;  %1619 = vmatpush1.bf16.msra.mxu0 %v1618_v22  ;;  %v786_v13 = vld [vmem:[%s3616_s3 + $0x150] sm:$0xff]  ;;  %v1486_v14 = vpack.c.bf16 %v134_v5, %v126_v3  ;;  %v800_v3 = vld [vmem:[%s3616_s3 + $0x1c0] sm:$0xff] }
 0x169   :  { %1621 = vmatprep.subr.bf16.mxu0 %v1620_v29  ;;  %v1640_v29 = vpack.c.bf16 %v791_v0, %v789_v28  ;;  %v802_v5 = vld [vmem:[%s3616_s3 + $0x1d0] sm:$0xff]  ;;  %v811_v28 = vld [vmem:[%s3616_s3 + $0x218] sm:$0xff]  ;;  %v255_v0 = vld [vmem:[%s3614_s1 + $0x628] sm:$0xff] }
 0x16b   :  { %1455 = vmatpush1.bf16.msra.mxu1 %v1454_v31  ;;  %v1474_v31 = vpack.c.bf16 %v86_v25, %v78_v24  ;;  %v158_v24 = vld [vmem:[%s3614_s1 + $0x320] sm:$0xff] }
 0x16c   :  { %1457 = vmatprep.subr.bf16.mxu1 %v1456_v34  ;;  %v1476_v34 = vpack.c.bf16 %v103_v1, %v95_v27  ;;  %1623 = vmatpush1.bf16.msra.mxu0 %v1622_v4  ;;  %v166_v25 = vld [vmem:[%s3614_s1 + $0x360] sm:$0xff]  ;;  %v175_v27 = vld [vmem:[%s3614_s1 + $0x3a8] sm:$0xff]  ;;  %v1642_v4 = vpack.c.bf16 %v790_v2, %v788_v30 }
 0x16d   :  { %1625 = vmatprep.subr.bf16.mxu0 %v1624_v39  ;;  %v183_v1 = vld [vmem:[%s3614_s1 + $0x3e8] sm:$0xff]  ;;  %v1644_v39 = vpack.c.bf16 %v795_v37, %v793_v36  ;;  %v270_v36 = vld [vmem:[%s3614_s1 + $0x6a0] sm:$0xff] }
 0x16e   :  { %v278_v37 = vld [vmem:[%s3614_s1 + $0x6e0] sm:$0xff] }
 0x16f   :  { %1459 = vmatpush1.bf16.msra.mxu1 %v1458_v43  ;;  %v777_v43 = vld [vmem:[%s3616_s3 + $0x108] sm:$0xff] }
 0x170   :  { %1461 = vmatprep.subr.bf16.mxu1 %v1460_v46  ;;  %v1478_v46 = vpack.c.bf16 %v102_v33, %v94_v32  ;;  %v1628_v47 = vpack.c.bf16 %v779_v44, %v777_v43  ;;  %1627 = vmatpush1.bf16.msra.mxu0 %v1626_v42  ;;  %v174_v32 = vld [vmem:[%s3614_s1 + $0x3a0] sm:$0xff]  ;;  %v1646_v42 = vpack.c.bf16 %v794_v41, %v792_v40 }
 0x171   :  { %v182_v33 = vld [vmem:[%s3614_s1 + $0x3e0] sm:$0xff]  ;;  %v1522_v40 = vpack.c.bf16 %v278_v37, %v270_v36  ;;  %v184_v36 = vld [vmem:[%s3614_s1 + $0x3f0] sm:$0xff]  ;;  %v193_v37 = vld [vmem:[%s3614_s1 + $0x438] sm:$0xff] }
 0x172   :  { %1629 = vmatprep.subr.bf16.mxu0 %v1628_v47  ;;  %v1498_v43 = vpack.c.bf16 %v182_v33, %v174_v32  ;;  %v190_v44 = vld [vmem:[%s3614_s1 + $0x420] sm:$0xff]  ;;  %v207_v47 = vld [vmem:[%s3614_s1 + $0x4a8] sm:$0xff] }
 0x173   :  { %1463 = vmatpush1.bf16.msra.mxu1 %v1462_v55  ;;  %v135_v55 = vld [vmem:[%s3614_s1 + $0x268] sm:$0xff] }
 0x174   :  { %1465 = vmatprep.subr.bf16.mxu1 %v1464_v58  ;;  %v780_v58 = vld [vmem:[%s3616_s3 + $0x120] sm:$0xff]  ;;  %v1484_v63 = vpack.c.bf16 %v135_v55, %v127_v54  ;;  %1631 = vmatpush1.bf16.msra.mxu0 %v1630_v56  ;;  %v1650_v54 = vpack.c.bf16 %v798_v53, %v796_v52  ;;  %v1502_v55 = vpack.c.bf16 %v198_v45, %v190_v44  ;;  %v271_v32 = vld [vmem:[%s3614_s1 + $0x6a8] sm:$0xff] }
 0x175   :  { %v1634_v10 = vpack.c.bf16 %v782_v59, %v780_v58  ;;  %1633 = vmatprep.subr.bf16.mxu0 %v1632_v57  ;;  %v206_v56 = vld [vmem:[%s3614_s1 + $0x4a0] sm:$0xff]  ;;  %v1504_v58 = vpack.c.bf16 %v215_v50, %v207_v47  ;;  %v223_v59 = vld [vmem:[%s3614_s1 + $0x528] sm:$0xff]  ;;  %v65_v50 = vld [vmem:[%s3614_s1 + $0x38] sm:$0xff] }
 0x176   :  { %v214_v57 = vld [vmem:[%s3614_s1 + $0x4e0] sm:$0xff]  ;;  %v279_v33 = vld [vmem:[%s3614_s1 + $0x6e8] sm:$0xff] }
 0x177   :  { %1467 = vmatpush1.bf16.msra.mxu1 %v1466_v9  ;;  %v151_v9 = vld [vmem:[%s3614_s1 + $0x2e8] sm:$0xff] }
 0x178   :  { %1469 = vmatprep.subr.bf16.mxu1 %v1468_v12  ;;  %v784_v12 = vld [vmem:[%s3616_s3 + $0x140] sm:$0xff]  ;;  %v1488_v17 = vpack.c.bf16 %v151_v9, %v143_v8  ;;  %1635 = vmatpush1.bf16.msra.mxu0 %v1634_v10  ;;  %v1654_v8 = vpack.c.bf16 %v802_v5, %v800_v3  ;;  %v1506_v9 = vpack.c.bf16 %v214_v57, %v206_v56  ;;  %v303_v44 = vld [vmem:[%s3614_s1 + $0x7a8] sm:$0xff]  ;;  %v81_v56 = vld [vmem:[%s3614_s1 + $0xb8] sm:$0xff] }
 0x179   :  { %v1638_v22 = vpack.c.bf16 %v786_v13, %v784_v12  ;;  %1637 = vmatprep.subr.bf16.mxu0 %v1636_v11  ;;  %v222_v10 = vld [vmem:[%s3614_s1 + $0x520] sm:$0xff]  ;;  %v1508_v12 = vpack.c.bf16 %v231_v62, %v223_v59  ;;  %v239_v13 = vld [vmem:[%s3614_s1 + $0x5a8] sm:$0xff]  ;;  %v89_v57 = vld [vmem:[%s3614_s1 + $0xf8] sm:$0xff] }
 0x17a   :  { %498 = vmatmul.mubr.f32.vlgmr.msra.gmra.mrb[4].mxu1 %v2217_v7  ;;  %v230_v11 = vld [vmem:[%s3614_s1 + $0x560] sm:$0xff]  ;;  %v311_v45 = vld [vmem:[%s3614_s1 + $0x7e8] sm:$0xff]  ;;  %v1536_v59 = vpack.c.bf16 %v89_v57, %v81_v56  ;;  %v97_v62 = vld [vmem:[%s3614_s1 + $0x138] sm:$0xff] }
 0x17b   :  { %503 = vmatprep.mubr.f32.mxu1 %v2234_v15  ;;  %1471 = vmatpush1.bf16.msra.mxu1 %v1470_v23  ;;  %v1490_v23 = vpack.c.bf16 %v150_v19, %v142_v18  ;;  %v247_v18 = vld [vmem:[%s3614_s1 + $0x5e8] sm:$0xff]  ;;  %v1528_v47 = vpack.c.bf16 %v311_v45, %v303_v44  ;;  %v217_v44 = vld [vmem:[%s3614_s1 + $0x4f8] sm:$0xff] }
 0x17c   :  { %1473 = vmatprep.subr.bf16.mxu1 %v1472_v26  ;;  %v1492_v26 = vpack.c.bf16 %v167_v21, %v159_v20  ;;  %1639 = vmatpush1.bf16.msra.mxu0 %v1638_v22  ;;  %v804_v20 = vld [vmem:[%s3616_s3 + $0x1e0] sm:$0xff]  ;;  %v806_v21 = vld [vmem:[%s3616_s3 + $0x1f0] sm:$0xff]  ;;  %v249_v56 = vld [vmem:[%s3614_s1 + $0x5f8] sm:$0xff] }
 0x17d   :  { %1641 = vmatprep.subr.bf16.mxu0 %v1640_v29  ;;  %v1658_v22 = vpack.c.bf16 %v806_v21, %v804_v20  ;;  %v128_v21 = vld [vmem:[%s3614_s1 + $0x230] sm:$0xff] }
 0x17e   :  { %504 = vmatmul.mubr.f32.gmra.mrb[6].mxu1 %v2237_v16 }
 0x17f   :  { %1475 = vmatpush1.bf16.msra.mxu1 %v1474_v31  ;;  %574 = vmatprep.mubr.f32.mxu1 %v2214_v6  ;;  %v1494_v31 = vpack.c.bf16 %v166_v25, %v158_v24  ;;  %v238_v24 = vld [vmem:[%s3614_s1 + $0x5a0] sm:$0xff]  ;;  %v1512_v25 = vpack.c.bf16 %v247_v18, %v239_v13  ;;  %v129_v18 = vld [vmem:[%s3614_s1 + $0x238] sm:$0xff] }
 0x180   :  { %1477 = vmatprep.subr.bf16.mxu1 %v1476_v34  ;;  %v1496_v34 = vpack.c.bf16 %v183_v1, %v175_v27  ;;  %1643 = vmatpush1.bf16.msra.mxu0 %v1642_v4  ;;  %v809_v27 = vld [vmem:[%s3616_s3 + $0x208] sm:$0xff]  ;;  %v254_v4 = vld [vmem:[%s3614_s1 + $0x620] sm:$0xff] }
 0x181   :  { %1645 = vmatprep.subr.bf16.mxu0 %v1644_v39  ;;  %v263_v1 = vld [vmem:[%s3614_s1 + $0x668] sm:$0xff]  ;;  %v1660_v29 = vpack.c.bf16 %v811_v28, %v809_v27  ;;  %v144_v27 = vld [vmem:[%s3614_s1 + $0x2b0] sm:$0xff] }
 0x182   :  { %v1516_v2 = vpack.c.bf16 %v263_v1, %v255_v0  ;;  %v295_v39 = vld [vmem:[%s3614_s1 + $0x768] sm:$0xff]  ;;  %v152_v28 = vld [vmem:[%s3614_s1 + $0x2f0] sm:$0xff]  ;;  %v161_v0 = vld [vmem:[%s3614_s1 + $0x338] sm:$0xff] }
 0x183   :  { %1479 = vmatpush1.bf16.msra.mxu1 %v1478_v46  ;;  %v1500_v46 = vpack.c.bf16 %v199_v38, %v191_v35  ;;  %v1520_v35 = vpack.c.bf16 %v279_v33, %v271_v32  ;;  %v287_v38 = vld [vmem:[%s3614_s1 + $0x728] sm:$0xff]  ;;  %v169_v1 = vld [vmem:[%s3614_s1 + $0x378] sm:$0xff] }
 0x184   :  { %1481 = vmatprep.subr.bf16.mxu1 %v1480_v51  ;;  %1647 = vmatpush1.bf16.msra.mxu0 %v1646_v42  ;;  %v1648_v51 = vpack.c.bf16 %v799_v49, %v797_v48  ;;  %v1524_v41 = vpack.c.bf16 %v295_v39, %v287_v38  ;;  %v286_v42 = vld [vmem:[%s3614_s1 + $0x720] sm:$0xff]  ;;  %v185_v32 = vld [vmem:[%s3614_s1 + $0x3f8] sm:$0xff] }
 0x185   :  { %v302_v48 = vld [vmem:[%s3614_s1 + $0x7a0] sm:$0xff]  ;;  %v201_v38 = vld [vmem:[%s3614_s1 + $0x478] sm:$0xff] }
 0x186   :  { %1649 = vmatprep.subr.bf16.mxu0 %v1648_v51  ;;  %v310_v49 = vld [vmem:[%s3614_s1 + $0x7e0] sm:$0xff]  ;;  %v73_v51 = vld [vmem:[%s3614_s1 + $0x78] sm:$0xff] }
 0x187   :  { %1483 = vmatpush1.bf16.msra.mxu1 %v1482_v60  ;;  %v801_v60 = vld [vmem:[%s3616_s3 + $0x1c8] sm:$0xff]  ;;  %v1530_v52 = vpack.c.bf16 %v310_v49, %v302_v48  ;;  %v1532_v53 = vpack.c.bf16 %v73_v51, %v65_v50  ;;  %v216_v48 = vld [vmem:[%s3614_s1 + $0x4f0] sm:$0xff]  ;;  %v225_v49 = vld [vmem:[%s3614_s1 + $0x538] sm:$0xff] }
 0x188   :  { %1485 = vmatprep.subr.bf16.mxu1 %v1484_v63  ;;  %1651 = vmatpush1.bf16.msra.mxu0 %v1650_v54  ;;  %v1652_v63 = vpack.c.bf16 %v803_v61, %v801_v60  ;;  %v64_v54 = vld [vmem:[%s3614_s1 + $0x30] sm:$0xff]  ;;  %v233_v50 = vld [vmem:[%s3614_s1 + $0x578] sm:$0xff] }
 0x189   :  { %v80_v60 = vld [vmem:[%s3614_s1 + $0xb0] sm:$0xff] }
 0x18a   :  { %1653 = vmatprep.subr.bf16.mxu0 %v1652_v63  ;;  %v88_v61 = vld [vmem:[%s3614_s1 + $0xf0] sm:$0xff]  ;;  %v105_v63 = vld [vmem:[%s3614_s1 + $0x178] sm:$0xff] }
 0x18b   :  { %1487 = vmatpush1.bf16.msra.mxu1 %v1486_v14  ;;  %v805_v14 = vld [vmem:[%s3616_s3 + $0x1e8] sm:$0xff]  ;;  %v1538_v3 = vpack.c.bf16 %v88_v61, %v80_v60  ;;  %v1540_v5 = vpack.c.bf16 %v105_v63, %v97_v62  ;;  %v248_v60 = vld [vmem:[%s3614_s1 + $0x5f0] sm:$0xff]  ;;  %v257_v61 = vld [vmem:[%s3614_s1 + $0x638] sm:$0xff] }
 0x18c   :  { %1489 = vmatprep.subr.bf16.mxu1 %v1488_v17  ;;  %v807_v17 = vld [vmem:[%s3616_s3 + $0x1f8] sm:$0xff]  ;;  %1655 = vmatpush1.bf16.msra.mxu0 %v1654_v8  ;;  %v96_v8 = vld [vmem:[%s3614_s1 + $0x130] sm:$0xff] }
 0x18d   :  { %v1656_v19 = vpack.c.bf16 %v807_v17, %v805_v14  ;;  %v112_v14 = vld [vmem:[%s3614_s1 + $0x1b0] sm:$0xff]  ;;  %v265_v62 = vld [vmem:[%s3614_s1 + $0x678] sm:$0xff] }
 0x18e   :  { %v120_v17 = vld [vmem:[%s3614_s1 + $0x1f0] sm:$0xff] }
 0x18f   :  { %1491 = vmatpush1.bf16.msra.mxu1 %v1490_v23  ;;  %v1510_v23 = vpack.c.bf16 %v230_v11, %v222_v10  ;;  %1657 = vmatprep.subr.bf16.mxu0 %v1656_v19  ;;  %v113_v10 = vld [vmem:[%s3614_s1 + $0x1b8] sm:$0xff] }
 0x190   :  { %1493 = vmatprep.subr.bf16.mxu1 %v1492_v26  ;;  %v246_v26 = vld [vmem:[%s3614_s1 + $0x5e0] sm:$0xff]  ;;  %1659 = vmatpush1.bf16.msra.mxu0 %v1658_v22  ;;  %v121_v11 = vld [vmem:[%s3614_s1 + $0x1f8] sm:$0xff]  ;;  %v136_v22 = vld [vmem:[%s3614_s1 + $0x270] sm:$0xff] }
 0x191   :  { %v1514_v30 = vpack.c.bf16 %v246_v26, %v238_v24  ;;  %1661 = vmatprep.subr.bf16.mxu0 %v1660_v29  ;;  %v1544_v13 = vpack.c.bf16 %v121_v11, %v113_v10  ;;  %v137_v19 = vld [vmem:[%s3614_s1 + $0x278] sm:$0xff]  ;;  %v1554_v29 = vpack.c.bf16 %v152_v28, %v144_v27  ;;  %v312_v27 = vld [vmem:[%s3614_s1 + $0x7f0] sm:$0xff] }
 0x192   :  { %v1548_v20 = vpack.c.bf16 %v137_v19, %v129_v18  ;;  %v153_v24 = vld [vmem:[%s3614_s1 + $0x2f8] sm:$0xff] }
 0x193   :  { %1495 = vmatpush1.bf16.msra.mxu1 %v1494_v31  ;;  %v262_v31 = vld [vmem:[%s3614_s1 + $0x660] sm:$0xff]  ;;  %v281_v10 = vld [vmem:[%s3614_s1 + $0x6f8] sm:$0xff] }
 0x194   :  { %1497 = vmatprep.subr.bf16.mxu1 %v1496_v34  ;;  %v1518_v34 = vpack.c.bf16 %v262_v31, %v254_v4  ;;  %v168_v4 = vld [vmem:[%s3614_s1 + $0x370] sm:$0xff]  ;;  %v177_v31 = vld [vmem:[%s3614_s1 + $0x3b8] sm:$0xff] }
 0x195   :  { %v297_v18 = vld [vmem:[%s3614_s1 + $0x778] sm:$0xff] }
 0x197   :  { %1499 = vmatpush1.bf16.msra.mxu1 %v1498_v43  ;;  %v294_v43 = vld [vmem:[%s3614_s1 + $0x760] sm:$0xff] }
 0x198   :  { %1501 = vmatprep.subr.bf16.mxu1 %v1500_v46  ;;  %v1526_v46 = vpack.c.bf16 %v294_v43, %v286_v42  ;;  %v200_v42 = vld [vmem:[%s3614_s1 + $0x470] sm:$0xff]  ;;  %v209_v43 = vld [vmem:[%s3614_s1 + $0x4b8] sm:$0xff] }
 0x19b   :  { %1503 = vmatpush1.bf16.msra.mxu1 %v1502_v55  ;;  %v72_v55 = vld [vmem:[%s3614_s1 + $0x70] sm:$0xff] }
 0x19c   :  { %1505 = vmatprep.subr.bf16.mxu1 %v1504_v58  ;;  %v1534_v58 = vpack.c.bf16 %v72_v55, %v64_v54  ;;  %v232_v54 = vld [vmem:[%s3614_s1 + $0x570] sm:$0xff]  ;;  %v241_v55 = vld [vmem:[%s3614_s1 + $0x5b8] sm:$0xff] }
 0x19f   :  { %1507 = vmatpush1.bf16.msra.mxu1 %v1506_v9  ;;  %v104_v9 = vld [vmem:[%s3614_s1 + $0x170] sm:$0xff] }
 0x1a0   :  { %1509 = vmatprep.subr.bf16.mxu1 %v1508_v12  ;;  %v1542_v12 = vpack.c.bf16 %v104_v9, %v96_v8  ;;  %v264_v8 = vld [vmem:[%s3614_s1 + $0x670] sm:$0xff]  ;;  %v273_v9 = vld [vmem:[%s3614_s1 + $0x6b8] sm:$0xff] }
 0x1a3   :  { %1511 = vmatpush1.bf16.msra.mxu1 %v1510_v23  ;;  %v145_v23 = vld [vmem:[%s3614_s1 + $0x2b8] sm:$0xff] }
 0x1a4   :  { %1513 = vmatprep.subr.bf16.mxu1 %v1512_v25  ;;  %v1550_v25 = vpack.c.bf16 %v136_v22, %v128_v21  ;;  %v1552_v26 = vpack.c.bf16 %v153_v24, %v145_v23  ;;  %v296_v21 = vld [vmem:[%s3614_s1 + $0x770] sm:$0xff]  ;;  %v305_v22 = vld [vmem:[%s3614_s1 + $0x7b8] sm:$0xff] }
 0x1a5   :  { %v313_v23 = vld [vmem:[%s3614_s1 + $0x7f8] sm:$0xff] }
 0x1a7   :  { %1515 = vmatpush1.bf16.msra.mxu1 %v1514_v30  ;;  %v1556_v30 = vpack.c.bf16 %v169_v1, %v161_v0  ;;  %v316_v0 = vlaneseq }
 0x1a8   :  { %1517 = vmatprep.subr.bf16.mxu1 %v1516_v2  ;;  %v160_v2 = vld [vmem:[%s3614_s1 + $0x330] sm:$0xff] }
 0x1a9   :  { %v1558_v33 = vpack.c.bf16 %v168_v4, %v160_v2  ;;  %v2997_v1 = vshrl.u32 %v316_v0, 7 }
 0x1ab   :  { %1519 = vmatpush1.bf16.msra.mxu1 %v1518_v34  ;;  %v1560_v34 = vpack.c.bf16 %v185_v32, %v177_v31  ;;  %v322_v2 = vsub.s32 1, %v2997_v1 }
 0x1ac   :  { %1521 = vmatprep.subr.bf16.mxu1 %v1520_v35  ;;  %v176_v35 = vld [vmem:[%s3614_s1 + $0x3b0] sm:$0xff] }
 0x1ad   :  { %v1562_v39 = vpack.c.bf16 %v184_v36, %v176_v35 }
 0x1af   :  { %1523 = vmatpush1.bf16.msra.mxu1 %v1522_v40  ;;  %v1564_v40 = vpack.c.bf16 %v201_v38, %v193_v37 }
 0x1b0   :  { %1525 = vmatprep.subr.bf16.mxu1 %v1524_v41  ;;  %v192_v41 = vld [vmem:[%s3614_s1 + $0x430] sm:$0xff] }
 0x1b1   :  { %v1566_v45 = vpack.c.bf16 %v200_v42, %v192_v41 }
 0x1b3   :  { %1527 = vmatpush1.bf16.msra.mxu1 %v1526_v46  ;;  %v1568_v46 = vpack.c.bf16 %v217_v44, %v209_v43  ;;  %v808_v44 = vld [vmem:[%s3616_s3 + $0x200] sm:$0xff] }
 0x1b4   :  { %1529 = vmatprep.subr.bf16.mxu1 %v1528_v47  ;;  %v208_v47 = vld [vmem:[%s3614_s1 + $0x4b0] sm:$0xff] }
 0x1b5   :  { %v1570_v51 = vpack.c.bf16 %v216_v48, %v208_v47  ;;  %v813_v48 = vld [vmem:[%s3616_s3 + $0x228] sm:$0xff] }
 0x1b7   :  { %1531 = vmatpush1.bf16.msra.mxu1 %v1530_v52  ;;  %v1572_v52 = vpack.c.bf16 %v233_v50, %v225_v49  ;;  %v815_v49 = vld [vmem:[%s3616_s3 + $0x238] sm:$0xff] }
 0x1b8   :  { %1533 = vmatprep.subr.bf16.mxu1 %v1532_v53  ;;  %v224_v53 = vld [vmem:[%s3614_s1 + $0x530] sm:$0xff] }
 0x1b9   :  { %v1574_v57 = vpack.c.bf16 %v232_v54, %v224_v53 }
 0x1ba   :  { %575 = vmatmul.mubr.f32.vlgmr.msra.gmra.mrb[8].mxu1 %v2217_v7 }
 0x1bb   :  { %580 = vmatprep.mubr.f32.mxu1 %v2234_v15  ;;  %1535 = vmatpush1.bf16.msra.mxu1 %v1534_v58  ;;  %v1576_v58 = vpack.c.bf16 %v249_v56, %v241_v55 }
 0x1bc   :  { %1537 = vmatprep.subr.bf16.mxu1 %v1536_v59  ;;  %v240_v59 = vld [vmem:[%s3614_s1 + $0x5b0] sm:$0xff] }
 0x1bd   :  { %v1578_v63 = vpack.c.bf16 %v248_v60, %v240_v59  ;;  %v814_v59 = vld [vmem:[%s3616_s3 + $0x230] sm:$0xff] }
 0x1be   :  { %581 = vmatmul.mubr.f32.gmra.mrb[10].mxu1 %v2237_v16 }
 0x1bf   :  { %1539 = vmatpush1.bf16.msra.mxu1 %v1538_v3  ;;  %651 = vmatprep.mubr.f32.mxu1 %v2214_v6  ;;  %v1546_v6 = vpack.c.bf16 %v120_v17, %v112_v14  ;;  %v1580_v3 = vpack.c.bf16 %v265_v62, %v257_v61  ;;  %v280_v14 = vld [vmem:[%s3614_s1 + $0x6f0] sm:$0xff]  ;;  %v289_v17 = vld [vmem:[%s3614_s1 + $0x738] sm:$0xff]  ;;  %v817_v62 = vld [vmem:[%s3616_s3 + $0x248] sm:$0xff] }
 0x1c0   :  { %1541 = vmatprep.subr.bf16.mxu1 %v1540_v5  ;;  %v256_v5 = vld [vmem:[%s3614_s1 + $0x630] sm:$0xff] }
 0x1c1   :  { %v1582_v11 = vpack.c.bf16 %v264_v8, %v256_v5 }
 0x1c3   :  { %1543 = vmatpush1.bf16.msra.mxu1 %v1542_v12  ;;  %v1584_v12 = vpack.c.bf16 %v281_v10, %v273_v9 }
 0x1c4   :  { %1545 = vmatprep.subr.bf16.mxu1 %v1544_v13  ;;  %v272_v13 = vld [vmem:[%s3614_s1 + $0x6b0] sm:$0xff] }
 0x1c5   :  { %v1586_v19 = vpack.c.bf16 %v280_v14, %v272_v13  ;;  %v821_v13 = vld [vmem:[%s3616_s3 + $0x268] sm:$0xff]  ;;  %v823_v14 = vld [vmem:[%s3616_s3 + $0x278] sm:$0xff] }
 0x1c7   :  { %1547 = vmatpush1.bf16.msra.mxu1 %v1546_v6  ;;  %v1588_v6 = vpack.c.bf16 %v297_v18, %v289_v17  ;;  %v1672_v18 = vpack.c.bf16 %v823_v14, %v821_v13 }
 0x1c8   :  { %1549 = vmatprep.subr.bf16.mxu1 %v1548_v20  ;;  %v288_v20 = vld [vmem:[%s3614_s1 + $0x730] sm:$0xff] }
 0x1c9   :  { %v1590_v24 = vpack.c.bf16 %v296_v21, %v288_v20  ;;  %v825_v20 = vld [vmem:[%s3616_s3 + $0x288] sm:$0xff]  ;;  %v827_v21 = vld [vmem:[%s3616_s3 + $0x298] sm:$0xff] }
 0x1cb   :  { %1551 = vmatpush1.bf16.msra.mxu1 %v1550_v25  ;;  %v1592_v25 = vpack.c.bf16 %v313_v23, %v305_v22  ;;  %v1676_v23 = vpack.c.bf16 %v827_v21, %v825_v20  ;;  %v861_v21 = vld [vmem:[%s3616_s3 + $0x3a8] sm:$0xff] }
 0x1cc   :  { %1553 = vmatprep.subr.bf16.mxu1 %v1552_v26  ;;  %v304_v26 = vld [vmem:[%s3614_s1 + $0x7b0] sm:$0xff] }
 0x1cd   :  { %v1594_v28 = vpack.c.bf16 %v312_v27, %v304_v26  ;;  %v829_v26 = vld [vmem:[%s3616_s3 + $0x2a8] sm:$0xff]  ;;  %v831_v27 = vld [vmem:[%s3616_s3 + $0x2b8] sm:$0xff] }
 0x1ce   :  { %v1680_v0 = vpack.c.bf16 %v831_v27, %v829_v26 }
 0x1cf   :  { %1555 = vmatpush1.bf16.msra.mxu1 %v1554_v29  ;;  %v318_v29 = vsub.s32 0, %v2997_v1 }
 0x1d0   :  { %1557 = vmatprep.subr.bf16.mxu1 %v1556_v30  ;;  %v3003_v30 = vld [vmem:[%s3615_s2] sm:$0xff] }
 0x1d3   :  { %1559 = vmatpush1.bf16.msra.mxu1 %v1558_v33 }
 0x1d4   :  { %1561 = vmatprep.subr.bf16.mxu1 %v1560_v34 }
 0x1d7   :  { %1563 = vmatpush1.bf16.msra.mxu1 %v1562_v39 }
 0x1d8   :  { %1565 = vmatprep.subr.bf16.mxu1 %v1564_v40 }
 0x1db   :  { %1567 = vmatpush1.bf16.msra.mxu1 %v1566_v45  ;;  %v810_v45 = vld [vmem:[%s3616_s3 + $0x210] sm:$0xff] }
 0x1dc   :  { %1569 = vmatprep.subr.bf16.mxu1 %v1568_v46  ;;  %v1662_v53 = vpack.c.bf16 %v810_v45, %v808_v44  ;;  %v840_v45 = vld [vmem:[%s3616_s3 + $0x300] sm:$0xff] }
 0x1df   :  { %1571 = vmatpush1.bf16.msra.mxu1 %v1570_v51 }
 0x1e0   :  { %1573 = vmatprep.subr.bf16.mxu1 %v1572_v52 }
 0x1e3   :  { %1575 = vmatpush1.bf16.msra.mxu1 %v1574_v57  ;;  %v1664_v57 = vpack.c.bf16 %v815_v49, %v813_v48  ;;  %v847_v48 = vld [vmem:[%s3616_s3 + $0x338] sm:$0xff] }
 0x1e4   :  { %1577 = vmatprep.subr.bf16.mxu1 %v1576_v58  ;;  %v812_v58 = vld [vmem:[%s3616_s3 + $0x220] sm:$0xff] }
 0x1e5   :  { %v1666_v8 = vpack.c.bf16 %v814_v59, %v812_v58  ;;  %v850_v58 = vld [vmem:[%s3616_s3 + $0x350] sm:$0xff]  ;;  %v326_v59 = vsub.s32 2, %v2997_v1 }
 0x1e7   :  { %1579 = vmatpush1.bf16.msra.mxu1 %v1578_v63  ;;  %v819_v63 = vld [vmem:[%s3616_s3 + $0x258] sm:$0xff] }
 0x1e8   :  { %1581 = vmatprep.subr.bf16.mxu1 %v1580_v3  ;;  %v1668_v10 = vpack.c.bf16 %v819_v63, %v817_v62  ;;  %v330_v62 = vsub.s32 3, %v2997_v1 }
 0x1eb   :  { %1583 = vmatpush1.bf16.msra.mxu1 %v1582_v11  ;;  %v816_v11 = vld [vmem:[%s3616_s3 + $0x240] sm:$0xff] }
 0x1ec   :  { %1585 = vmatprep.subr.bf16.mxu1 %v1584_v12  ;;  %v818_v12 = vld [vmem:[%s3616_s3 + $0x250] sm:$0xff] }
 0x1ed   :  { %v1670_v17 = vpack.c.bf16 %v818_v12, %v816_v11  ;;  %v859_v11 = vld [vmem:[%s3616_s3 + $0x398] sm:$0xff]  ;;  %v331_v12 = vrot.slane %v3003_v30, %v330_v62 }
 0x1ef   :  { %1587 = vmatpush1.bf16.msra.mxu1 %v1586_v19  ;;  %v820_v19 = vld [vmem:[%s3616_s3 + $0x260] sm:$0xff] }
 0x1f0   :  { %1589 = vmatprep.subr.bf16.mxu1 %v1588_v6  ;;  %v822_v6 = vld [vmem:[%s3616_s3 + $0x270] sm:$0xff] }
 0x1f1   :  { %v1674_v22 = vpack.c.bf16 %v822_v6, %v820_v19  ;;  %v858_v19 = vld [vmem:[%s3616_s3 + $0x390] sm:$0xff] }
 0x1f3   :  { %1591 = vmatpush1.bf16.msra.mxu1 %v1590_v24  ;;  %v824_v24 = vld [vmem:[%s3616_s3 + $0x280] sm:$0xff] }
 0x1f4   :  { %1593 = vmatprep.subr.bf16.mxu1 %v1592_v25  ;;  %v826_v25 = vld [vmem:[%s3616_s3 + $0x290] sm:$0xff] }
 0x1f7   :  { %1595 = vmatpush1.bf16.msra.mxu1 %v1594_v28  ;;  %v1678_v28 = vpack.c.bf16 %v826_v25, %v824_v24 }
 0x1fa   :  { %652 = vmatmul.mubr.f32.vlgmr.msra.gmra.mrb[12].mxu1 %v2217_v7  ;;  %v319_v7 = vrot.slane %v3003_v30, %v318_v29 }
 0x1fb   :  { %657 = vmatprep.mubr.f32.mxu1 %v2234_v15  ;;  %v323_v15 = vrot.slane %v3003_v30, %v322_v2 }
 0x1fe   :  { %658 = vmatmul.mubr.f32.gmra.mrb[14].mxu1 %v2237_v16 }
 0x20d   :  { %v422_v16 = vpop.f32.mrb[0].mxu1 }
 0x20e   :  { %v423_v4 = vadd.f32 %v422_v16, %v319_v7  ;;  %v424_v31 = vpop.f32.mrb[1].mxu1  ;;  %v833_v16 = vld [vmem:[%s3616_s3 + $0x2c8] sm:$0xff] }
 0x20f   :  { %v425_v32 = vadd.f32 %v424_v31, %v323_v15 }
 0x210   :  { %v680_v33 = vmul.f32 0.70710677, %v423_v4  ;;  %v664_v50 = vmul.f32 0.5, %v423_v4  ;;  %v835_v4 = vld [vmem:[%s3616_s3 + $0x2d8] sm:$0xff] }
 0x211   :  { %v681_v34 = vmul.f32 0.70710677, %v425_v32  ;;  %v428_v35 = vpop.f32.mrb[2].mxu1  ;;  %v665_v46 = vmul.f32 0.5, %v425_v32  ;;  %v1684_v32 = vpack.c.bf16 %v835_v4, %v833_v16  ;;  %v865_v4 = vld [vmem:[%s3616_s3 + $0x3c8] sm:$0xff] }
 0x212   :  { %1875 = verf.f32 %v680_v33  ;;  %v429_v36 = vadd.f32 %v428_v35, %v319_v7  ;;  %v430_v37 = vpop.f32.mrb[3].mxu1  ;;  %v828_v7 = vld [vmem:[%s3616_s3 + $0x2a0] sm:$0xff]  ;;  %v837_v35 = vld [vmem:[%s3616_s3 + $0x2e8] sm:$0xff] }
 0x213   :  { %1877 = verf.f32 %v681_v34  ;;  %v431_v38 = vadd.f32 %v430_v37, %v323_v15  ;;  %v830_v15 = vld [vmem:[%s3616_s3 + $0x2b0] sm:$0xff]  ;;  %v832_v33 = vld [vmem:[%s3616_s3 + $0x2c0] sm:$0xff] }
 0x214   :  { %v688_v39 = vmul.f32 0.70710677, %v429_v36  ;;  %v672_v3 = vmul.f32 0.5, %v429_v36  ;;  %v1682_v31 = vpack.c.bf16 %v830_v15, %v828_v7  ;;  %v834_v34 = vld [vmem:[%s3616_s3 + $0x2d0] sm:$0xff]  ;;  %v839_v36 = vld [vmem:[%s3616_s3 + $0x2f8] sm:$0xff] }
 0x215   :  { %v689_v40 = vmul.f32 0.70710677, %v431_v38  ;;  %v673_v60 = vmul.f32 0.5, %v431_v38  ;;  %v1686_v37 = vpack.c.bf16 %v834_v34, %v832_v33  ;;  %v1688_v38 = vpack.c.bf16 %v839_v36, %v837_v35  ;;  %v862_v7 = vld [vmem:[%s3616_s3 + $0x3b0] sm:$0xff] }
 0x216   :  { %1879 = verf.f32 %v688_v39  ;;  %v836_v39 = vld [vmem:[%s3616_s3 + $0x2e0] sm:$0xff] }
 0x217   :  { %1881 = verf.f32 %v689_v40  ;;  %v838_v40 = vld [vmem:[%s3616_s3 + $0x2f0] sm:$0xff] }
 0x21c   :  { %v1876_v41 = vpop.eup %1875 }
 0x21d   :  { %v1878_v42 = vpop.eup %1877  ;;  %v712_v43 = vadd.f32 1.0, %v1876_v41  ;;  %v841_v41 = vld [vmem:[%s3616_s3 + $0x308] sm:$0xff] }
 0x21e   :  { %v713_v47 = vadd.f32 1.0, %v1878_v42  ;;  %v843_v42 = vld [vmem:[%s3616_s3 + $0x318] sm:$0xff] }
 0x21f   :  { %v728_v56 = vmul.f32 %v712_v43, %v664_v50  ;;  %v1690_v43 = vpack.c.bf16 %v838_v40, %v836_v39  ;;  %v1692_v44 = vpack.c.bf16 %v843_v42, %v841_v41  ;;  %v869_v39 = vld [vmem:[%s3616_s3 + $0x3e8] sm:$0xff]  ;;  %v871_v40 = vld [vmem:[%s3616_s3 + $0x3f8] sm:$0xff] }
 0x220   :  { %v1880_v51 = vpop.eup %1879  ;;  %v729_v52 = vmul.f32 %v713_v47, %v665_v46  ;;  %v842_v46 = vld [vmem:[%s3616_s3 + $0x310] sm:$0xff]  ;;  %v845_v47 = vld [vmem:[%s3616_s3 + $0x328] sm:$0xff]  ;;  %v1720_v42 = vpack.c.bf16 %v871_v40, %v869_v39 }
 0x221   :  { %v1882_v54 = vpop.eup %1881  ;;  %v720_v55 = vadd.f32 1.0, %v1880_v51  ;;  %v1694_v49 = vpack.c.bf16 %v842_v46, %v840_v45  ;;  %v1696_v50 = vpack.c.bf16 %v847_v48, %v845_v47  ;;  %v844_v51 = vld [vmem:[%s3616_s3 + $0x320] sm:$0xff]  ;;  %v873_v45 = vld [vmem:[%s3616_s3 + $0x408] sm:$0xff]  ;;  %v875_v46 = vld [vmem:[%s3616_s3 + $0x418] sm:$0xff] }
 0x222   :  { %v721_v61 = vadd.f32 1.0, %v1882_v54  ;;  %1076 = vmatprep.mubr.f32.mxu0 %v729_v52  ;;  %v846_v52 = vld [vmem:[%s3616_s3 + $0x330] sm:$0xff]  ;;  %v851_v54 = vld [vmem:[%s3616_s3 + $0x358] sm:$0xff] }
 0x223   :  { %1077 = vmatmul.mubr.f32.vlgmr.msra.gmra.mrb[0].mxu0 %v728_v56  ;;  %v736_v9 = vmul.f32 %v720_v55, %v672_v3  ;;  %v1698_v55 = vpack.c.bf16 %v846_v52, %v844_v51  ;;  %v1724_v51 = vpack.c.bf16 %v875_v46, %v873_v45  ;;  %v872_v52 = vld [vmem:[%s3616_s3 + $0x400] sm:$0xff] }
 0x224   :  { %1663 = vmatpush1.bf16.msra.mxu0 %v1662_v53  ;;  %v737_v5 = vmul.f32 %v721_v61, %v673_v60  ;;  %v849_v53 = vld [vmem:[%s3616_s3 + $0x348] sm:$0xff]  ;;  %v855_v61 = vld [vmem:[%s3616_s3 + $0x378] sm:$0xff] }
 0x225   :  { %1665 = vmatprep.subr.bf16.mxu0 %v1664_v57  ;;  %v1700_v56 = vpack.c.bf16 %v851_v54, %v849_v53  ;;  %v848_v57 = vld [vmem:[%s3616_s3 + $0x340] sm:$0xff]  ;;  %v853_v60 = vld [vmem:[%s3616_s3 + $0x368] sm:$0xff]  ;;  %v874_v53 = vld [vmem:[%s3616_s3 + $0x410] sm:$0xff] }
 0x226   :  { %1082 = vmatprep.mubr.f32.mxu0 %v737_v5  ;;  %v1702_v63 = vpack.c.bf16 %v850_v58, %v848_v57  ;;  %v1704_v3 = vpack.c.bf16 %v855_v61, %v853_v60  ;;  %v852_v5 = vld [vmem:[%s3616_s3 + $0x360] sm:$0xff]  ;;  %v879_v57 = vld [vmem:[%s3616_s3 + $0x438] sm:$0xff]  ;;  %v1726_v61 = vpack.c.bf16 %v874_v53, %v872_v52 }
 0x227   :  { %1083 = vmatmul.mubr.f32.gmra.mrb[2].mxu0 %v736_v9  ;;  %v327_v9 = vrot.slane %v3003_v30, %v326_v59  ;;  %v904_v53 = vld [vmem:[%s3616_s3 + $0x500] sm:$0xff] }
 0x228   :  { %1667 = vmatpush1.bf16.msra.mxu0 %v1666_v8  ;;  %v854_v8 = vld [vmem:[%s3616_s3 + $0x370] sm:$0xff] }
 0x229   :  { %1669 = vmatprep.subr.bf16.mxu0 %v1668_v10  ;;  %v857_v10 = vld [vmem:[%s3616_s3 + $0x388] sm:$0xff]  ;;  %v1706_v13 = vpack.c.bf16 %v854_v8, %v852_v5  ;;  %v876_v8 = vld [vmem:[%s3616_s3 + $0x420] sm:$0xff] }
 0x22c   :  { %1671 = vmatpush1.bf16.msra.mxu0 %v1670_v17  ;;  %v1708_v17 = vpack.c.bf16 %v859_v11, %v857_v10 }
 0x22d   :  { %1673 = vmatprep.subr.bf16.mxu0 %v1672_v18  ;;  %v856_v18 = vld [vmem:[%s3616_s3 + $0x380] sm:$0xff] }
 0x22e   :  { %v1710_v25 = vpack.c.bf16 %v858_v19, %v856_v18 }
 0x230   :  { %1675 = vmatpush1.bf16.msra.mxu0 %v1674_v22  ;;  %v863_v22 = vld [vmem:[%s3616_s3 + $0x3b8] sm:$0xff] }
 0x231   :  { %1677 = vmatprep.subr.bf16.mxu0 %v1676_v23 }
 0x234   :  { %1679 = vmatpush1.bf16.msra.mxu0 %v1678_v28  ;;  %v1712_v28 = vpack.c.bf16 %v863_v22, %v861_v21  ;;  %v882_v21 = vld [vmem:[%s3616_s3 + $0x450] sm:$0xff]  ;;  %v885_v22 = vld [vmem:[%s3616_s3 + $0x468] sm:$0xff] }
 0x235   :  { %1681 = vmatprep.subr.bf16.mxu0 %v1680_v0  ;;  %v860_v0 = vld [vmem:[%s3616_s3 + $0x3a0] sm:$0xff] }
 0x236   :  { %v1714_v34 = vpack.c.bf16 %v862_v7, %v860_v0  ;;  %v891_v0 = vld [vmem:[%s3616_s3 + $0x498] sm:$0xff] }
 0x238   :  { %1683 = vmatpush1.bf16.msra.mxu0 %v1682_v31  ;;  %v867_v31 = vld [vmem:[%s3616_s3 + $0x3d8] sm:$0xff] }
 0x239   :  { %1685 = vmatprep.subr.bf16.mxu0 %v1684_v32  ;;  %v1716_v36 = vpack.c.bf16 %v867_v31, %v865_v4  ;;  %v890_v4 = vld [vmem:[%s3616_s3 + $0x490] sm:$0xff]  ;;  %v893_v31 = vld [vmem:[%s3616_s3 + $0x4a8] sm:$0xff] }
 0x23c   :  { %1687 = vmatpush1.bf16.msra.mxu0 %v1686_v37  ;;  %v864_v37 = vld [vmem:[%s3616_s3 + $0x3c0] sm:$0xff] }
 0x23d   :  { %1689 = vmatprep.subr.bf16.mxu0 %v1688_v38  ;;  %v866_v38 = vld [vmem:[%s3616_s3 + $0x3d0] sm:$0xff] }
 0x23e   :  { %v1718_v41 = vpack.c.bf16 %v866_v38, %v864_v37  ;;  %v897_v37 = vld [vmem:[%s3616_s3 + $0x4c8] sm:$0xff]  ;;  %v899_v38 = vld [vmem:[%s3616_s3 + $0x4d8] sm:$0xff] }
 0x23f   :  { %v1748_v40 = vpack.c.bf16 %v899_v38, %v897_v37  ;;  %v929_v38 = vld [vmem:[%s3616_s3 + $0x5c8] sm:$0xff] }
 0x240   :  { %1691 = vmatpush1.bf16.msra.mxu0 %v1690_v43  ;;  %v868_v43 = vld [vmem:[%s3616_s3 + $0x3e0] sm:$0xff] }
 0x241   :  { %1693 = vmatprep.subr.bf16.mxu0 %v1692_v44  ;;  %v870_v44 = vld [vmem:[%s3616_s3 + $0x3f0] sm:$0xff] }
 0x242   :  { %v1722_v48 = vpack.c.bf16 %v870_v44, %v868_v43  ;;  %v901_v43 = vld [vmem:[%s3616_s3 + $0x4e8] sm:$0xff]  ;;  %v903_v44 = vld [vmem:[%s3616_s3 + $0x4f8] sm:$0xff] }
 0x243   :  { %v1752_v46 = vpack.c.bf16 %v903_v44, %v901_v43 }
 0x244   :  { %1695 = vmatpush1.bf16.msra.mxu0 %v1694_v49 }
 0x245   :  { %1697 = vmatprep.subr.bf16.mxu0 %v1696_v50 }
 0x248   :  { %1699 = vmatpush1.bf16.msra.mxu0 %v1698_v55 }
 0x249   :  { %1701 = vmatprep.subr.bf16.mxu0 %v1700_v56  ;;  %v877_v56 = vld [vmem:[%s3616_s3 + $0x428] sm:$0xff] }
 0x24a   :  { %v1728_v5 = vpack.c.bf16 %v879_v57, %v877_v56  ;;  %v911_v56 = vld [vmem:[%s3616_s3 + $0x538] sm:$0xff] }
 0x24c   :  { %1703 = vmatpush1.bf16.msra.mxu0 %v1702_v63 }
 0x24d   :  { %v499_v14 = vpop.f32.mrb[4].mxu1  ;;  %1705 = vmatprep.subr.bf16.mxu0 %v1704_v3 }
 0x24e   :  { %v500_v6 = vadd.f32 %v499_v14, %v327_v9  ;;  %v501_v20 = vpop.f32.mrb[5].mxu1 }
 0x24f   :  { %v502_v23 = vadd.f32 %v501_v20, %v331_v12  ;;  %v880_v20 = vld [vmem:[%s3616_s3 + $0x440] sm:$0xff] }
 0x250   :  { %v682_v24 = vmul.f32 0.70710677, %v500_v6  ;;  %1707 = vmatpush1.bf16.msra.mxu0 %v1706_v13  ;;  %v666_v58 = vmul.f32 0.5, %v500_v6  ;;  %v883_v13 = vld [vmem:[%s3616_s3 + $0x458] sm:$0xff] }
 0x251   :  { %v683_v26 = vmul.f32 0.70710677, %v502_v23  ;;  %v505_v27 = vpop.f32.mrb[6].mxu1  ;;  %1709 = vmatprep.subr.bf16.mxu0 %v1708_v17  ;;  %v667_v54 = vmul.f32 0.5, %v502_v23  ;;  %v887_v23 = vld [vmem:[%s3616_s3 + $0x478] sm:$0xff] }
 0x252   :  { %1883 = verf.f32 %v682_v24  ;;  %v506_v15 = vadd.f32 %v505_v27, %v327_v9  ;;  %v507_v16 = vpop.f32.mrb[7].mxu1  ;;  %v878_v9 = vld [vmem:[%s3616_s3 + $0x430] sm:$0xff]  ;;  %v1734_v24 = vpack.c.bf16 %v882_v21, %v880_v20  ;;  %v923_v20 = vld [vmem:[%s3616_s3 + $0x598] sm:$0xff] }
 0x253   :  { %1885 = verf.f32 %v683_v26  ;;  %v508_v32 = vadd.f32 %v507_v16, %v331_v12  ;;  %v881_v12 = vld [vmem:[%s3616_s3 + $0x448] sm:$0xff]  ;;  %v1730_v18 = vpack.c.bf16 %v878_v9, %v876_v8  ;;  %v884_v26 = vld [vmem:[%s3616_s3 + $0x460] sm:$0xff]  ;;  %v886_v27 = vld [vmem:[%s3616_s3 + $0x470] sm:$0xff]  ;;  %v334_v9 = vsub.s32 4, %v2997_v1 }
 0x254   :  { %v690_v33 = vmul.f32 0.70710677, %v506_v15  ;;  %1711 = vmatpush1.bf16.msra.mxu0 %v1710_v25  ;;  %v674_v14 = vmul.f32 0.5, %v506_v15  ;;  %v1732_v6 = vpack.c.bf16 %v883_v13, %v881_v12  ;;  %v1736_v25 = vpack.c.bf16 %v887_v23, %v885_v22  ;;  %v888_v16 = vld [vmem:[%s3616_s3 + $0x480] sm:$0xff]  ;;  %v914_v8 = vld [vmem:[%s3616_s3 + $0x550] sm:$0xff] }
 0x255   :  { %v691_v35 = vmul.f32 0.70710677, %v508_v32  ;;  %1713 = vmatprep.subr.bf16.mxu0 %v1712_v28  ;;  %v675_v10 = vmul.f32 0.5, %v508_v32  ;;  %v889_v28 = vld [vmem:[%s3616_s3 + $0x488] sm:$0xff]  ;;  %v1738_v7 = vpack.c.bf16 %v886_v27, %v884_v26  ;;  %v895_v32 = vld [vmem:[%s3616_s3 + $0x4b8] sm:$0xff]  ;;  %v338_v12 = vsub.s32 5, %v2997_v1 }
 0x256   :  { %1887 = verf.f32 %v690_v33  ;;  %v1740_v15 = vpack.c.bf16 %v891_v0, %v889_v28  ;;  %v1742_v33 = vpack.c.bf16 %v890_v4, %v888_v16  ;;  %v922_v26 = vld [vmem:[%s3616_s3 + $0x590] sm:$0xff]  ;;  %v925_v0 = vld [vmem:[%s3616_s3 + $0x5a8] sm:$0xff] }
 0x257   :  { %1889 = verf.f32 %v691_v35  ;;  %v892_v35 = vld [vmem:[%s3616_s3 + $0x4a0] sm:$0xff]  ;;  %v339_v21 = vrot.slane %v3003_v30, %v338_v12 }
 0x258   :  { %1715 = vmatpush1.bf16.msra.mxu0 %v1714_v34  ;;  %v1744_v34 = vpack.c.bf16 %v895_v32, %v893_v31 }
 0x259   :  { %1717 = vmatprep.subr.bf16.mxu0 %v1716_v36  ;;  %v894_v36 = vld [vmem:[%s3616_s3 + $0x4b0] sm:$0xff] }
 0x25a   :  { %v1746_v39 = vpack.c.bf16 %v894_v36, %v892_v35  ;;  %v926_v35 = vld [vmem:[%s3616_s3 + $0x5b0] sm:$0xff] }
 0x25c   :  { %v1884_v47 = vpop.eup %1883  ;;  %1719 = vmatpush1.bf16.msra.mxu0 %v1718_v41  ;;  %v896_v41 = vld [vmem:[%s3616_s3 + $0x4c0] sm:$0xff] }
 0x25d   :  { %v1886_v49 = vpop.eup %1885  ;;  %v714_v50 = vadd.f32 1.0, %v1884_v47  ;;  %1721 = vmatprep.subr.bf16.mxu0 %v1720_v42  ;;  %v898_v42 = vld [vmem:[%s3616_s3 + $0x4d0] sm:$0xff]  ;;  %v900_v47 = vld [vmem:[%s3616_s3 + $0x4e0] sm:$0xff] }
 0x25e   :  { %v715_v55 = vadd.f32 1.0, %v1886_v49  ;;  %v1750_v45 = vpack.c.bf16 %v898_v42, %v896_v41  ;;  %v905_v49 = vld [vmem:[%s3616_s3 + $0x508] sm:$0xff] }
 0x25f   :  { %v730_v63 = vmul.f32 %v714_v50, %v666_v58  ;;  %v907_v50 = vld [vmem:[%s3616_s3 + $0x518] sm:$0xff] }
 0x260   :  { %v1888_v59 = vpop.eup %1887  ;;  %1723 = vmatpush1.bf16.msra.mxu0 %v1722_v48  ;;  %v731_v60 = vmul.f32 %v715_v55, %v667_v54  ;;  %v902_v48 = vld [vmem:[%s3616_s3 + $0x4f0] sm:$0xff]  ;;  %v1756_v52 = vpack.c.bf16 %v907_v50, %v905_v49  ;;  %v909_v55 = vld [vmem:[%s3616_s3 + $0x528] sm:$0xff] }
 0x261   :  { %v1890_v62 = vpop.eup %1889  ;;  %v722_v3 = vadd.f32 1.0, %v1888_v59  ;;  %1725 = vmatprep.subr.bf16.mxu0 %v1724_v51  ;;  %v1754_v51 = vpack.c.bf16 %v902_v48, %v900_v47  ;;  %v906_v54 = vld [vmem:[%s3616_s3 + $0x510] sm:$0xff]  ;;  %v1760_v58 = vpack.c.bf16 %v911_v56, %v909_v55  ;;  %v908_v59 = vld [vmem:[%s3616_s3 + $0x520] sm:$0xff]  ;;  %v933_v47 = vld [vmem:[%s3616_s3 + $0x5e8] sm:$0xff] }
 0x262   :  { %v723_v11 = vadd.f32 1.0, %v1890_v62  ;;  %1153 = vmatprep.mubr.f32.mxu0 %v731_v60  ;;  %v1758_v57 = vpack.c.bf16 %v906_v54, %v904_v53  ;;  %v910_v60 = vld [vmem:[%s3616_s3 + $0x530] sm:$0xff]  ;;  %v915_v62 = vld [vmem:[%s3616_s3 + $0x558] sm:$0xff]  ;;  %v937_v53 = vld [vmem:[%s3616_s3 + $0x608] sm:$0xff] }
 0x263   :  { %1154 = vmatmul.mubr.f32.vlgmr.msra.gmra.mrb[0].mxu0 %v730_v63  ;;  %v738_v19 = vmul.f32 %v722_v3, %v674_v14  ;;  %v1762_v63 = vpack.c.bf16 %v910_v60, %v908_v59  ;;  %v935_v48 = vld [vmem:[%s3616_s3 + $0x5f8] sm:$0xff]  ;;  %v936_v60 = vld [vmem:[%s3616_s3 + $0x600] sm:$0xff] }
 0x264   :  { %1727 = vmatpush1.bf16.msra.mxu0 %v1726_v61  ;;  %v739_v17 = vmul.f32 %v723_v11, %v675_v10  ;;  %v913_v61 = vld [vmem:[%s3616_s3 + $0x548] sm:$0xff]  ;;  %v919_v11 = vld [vmem:[%s3616_s3 + $0x578] sm:$0xff]  ;;  %v1784_v50 = vpack.c.bf16 %v935_v48, %v933_v47 }
 0x265   :  { %1729 = vmatprep.subr.bf16.mxu0 %v1728_v5  ;;  %v1764_v3 = vpack.c.bf16 %v915_v62, %v913_v61  ;;  %v912_v5 = vld [vmem:[%s3616_s3 + $0x540] sm:$0xff]  ;;  %v917_v10 = vld [vmem:[%s3616_s3 + $0x568] sm:$0xff]  ;;  %v939_v54 = vld [vmem:[%s3616_s3 + $0x618] sm:$0xff] }
 0x266   :  { %1159 = vmatprep.mubr.f32.mxu0 %v739_v17  ;;  %v1766_v13 = vpack.c.bf16 %v914_v8, %v912_v5  ;;  %v1768_v14 = vpack.c.bf16 %v919_v11, %v917_v10  ;;  %v916_v17 = vld [vmem:[%s3616_s3 + $0x560] sm:$0xff]  ;;  %v1788_v59 = vpack.c.bf16 %v939_v54, %v937_v53  ;;  %v938_v61 = vld [vmem:[%s3616_s3 + $0x610] sm:$0xff]  ;;  %v943_v5 = vld [vmem:[%s3616_s3 + $0x638] sm:$0xff] }
 0x267   :  { %1160 = vmatmul.mubr.f32.gmra.mrb[2].mxu0 %v738_v19  ;;  %v335_v19 = vrot.slane %v3003_v30, %v334_v9  ;;  %v1790_v11 = vpack.c.bf16 %v938_v61, %v936_v60  ;;  %v968_v61 = vld [vmem:[%s3616_s3 + $0x700] sm:$0xff] }
 0x268   :  { %1731 = vmatpush1.bf16.msra.mxu0 %v1730_v18  ;;  %v918_v18 = vld [vmem:[%s3616_s3 + $0x570] sm:$0xff] }
 0x269   :  { %1733 = vmatprep.subr.bf16.mxu0 %v1732_v6  ;;  %v921_v6 = vld [vmem:[%s3616_s3 + $0x588] sm:$0xff]  ;;  %v1770_v22 = vpack.c.bf16 %v918_v18, %v916_v17  ;;  %v940_v18 = vld [vmem:[%s3616_s3 + $0x620] sm:$0xff] }
 0x26c   :  { %1735 = vmatpush1.bf16.msra.mxu0 %v1734_v24  ;;  %v1772_v24 = vpack.c.bf16 %v923_v20, %v921_v6 }
 0x26d   :  { %1737 = vmatprep.subr.bf16.mxu0 %v1736_v25  ;;  %v920_v25 = vld [vmem:[%s3616_s3 + $0x580] sm:$0xff] }
 0x26e   :  { %v1774_v4 = vpack.c.bf16 %v922_v26, %v920_v25 }
 0x270   :  { %1739 = vmatpush1.bf16.msra.mxu0 %v1738_v7  ;;  %v927_v7 = vld [vmem:[%s3616_s3 + $0x5b8] sm:$0xff] }
 0x271   :  { %1741 = vmatprep.subr.bf16.mxu0 %v1740_v15 }
 0x274   :  { %1743 = vmatpush1.bf16.msra.mxu0 %v1742_v33  ;;  %v1776_v33 = vpack.c.bf16 %v927_v7, %v925_v0  ;;  %v946_v0 = vld [vmem:[%s3616_s3 + $0x650] sm:$0xff]  ;;  %v949_v7 = vld [vmem:[%s3616_s3 + $0x668] sm:$0xff] }
 0x275   :  { %1745 = vmatprep.subr.bf16.mxu0 %v1744_v34  ;;  %v924_v34 = vld [vmem:[%s3616_s3 + $0x5a0] sm:$0xff] }
 0x276   :  { %v1778_v42 = vpack.c.bf16 %v926_v35, %v924_v34  ;;  %v955_v34 = vld [vmem:[%s3616_s3 + $0x698] sm:$0xff] }
 0x278   :  { %1747 = vmatpush1.bf16.msra.mxu0 %v1746_v39  ;;  %v931_v39 = vld [vmem:[%s3616_s3 + $0x5d8] sm:$0xff] }
 0x279   :  { %1749 = vmatprep.subr.bf16.mxu0 %v1748_v40  ;;  %v1780_v44 = vpack.c.bf16 %v931_v39, %v929_v38  ;;  %v954_v38 = vld [vmem:[%s3616_s3 + $0x690] sm:$0xff]  ;;  %v957_v39 = vld [vmem:[%s3616_s3 + $0x6a8] sm:$0xff] }
 0x27c   :  { %1751 = vmatpush1.bf16.msra.mxu0 %v1750_v45  ;;  %v928_v45 = vld [vmem:[%s3616_s3 + $0x5c0] sm:$0xff] }
 0x27d   :  { %1753 = vmatprep.subr.bf16.mxu0 %v1752_v46  ;;  %v930_v46 = vld [vmem:[%s3616_s3 + $0x5d0] sm:$0xff] }
 0x27e   :  { %v1782_v49 = vpack.c.bf16 %v930_v46, %v928_v45  ;;  %v961_v45 = vld [vmem:[%s3616_s3 + $0x6c8] sm:$0xff]  ;;  %v963_v46 = vld [vmem:[%s3616_s3 + $0x6d8] sm:$0xff] }
 0x27f   :  { %v1812_v48 = vpack.c.bf16 %v963_v46, %v961_v45  ;;  %v993_v45 = vld [vmem:[%s3616_s3 + $0x7c8] sm:$0xff]  ;;  %v995_v46 = vld [vmem:[%s3616_s3 + $0x7d8] sm:$0xff] }
 0x280   :  { %1755 = vmatpush1.bf16.msra.mxu0 %v1754_v51  ;;  %v932_v51 = vld [vmem:[%s3616_s3 + $0x5e0] sm:$0xff] }
 0x281   :  { %1757 = vmatprep.subr.bf16.mxu0 %v1756_v52  ;;  %v934_v52 = vld [vmem:[%s3616_s3 + $0x5f0] sm:$0xff] }
 0x282   :  { %v1786_v56 = vpack.c.bf16 %v934_v52, %v932_v51  ;;  %v965_v51 = vld [vmem:[%s3616_s3 + $0x6e8] sm:$0xff]  ;;  %v967_v52 = vld [vmem:[%s3616_s3 + $0x6f8] sm:$0xff] }
 0x283   :  { %v1816_v54 = vpack.c.bf16 %v967_v52, %v965_v51  ;;  %v1844_v51 = vpack.c.bf16 %v995_v46, %v993_v45  ;;  %v992_v52 = vld [vmem:[%s3616_s3 + $0x7c0] sm:$0xff] }
 0x284   :  { %1759 = vmatpush1.bf16.msra.mxu0 %v1758_v57 }
 0x285   :  { %1761 = vmatprep.subr.bf16.mxu0 %v1760_v58 }
 0x288   :  { %1763 = vmatpush1.bf16.msra.mxu0 %v1762_v63 }
 0x289   :  { %1765 = vmatprep.subr.bf16.mxu0 %v1764_v3  ;;  %v941_v3 = vld [vmem:[%s3616_s3 + $0x628] sm:$0xff] }
 0x28a   :  { %v1792_v17 = vpack.c.bf16 %v943_v5, %v941_v3  ;;  %v975_v3 = vld [vmem:[%s3616_s3 + $0x738] sm:$0xff] }
 0x28c   :  { %1767 = vmatpush1.bf16.msra.mxu0 %v1766_v13 }
 0x28d   :  { %v576_v23 = vpop.f32.mrb[8].mxu1  ;;  %1769 = vmatprep.subr.bf16.mxu0 %v1768_v14 }
 0x28e   :  { %v577_v27 = vadd.f32 %v576_v23, %v335_v19  ;;  %v578_v28 = vpop.f32.mrb[9].mxu1 }
 0x28f   :  { %v579_v15 = vadd.f32 %v578_v28, %v339_v21  ;;  %v944_v28 = vld [vmem:[%s3616_s3 + $0x640] sm:$0xff] }
 0x290   :  { %v684_v16 = vmul.f32 0.70710677, %v577_v27  ;;  %1771 = vmatpush1.bf16.msra.mxu0 %v1770_v22  ;;  %v668_v8 = vmul.f32 0.5, %v577_v27  ;;  %v947_v22 = vld [vmem:[%s3616_s3 + $0x658] sm:$0xff] }
 0x291   :  { %v685_v31 = vmul.f32 0.70710677, %v579_v15  ;;  %v582_v32 = vpop.f32.mrb[10].mxu1  ;;  %1773 = vmatprep.subr.bf16.mxu0 %v1772_v24  ;;  %v669_v62 = vmul.f32 0.5, %v579_v15  ;;  %v951_v15 = vld [vmem:[%s3616_s3 + $0x678] sm:$0xff] }
 0x292   :  { %1891 = verf.f32 %v684_v16  ;;  %v583_v36 = vadd.f32 %v582_v32, %v335_v19  ;;  %v584_v37 = vpop.f32.mrb[11].mxu1  ;;  %v942_v19 = vld [vmem:[%s3616_s3 + $0x630] sm:$0xff]  ;;  %v1798_v16 = vpack.c.bf16 %v946_v0, %v944_v28  ;;  %v987_v28 = vld [vmem:[%s3616_s3 + $0x798] sm:$0xff] }
 0x293   :  { %1893 = verf.f32 %v685_v31  ;;  %v585_v40 = vadd.f32 %v584_v37, %v339_v21  ;;  %v945_v21 = vld [vmem:[%s3616_s3 + $0x648] sm:$0xff]  ;;  %v1794_v25 = vpack.c.bf16 %v942_v19, %v940_v18  ;;  %v948_v31 = vld [vmem:[%s3616_s3 + $0x660] sm:$0xff]  ;;  %v950_v32 = vld [vmem:[%s3616_s3 + $0x670] sm:$0xff]  ;;  %v342_v19 = vsub.s32 6, %v2997_v1 }
 0x294   :  { %v692_v41 = vmul.f32 0.70710677, %v583_v36  ;;  %1775 = vmatpush1.bf16.msra.mxu0 %v1774_v4  ;;  %v676_v23 = vmul.f32 0.5, %v583_v36  ;;  %v1796_v27 = vpack.c.bf16 %v947_v22, %v945_v21  ;;  %v1800_v4 = vpack.c.bf16 %v951_v15, %v949_v7  ;;  %v952_v37 = vld [vmem:[%s3616_s3 + $0x680] sm:$0xff]  ;;  %v978_v18 = vld [vmem:[%s3616_s3 + $0x750] sm:$0xff] }
 0x295   :  { %v693_v43 = vmul.f32 0.70710677, %v585_v40  ;;  %1777 = vmatprep.subr.bf16.mxu0 %v1776_v33  ;;  %v677_v6 = vmul.f32 0.5, %v585_v40  ;;  %v953_v33 = vld [vmem:[%s3616_s3 + $0x688] sm:$0xff]  ;;  %v1802_v35 = vpack.c.bf16 %v950_v32, %v948_v31  ;;  %v959_v40 = vld [vmem:[%s3616_s3 + $0x6b8] sm:$0xff]  ;;  %v346_v21 = vsub.s32 7, %v2997_v1 }
 0x296   :  { %1895 = verf.f32 %v692_v41  ;;  %v1804_v36 = vpack.c.bf16 %v955_v34, %v953_v33  ;;  %v1806_v41 = vpack.c.bf16 %v954_v38, %v952_v37  ;;  %v986_v31 = vld [vmem:[%s3616_s3 + $0x790] sm:$0xff]  ;;  %v989_v34 = vld [vmem:[%s3616_s3 + $0x7a8] sm:$0xff] }
 0x297   :  { %1897 = verf.f32 %v693_v43  ;;  %v956_v43 = vld [vmem:[%s3616_s3 + $0x6a0] sm:$0xff]  ;;  %v347_v0 = vrot.slane %v3003_v30, %v346_v21 }
 0x298   :  { %1779 = vmatpush1.bf16.msra.mxu0 %v1778_v42  ;;  %v1808_v42 = vpack.c.bf16 %v959_v40, %v957_v39 }
 0x299   :  { %1781 = vmatprep.subr.bf16.mxu0 %v1780_v44  ;;  %v958_v44 = vld [vmem:[%s3616_s3 + $0x6b0] sm:$0xff] }
 0x29a   :  { %v1810_v47 = vpack.c.bf16 %v958_v44, %v956_v43 }
 0x29c   :  { %v1892_v55 = vpop.eup %1891  ;;  %1783 = vmatpush1.bf16.msra.mxu0 %v1782_v49  ;;  %v960_v49 = vld [vmem:[%s3616_s3 + $0x6c0] sm:$0xff] }
 0x29d   :  { %v1894_v57 = vpop.eup %1893  ;;  %v716_v58 = vadd.f32 1.0, %v1892_v55  ;;  %1785 = vmatprep.subr.bf16.mxu0 %v1784_v50  ;;  %v962_v50 = vld [vmem:[%s3616_s3 + $0x6d0] sm:$0xff]  ;;  %v964_v55 = vld [vmem:[%s3616_s3 + $0x6e0] sm:$0xff] }
 0x29e   :  { %v717_v63 = vadd.f32 1.0, %v1894_v57  ;;  %v1814_v53 = vpack.c.bf16 %v962_v50, %v960_v49  ;;  %v969_v57 = vld [vmem:[%s3616_s3 + $0x708] sm:$0xff] }
 0x29f   :  { %v732_v13 = vmul.f32 %v716_v58, %v668_v8  ;;  %v971_v58 = vld [vmem:[%s3616_s3 + $0x718] sm:$0xff] }
 0x2a0   :  { %v1896_v9 = vpop.eup %1895  ;;  %1787 = vmatpush1.bf16.msra.mxu0 %v1786_v56  ;;  %v733_v10 = vmul.f32 %v717_v63, %v669_v62  ;;  %v966_v56 = vld [vmem:[%s3616_s3 + $0x6f0] sm:$0xff]  ;;  %v1820_v60 = vpack.c.bf16 %v971_v58, %v969_v57  ;;  %v973_v63 = vld [vmem:[%s3616_s3 + $0x728] sm:$0xff]  ;;  %v996_v58 = vld [vmem:[%s3616_s3 + $0x7e0] sm:$0xff] }
 0x2a1   :  { %v1898_v12 = vpop.eup %1897  ;;  %v724_v14 = vadd.f32 1.0, %v1896_v9  ;;  %1789 = vmatprep.subr.bf16.mxu0 %v1788_v59  ;;  %v1818_v59 = vpack.c.bf16 %v966_v56, %v964_v55  ;;  %v970_v62 = vld [vmem:[%s3616_s3 + $0x710] sm:$0xff]  ;;  %v1824_v8 = vpack.c.bf16 %v975_v3, %v973_v63  ;;  %v972_v9 = vld [vmem:[%s3616_s3 + $0x720] sm:$0xff]  ;;  %v999_v55 = vld [vmem:[%s3616_s3 + $0x7f8] sm:$0xff] }
 0x2a2   :  { %v725_v20 = vadd.f32 1.0, %v1898_v12  ;;  %1230 = vmatprep.mubr.f32.mxu0 %v733_v10  ;;  %v1822_v5 = vpack.c.bf16 %v970_v62, %v968_v61  ;;  %v974_v10 = vld [vmem:[%s3616_s3 + $0x730] sm:$0xff]  ;;  %v979_v12 = vld [vmem:[%s3616_s3 + $0x758] sm:$0xff] }
 0x2a3   :  { %1231 = vmatmul.mubr.f32.vlgmr.msra.gmra.mrb[0].mxu0 %v732_v13  ;;  %v740_v26 = vmul.f32 %v724_v14, %v676_v23  ;;  %v1826_v13 = vpack.c.bf16 %v974_v10, %v972_v9 }
 0x2a4   :  { %1791 = vmatpush1.bf16.msra.mxu0 %v1790_v11  ;;  %v741_v24 = vmul.f32 %v725_v20, %v677_v6  ;;  %v977_v11 = vld [vmem:[%s3616_s3 + $0x748] sm:$0xff]  ;;  %v983_v20 = vld [vmem:[%s3616_s3 + $0x778] sm:$0xff] }
 0x2a5   :  { %1793 = vmatprep.subr.bf16.mxu0 %v1792_v17  ;;  %v1828_v14 = vpack.c.bf16 %v979_v12, %v977_v11  ;;  %v976_v17 = vld [vmem:[%s3616_s3 + $0x740] sm:$0xff]  ;;  %v981_v6 = vld [vmem:[%s3616_s3 + $0x768] sm:$0xff] }
 0x2a6   :  { %1236 = vmatprep.mubr.f32.mxu0 %v741_v24  ;;  %v1830_v22 = vpack.c.bf16 %v978_v18, %v976_v17  ;;  %v1832_v23 = vpack.c.bf16 %v983_v20, %v981_v6  ;;  %v980_v24 = vld [vmem:[%s3616_s3 + $0x760] sm:$0xff] }
 0x2a7   :  { %1237 = vmatmul.mubr.f32.gmra.mrb[2].mxu0 %v740_v26  ;;  %v343_v26 = vrot.slane %v3003_v30, %v342_v19  ;;  %v991_v30 = vld [vmem:[%s3616_s3 + $0x7b8] sm:$0xff]  ;;  %v1000_v20 = vld [vmem:[%s3617_s4] sm:$0x3]  ;;  %s1907_s4 = scalar_lea.vmem %s1330_s12, 512 }
 0x2a8   :  { %1795 = vmatpush1.bf16.msra.mxu0 %v1794_v25  ;;  %v982_v25 = vld [vmem:[%s3616_s3 + $0x770] sm:$0xff]  ;;  %v1840_v40 = vpack.c.bf16 %v991_v30, %v989_v34  ;;  %v1005_v21 = vrot.slane %v1000_v20, %v318_v29  ;;  %p1908_p0 = scmp.ne.s32.totalorder %s1330_s12, %s1907_s4  ;;  %p1913_p2 = scmp.lt.s32.totalorder %s1907_s4, %s1907_s4 }
 0x2a9   :  { %1797 = vmatprep.subr.bf16.mxu0 %v1796_v27  ;;  %v985_v27 = vld [vmem:[%s3616_s3 + $0x788] sm:$0xff]  ;;  %v1834_v7 = vpack.c.bf16 %v982_v25, %v980_v24 }
 0x2aa   :  { %p1914_p3 = por %p1913_p2, %p1912_p1 }
 0x2ac   :  { %1799 = vmatpush1.bf16.msra.mxu0 %v1798_v16  ;;  %v1836_v16 = vpack.c.bf16 %v987_v28, %v985_v27  ;;  %p1915_p4 = pnand %p1914_p3, %p1908_p0 }
 0x2ad   :  { %1801 = vmatprep.subr.bf16.mxu0 %v1800_v4  ;;  %v984_v4 = vld [vmem:[%s3616_s3 + $0x780] sm:$0xff] }
 0x2ae   :  { %v1838_v37 = vpack.c.bf16 %v986_v31, %v984_v4 }
 0x2b0   :  { %1803 = vmatpush1.bf16.msra.mxu0 %v1802_v35 }
 0x2b1   :  { %1805 = vmatprep.subr.bf16.mxu0 %v1804_v36 }
 0x2b4   :  { %1807 = vmatpush1.bf16.msra.mxu0 %v1806_v41  ;;  %v988_v41 = vld [vmem:[%s3616_s3 + $0x7a0] sm:$0xff] }
 0x2b5   :  { %1809 = vmatprep.subr.bf16.mxu0 %v1808_v42  ;;  %v990_v42 = vld [vmem:[%s3616_s3 + $0x7b0] sm:$0xff] }
 0x2b6   :  { %v1842_v49 = vpack.c.bf16 %v990_v42, %v988_v41 }
 0x2b8   :  { %1811 = vmatpush1.bf16.msra.mxu0 %v1810_v47 }
 0x2b9   :  { %1813 = vmatprep.subr.bf16.mxu0 %v1812_v48 }
 0x2bc   :  { %1815 = vmatpush1.bf16.msra.mxu0 %v1814_v53  ;;  %v994_v53 = vld [vmem:[%s3616_s3 + $0x7d0] sm:$0xff] }
 0x2bd   :  { %1817 = vmatprep.subr.bf16.mxu0 %v1816_v54  ;;  %v997_v54 = vld [vmem:[%s3616_s3 + $0x7e8] sm:$0xff]  ;;  %v1846_v56 = vpack.c.bf16 %v994_v53, %v992_v52 }
 0x2be   :  { %v1848_v57 = vpack.c.bf16 %v999_v55, %v997_v54 }
 0x2c0   :  { %1819 = vmatpush1.bf16.msra.mxu0 %v1818_v59  ;;  %v998_v59 = vld [vmem:[%s3616_s3 + $0x7f0] sm:$0xff] }
 0x2c1   :  { %1821 = vmatprep.subr.bf16.mxu0 %v1820_v60  ;;  %v1850_v61 = vpack.c.bf16 %v998_v59, %v996_v58 }
 0x2c4   :  { %1823 = vmatpush1.bf16.msra.mxu0 %v1822_v5 }
 0x2c5   :  { %1825 = vmatprep.subr.bf16.mxu0 %v1824_v8 }
 0x2c8   :  { %1827 = vmatpush1.bf16.msra.mxu0 %v1826_v13 }
 0x2c9   :  { %1829 = vmatprep.subr.bf16.mxu0 %v1828_v14 }
 0x2cc   :  { %1831 = vmatpush1.bf16.msra.mxu0 %v1830_v22  ;;  %v1009_v22 = vrot.slane %v1000_v20, %v322_v2 }
 0x2cd   :  { %v653_v15 = vpop.f32.mrb[12].mxu1  ;;  %1833 = vmatprep.subr.bf16.mxu0 %v1832_v23 }
 0x2ce   :  { %v654_v32 = vadd.f32 %v653_v15, %v343_v26  ;;  %v655_v33 = vpop.f32.mrb[13].mxu1 }
 0x2cf   :  { %v656_v35 = vadd.f32 %v655_v33, %v347_v0 }
 0x2d0   :  { %v686_v36 = vmul.f32 0.70710677, %v654_v32  ;;  %1835 = vmatpush1.bf16.msra.mxu0 %v1834_v7  ;;  %v670_v8 = vmul.f32 0.5, %v654_v32 }
 0x2d1   :  { %v687_v38 = vmul.f32 0.70710677, %v656_v35  ;;  %v659_v39 = vpop.f32.mrb[14].mxu1  ;;  %1837 = vmatprep.subr.bf16.mxu0 %v1836_v16  ;;  %v671_v3 = vmul.f32 0.5, %v656_v35 }
 0x2d2   :  { %1899 = verf.f32 %v686_v36  ;;  %v660_v43 = vadd.f32 %v659_v39, %v343_v26  ;;  %v661_v44 = vpop.f32.mrb[15].mxu1 }
 0x2d3   :  { %1901 = verf.f32 %v687_v38  ;;  %v662_v47 = vadd.f32 %v661_v44, %v347_v0 }
 0x2d4   :  { %v694_v48 = vmul.f32 0.70710677, %v660_v43  ;;  %1839 = vmatpush1.bf16.msra.mxu0 %v1838_v37  ;;  %v678_v18 = vmul.f32 0.5, %v660_v43 }
 0x2d5   :  { %v695_v50 = vmul.f32 0.70710677, %v662_v47  ;;  %1841 = vmatprep.subr.bf16.mxu0 %v1840_v40  ;;  %v679_v14 = vmul.f32 0.5, %v662_v47 }
 0x2d6   :  { %1903 = verf.f32 %v694_v48 }
 0x2d7   :  { %1905 = verf.f32 %v695_v50 }
 0x2d8   :  { %1843 = vmatpush1.bf16.msra.mxu0 %v1842_v49 }
 0x2d9   :  { %1845 = vmatprep.subr.bf16.mxu0 %v1844_v51 }
 0x2dc   :  { %v1900_v60 = vpop.eup %1899  ;;  %1847 = vmatpush1.bf16.msra.mxu0 %v1846_v56 }
 0x2dd   :  { %v1902_v62 = vpop.eup %1901  ;;  %v718_v63 = vadd.f32 1.0, %v1900_v60  ;;  %1849 = vmatprep.subr.bf16.mxu0 %v1848_v57 }
 0x2de   :  { %v719_v5 = vadd.f32 1.0, %v1902_v62 }
 0x2df   :  { %v734_v12 = vmul.f32 %v718_v63, %v670_v8 }
 0x2e0   :  { %v1904_v9 = vpop.eup %1903  ;;  %1851 = vmatpush1.bf16.msra.mxu0 %v1850_v61  ;;  %v735_v10 = vmul.f32 %v719_v5, %v671_v3 }
 0x2e1   :  { %v1906_v11 = vpop.eup %1905  ;;  %v726_v13 = vadd.f32 1.0, %v1904_v9 }
 0x2e2   :  { %v727_v17 = vadd.f32 1.0, %v1906_v11  ;;  %1307 = vmatprep.mubr.f32.mxu0 %v735_v10 }
 0x2e3   :  { %1308 = vmatmul.mubr.f32.vlgmr.msra.gmra.mrb[0].mxu0 %v734_v12  ;;  %v742_v6 = vmul.f32 %v726_v13, %v678_v18 }
 0x2e4   :  { %v743_v19 = vmul.f32 %v727_v17, %v679_v14 }
 0x2e6   :  { %1313 = vmatprep.mubr.f32.mxu0 %v743_v19 }
 0x2e7   :  { %1314 = vmatmul.mubr.f32.gmra.mrb[2].mxu0 %v742_v6 }
 0x3b6   :  { %v1309_v23 = vpop.f32.mrb[0].mxu0 }
 0x3b7   :  { %v1852_v24 = vadd.f32 %v1309_v23, %v1005_v21  ;;  %v1311_v25 = vpop.f32.mrb[1].mxu0 }
 0x3b8   :  { %v1853_v26 = vadd.f32 %v1311_v25, %v1009_v22 }
 0x3b9   :  { %1320 = vst [vmem:[#allocation2] sm:$0xff] %v1852_v24 }
 0x3ba   :  { %1321 = vst [vmem:[#allocation2 + $0x8] sm:$0xff] %v1853_v26  ;;  %v1315_v27 = vpop.f32.mrb[2].mxu0 }
 0x3bb   :  { %v1854_v28 = vadd.f32 %v1315_v27, %v1005_v21  ;;  %v1317_v0 = vpop.f32.mrb[3].mxu0 }
 0x3bc   :  { %v1855_v7 = vadd.f32 %v1317_v0, %v1009_v22 }
 0x3bd   :  { %1322 = vst [vmem:[#allocation2 + $0x10] sm:$0xff] %v1854_v28 }
 0x3be   :  { %1323 = vst [vmem:[#allocation2 + $0x18] sm:$0xff] %v1855_v7 }
 0x3bf   :  { %1918 = shalt.err (!%p1915_p4)
}
 0x3c0   :  { %s1919_s15 = scalar_lea.hbm %s3618_s5, 512 }
 0x3c1   :  { %p1920_p5 = scmp.ne.s32.totalorder %s3618_s5, %s1919_s15  ;;  %p1923_p6 = scmp.lt.u32.totalorder %s1919_s15, %s3618_s5 }
 0x3c3   :  { %p1925_p7 = pnand %p1923_p6, %p1920_p5 }
 0x3c5   :  { %1928 = shalt.err (!%p1925_p7)
}
 0x3c6   :  { %s1932_s20 = smov 256   ;;  %s1933_s21 = smov 16  }
 0x3c7   :  { %1335 = dma.vmem_to_hbm [thread:$0]  %s1330_s12, 512, %s3618_s5, [#allocation3], %s1932_s20, %s1932_s20, %s1933_s21  }
 0x3c8   :  { %1929 = dma.done.wait [#allocation3], 512  }
 0x3c9   :  { %1930 = vsyncadd [#allocation3], 4294966784 }
 0x3ca   :  { %1339 = vsyncpa [#allocation3], 1 }

// kernel: _adapter_impl.1
= control target key start
LH: loop header
LB: loop body
LE: loop exit
PB: predicated region body
PF: predicated region fallthrough
CT: control target
= control target key end

     0   :  { %s3613_s0 = inlined_call_operand.vmem [shape: f32[16,256], index: 0, kind: input, shape index: {}]   ;;  %s3614_s1 = inlined_call_operand.vmem [shape: f32[256,1024], index: 1, kind: input, shape index: {}]   ;;  %s3615_s2 = inlined_call_operand.vmem [shape: f32[1,1024], index: 2, kind: input, shape index: {}]   ;;  %s3616_s3 = inlined_call_operand.vmem [shape: f32[1024,256], index: 3, kind: input, shape index: {}]   ;;  %s3617_s4 = inlined_call_operand.vmem [shape: f32[1,256], index: 4, kind: input, shape index: {}]   ;;  %s3618_s5 = inlined_call_operand.hbm [shape: f32[16,256], index: 5, kind: output, shape index: {}]  }
   0x1   :  { %v1967_v0 = vld [vmem:[%s3613_s0] sm:$0xff]  ;;  %v1972_v1 = vld [vmem:[%s3613_s0 + $0x8] sm:$0xff]  ;;  %v1977_v2 = vld [vmem:[%s3613_s0 + $0x10] sm:$0xff] }
   0x2   :  { %v25_v3 = vadd.f32 %v1972_v1, %v1967_v0  ;;  %v1984_v4 = vld [vmem:[%s3613_s0 + $0x18] sm:$0xff] }
   0x3   :  { %10 = vsyncpa [#allocation3], 0  ;;  %v28_v5 = vadd.f32 %v1984_v4, %v1977_v2  ;;  %v59_v6 = vld [vmem:[%s3614_s1 + $0x8] sm:$0xff]  ;;  %v58_v8 = vld [vmem:[%s3614_s1] sm:$0xff]  ;;  %s1931_s11 = smov [#allocation2]  }
   0x4   :  { %26 = vadd.xlane.f32.xlu0 %v25_v3  ;;  %v67_v7 = vld [vmem:[%s3614_s1 + $0x48] sm:$0xff]  ;;  %v66_v10 = vld [vmem:[%s3614_s1 + $0x40] sm:$0xff]  ;;  %s1329_s12 = sshll.u32 %s1931_s11, 4  ;;  %s1330_s12 = int_to_ptr.vmem [resolvable:$true] %s1329_s12 }
   0x5   :  { %v1340_v9 = vpack.c.bf16 %v67_v7, %v59_v6  ;;  %v75_v11 = vld [vmem:[%s3614_s1 + $0x88] sm:$0xff]  ;;  %v1342_v13 = vpack.c.bf16 %v66_v10, %v58_v8  ;;  %v74_v15 = vld [vmem:[%s3614_s1 + $0x80] sm:$0xff]  ;;  %p1912_p1 = scmp.lt.s32.totalorder %s1330_s12, %s1330_s12 }
   0x6   :  { %v83_v12 = vld [vmem:[%s3614_s1 + $0xc8] sm:$0xff]  ;;  %v82_v16 = vld [vmem:[%s3614_s1 + $0xc0] sm:$0xff] }
   0x7   :  { %v1344_v14 = vpack.c.bf16 %v83_v12, %v75_v11  ;;  %v91_v17 = vld [vmem:[%s3614_s1 + $0x108] sm:$0xff]  ;;  %1341 = vmatprep.subr.bf16.mxu1 %v1340_v9  ;;  %v1346_v19 = vpack.c.bf16 %v82_v16, %v74_v15  ;;  %v90_v21 = vld [vmem:[%s3614_s1 + $0x100] sm:$0xff] }
   0x8   :  { %29 = vadd.xlane.f32.xlu0 %v28_v5  ;;  %v99_v18 = vld [vmem:[%s3614_s1 + $0x148] sm:$0xff]  ;;  %1343 = vmatpush1.bf16.msra.mxu1 %v1342_v13  ;;  %v98_v22 = vld [vmem:[%s3614_s1 + $0x140] sm:$0xff] }
   0x9   :  { %1345 = vmatprep.subr.bf16.mxu1 %v1344_v14  ;;  %v1348_v20 = vpack.c.bf16 %v99_v18, %v91_v17  ;;  %v107_v23 = vld [vmem:[%s3614_s1 + $0x188] sm:$0xff]  ;;  %v1350_v25 = vpack.c.bf16 %v98_v22, %v90_v21  ;;  %v106_v27 = vld [vmem:[%s3614_s1 + $0x180] sm:$0xff] }
   0xa   :  { %v115_v24 = vld [vmem:[%s3614_s1 + $0x1c8] sm:$0xff]  ;;  %v114_v28 = vld [vmem:[%s3614_s1 + $0x1c0] sm:$0xff] }
   0xb   :  { %v1352_v26 = vpack.c.bf16 %v115_v24, %v107_v23  ;;  %v123_v29 = vld [vmem:[%s3614_s1 + $0x208] sm:$0xff]  ;;  %v1354_v31 = vpack.c.bf16 %v114_v28, %v106_v27  ;;  %v122_v33 = vld [vmem:[%s3614_s1 + $0x200] sm:$0xff] }
   0xc   :  { %1347 = vmatpush1.bf16.msra.mxu1 %v1346_v19  ;;  %v131_v30 = vld [vmem:[%s3614_s1 + $0x248] sm:$0xff]  ;;  %v130_v34 = vld [vmem:[%s3614_s1 + $0x240] sm:$0xff] }
   0xd   :  { %1349 = vmatprep.subr.bf16.mxu1 %v1348_v20  ;;  %v1356_v32 = vpack.c.bf16 %v131_v30, %v123_v29  ;;  %v139_v35 = vld [vmem:[%s3614_s1 + $0x288] sm:$0xff]  ;;  %v1358_v37 = vpack.c.bf16 %v130_v34, %v122_v33  ;;  %v138_v39 = vld [vmem:[%s3614_s1 + $0x280] sm:$0xff] }
   0xe   :  { %v147_v36 = vld [vmem:[%s3614_s1 + $0x2c8] sm:$0xff]  ;;  %v146_v40 = vld [vmem:[%s3614_s1 + $0x2c0] sm:$0xff] }
   0xf   :  { %v1360_v38 = vpack.c.bf16 %v147_v36, %v139_v35  ;;  %v155_v41 = vld [vmem:[%s3614_s1 + $0x308] sm:$0xff]  ;;  %v1362_v43 = vpack.c.bf16 %v146_v40, %v138_v39  ;;  %v154_v45 = vld [vmem:[%s3614_s1 + $0x300] sm:$0xff] }
  0x10   :  { %1351 = vmatpush1.bf16.msra.mxu1 %v1350_v25  ;;  %v163_v42 = vld [vmem:[%s3614_s1 + $0x348] sm:$0xff]  ;;  %v162_v46 = vld [vmem:[%s3614_s1 + $0x340] sm:$0xff] }
  0x11   :  { %1353 = vmatprep.subr.bf16.mxu1 %v1352_v26  ;;  %v1364_v44 = vpack.c.bf16 %v163_v42, %v155_v41  ;;  %v171_v47 = vld [vmem:[%s3614_s1 + $0x388] sm:$0xff]  ;;  %v1366_v49 = vpack.c.bf16 %v162_v46, %v154_v45  ;;  %v170_v51 = vld [vmem:[%s3614_s1 + $0x380] sm:$0xff] }
  0x12   :  { %v179_v48 = vld [vmem:[%s3614_s1 + $0x3c8] sm:$0xff]  ;;  %v178_v52 = vld [vmem:[%s3614_s1 + $0x3c0] sm:$0xff] }
  0x13   :  { %v1368_v50 = vpack.c.bf16 %v179_v48, %v171_v47  ;;  %v187_v53 = vld [vmem:[%s3614_s1 + $0x408] sm:$0xff]  ;;  %v1370_v55 = vpack.c.bf16 %v178_v52, %v170_v51  ;;  %v186_v57 = vld [vmem:[%s3614_s1 + $0x400] sm:$0xff]  ;;  %v61_v52 = vld [vmem:[%s3614_s1 + $0x18] sm:$0xff] }
  0x14   :  { %1355 = vmatpush1.bf16.msra.mxu1 %v1354_v31  ;;  %v195_v54 = vld [vmem:[%s3614_s1 + $0x448] sm:$0xff]  ;;  %v194_v58 = vld [vmem:[%s3614_s1 + $0x440] sm:$0xff] }
  0x15   :  { %1357 = vmatprep.subr.bf16.mxu1 %v1356_v32  ;;  %v1372_v56 = vpack.c.bf16 %v195_v54, %v187_v53  ;;  %v203_v59 = vld [vmem:[%s3614_s1 + $0x488] sm:$0xff]  ;;  %v1374_v61 = vpack.c.bf16 %v194_v58, %v186_v57  ;;  %v202_v63 = vld [vmem:[%s3614_s1 + $0x480] sm:$0xff]  ;;  %v69_v53 = vld [vmem:[%s3614_s1 + $0x58] sm:$0xff] }
  0x16   :  { %v211_v60 = vld [vmem:[%s3614_s1 + $0x4c8] sm:$0xff]  ;;  %v210_v3 = vld [vmem:[%s3614_s1 + $0x4c0] sm:$0xff]  ;;  %v1404_v54 = vpack.c.bf16 %v69_v53, %v61_v52  ;;  %v196_v52 = vld [vmem:[%s3614_s1 + $0x450] sm:$0xff] }
  0x17   :  { %v1376_v62 = vpack.c.bf16 %v211_v60, %v203_v59  ;;  %v219_v5 = vld [vmem:[%s3614_s1 + $0x508] sm:$0xff]  ;;  %v1378_v7 = vpack.c.bf16 %v210_v3, %v202_v63  ;;  %v218_v9 = vld [vmem:[%s3614_s1 + $0x500] sm:$0xff]  ;;  %v77_v63 = vld [vmem:[%s3614_s1 + $0x98] sm:$0xff] }
  0x18   :  { %1359 = vmatpush1.bf16.msra.mxu1 %v1358_v37  ;;  %v227_v6 = vld [vmem:[%s3614_s1 + $0x548] sm:$0xff]  ;;  %v226_v10 = vld [vmem:[%s3614_s1 + $0x540] sm:$0xff]  ;;  %v85_v3 = vld [vmem:[%s3614_s1 + $0xd8] sm:$0xff] }
  0x19   :  { %1361 = vmatprep.subr.bf16.mxu1 %v1360_v38  ;;  %v1380_v8 = vpack.c.bf16 %v227_v6, %v219_v5  ;;  %v235_v11 = vld [vmem:[%s3614_s1 + $0x588] sm:$0xff]  ;;  %v1382_v13 = vpack.c.bf16 %v226_v10, %v218_v9  ;;  %v234_v15 = vld [vmem:[%s3614_s1 + $0x580] sm:$0xff]  ;;  %v1408_v9 = vpack.c.bf16 %v85_v3, %v77_v63  ;;  %v76_v10 = vld [vmem:[%s3614_s1 + $0x90] sm:$0xff] }
  0x1a   :  { %v243_v12 = vld [vmem:[%s3614_s1 + $0x5c8] sm:$0xff]  ;;  %v242_v16 = vld [vmem:[%s3614_s1 + $0x5c0] sm:$0xff]  ;;  %v205_v53 = vld [vmem:[%s3614_s1 + $0x498] sm:$0xff] }
  0x1b   :  { %v1384_v14 = vpack.c.bf16 %v243_v12, %v235_v11  ;;  %v1386_v17 = vpack.c.bf16 %v242_v16, %v234_v15  ;;  %v251_v30 = vld [vmem:[%s3614_s1 + $0x608] sm:$0xff]  ;;  %v250_v31 = vld [vmem:[%s3614_s1 + $0x600] sm:$0xff]  ;;  %v84_v11 = vld [vmem:[%s3614_s1 + $0xd0] sm:$0xff] }
  0x1c   :  { %1363 = vmatpush1.bf16.msra.mxu1 %v1362_v43  ;;  %v258_v32 = vld [vmem:[%s3614_s1 + $0x640] sm:$0xff]  ;;  %v267_v34 = vld [vmem:[%s3614_s1 + $0x688] sm:$0xff]  ;;  %v93_v12 = vld [vmem:[%s3614_s1 + $0x118] sm:$0xff] }
  0x1d   :  { %1365 = vmatprep.subr.bf16.mxu1 %v1364_v44  ;;  %v1390_v33 = vpack.c.bf16 %v258_v32, %v250_v31  ;;  %v275_v35 = vld [vmem:[%s3614_s1 + $0x6c8] sm:$0xff]  ;;  %v266_v37 = vld [vmem:[%s3614_s1 + $0x680] sm:$0xff]  ;;  %v220_v63 = vld [vmem:[%s3614_s1 + $0x510] sm:$0xff] }
  0x1e   :  { %v1392_v36 = vpack.c.bf16 %v275_v35, %v267_v34  ;;  %v274_v38 = vld [vmem:[%s3614_s1 + $0x6c0] sm:$0xff]  ;;  %v283_v40 = vld [vmem:[%s3614_s1 + $0x708] sm:$0xff]  ;;  %v148_v34 = vld [vmem:[%s3614_s1 + $0x2d0] sm:$0xff] }
  0x1f   :  { %v1394_v39 = vpack.c.bf16 %v274_v38, %v266_v37  ;;  %v291_v41 = vld [vmem:[%s3614_s1 + $0x748] sm:$0xff]  ;;  %v282_v43 = vld [vmem:[%s3614_s1 + $0x700] sm:$0xff]  ;;  %v157_v35 = vld [vmem:[%s3614_s1 + $0x318] sm:$0xff] }
  0x20   :  { %1367 = vmatpush1.bf16.msra.mxu1 %v1366_v49  ;;  %v1396_v42 = vpack.c.bf16 %v291_v41, %v283_v40  ;;  %v290_v44 = vld [vmem:[%s3614_s1 + $0x740] sm:$0xff]  ;;  %v299_v46 = vld [vmem:[%s3614_s1 + $0x788] sm:$0xff]  ;;  %v164_v40 = vld [vmem:[%s3614_s1 + $0x350] sm:$0xff] }
  0x21   :  { %1369 = vmatprep.subr.bf16.mxu1 %v1368_v50  ;;  %v1398_v45 = vpack.c.bf16 %v290_v44, %v282_v43  ;;  %v307_v47 = vld [vmem:[%s3614_s1 + $0x7c8] sm:$0xff]  ;;  %v298_v48 = vld [vmem:[%s3614_s1 + $0x780] sm:$0xff]  ;;  %v173_v41 = vld [vmem:[%s3614_s1 + $0x398] sm:$0xff] }
  0x22   :  { %v1400_v49 = vpack.c.bf16 %v307_v47, %v299_v46  ;;  %v306_v50 = vld [vmem:[%s3614_s1 + $0x7c0] sm:$0xff]  ;;  %v180_v46 = vld [vmem:[%s3614_s1 + $0x3d0] sm:$0xff]  ;;  %v189_v47 = vld [vmem:[%s3614_s1 + $0x418] sm:$0xff] }
  0x23   :  { %v1402_v51 = vpack.c.bf16 %v306_v50, %v298_v48  ;;  %v197_v48 = vld [vmem:[%s3614_s1 + $0x458] sm:$0xff]  ;;  %v228_v3 = vld [vmem:[%s3614_s1 + $0x550] sm:$0xff] }
  0x24   :  { %1371 = vmatpush1.bf16.msra.mxu1 %v1370_v55  ;;  %v1436_v50 = vpack.c.bf16 %v197_v48, %v189_v47  ;;  %v301_v47 = vld [vmem:[%s3614_s1 + $0x798] sm:$0xff] }
  0x25   :  { %1373 = vmatprep.subr.bf16.mxu1 %v1372_v56  ;;  %v309_v48 = vld [vmem:[%s3614_s1 + $0x7d8] sm:$0xff] }
  0x28   :  { %1375 = vmatpush1.bf16.msra.mxu1 %v1374_v61  ;;  %v60_v61 = vld [vmem:[%s3614_s1 + $0x10] sm:$0xff] }
  0x29   :  { %1377 = vmatprep.subr.bf16.mxu1 %v1376_v62  ;;  %v68_v62 = vld [vmem:[%s3614_s1 + $0x50] sm:$0xff] }
  0x2c   :  { %1379 = vmatpush1.bf16.msra.mxu1 %v1378_v7 }
  0x2d   :  { %1381 = vmatprep.subr.bf16.mxu1 %v1380_v8  ;;  %v1406_v8 = vpack.c.bf16 %v68_v62, %v60_v61 }
  0x30   :  { %1383 = vmatpush1.bf16.msra.mxu1 %v1382_v13  ;;  %v101_v13 = vld [vmem:[%s3614_s1 + $0x158] sm:$0xff] }
  0x31   :  { %1385 = vmatprep.subr.bf16.mxu1 %v1384_v14 }
  0x34   :  { %1387 = vmatpush1.bf16.msra.mxu1 %v1386_v17  ;;  %v1410_v17 = vpack.c.bf16 %v84_v11, %v76_v10  ;;  %v236_v10 = vld [vmem:[%s3614_s1 + $0x590] sm:$0xff] }
  0x35   :  { %v244_v11 = vld [vmem:[%s3614_s1 + $0x5d0] sm:$0xff] }
  0x91   :  { %v27_v18 = vpop.xlane.xlu0 %26 }
  0x92   :  { %v32_v19 = vmul.f32 0.00390625, %v27_v18  ;;  %v1412_v18 = vpack.c.bf16 %v101_v13, %v93_v12  ;;  %v253_v13 = vld [vmem:[%s3614_s1 + $0x618] sm:$0xff] }
  0x94   :  { %v2133_v20 = vsub.f32 %v1967_v0, %v32_v19  ;;  %v35_v21 = vsub.f32 %v1972_v1, %v32_v19  ;;  %v92_v19 = vld [vmem:[%s3614_s1 + $0x110] sm:$0xff] }
  0x95   :  { %v30_v22 = vpop.xlane.xlu0 %29 }
  0x96   :  { %v33_v23 = vmul.f32 0.00390625, %v30_v22  ;;  %v38_v24 = vmul.f32 %v2133_v20, %v2133_v20  ;;  %v39_v25 = vmul.f32 %v35_v21, %v35_v21  ;;  %v117_v22 = vld [vmem:[%s3614_s1 + $0x1d8] sm:$0xff] }
  0x98   :  { %v2139_v26 = vsub.f32 %v1977_v2, %v33_v23  ;;  %v2142_v27 = vsub.f32 %v1984_v4, %v33_v23  ;;  %v42_v28 = vadd.f32 %v39_v25, %v38_v24  ;;  %v259_v2 = vld [vmem:[%s3614_s1 + $0x648] sm:$0xff]  ;;  %v108_v25 = vld [vmem:[%s3614_s1 + $0x190] sm:$0xff] }
  0x99   :  { %v1388_v4 = vpack.c.bf16 %v259_v2, %v251_v30  ;;  %v132_v30 = vld [vmem:[%s3614_s1 + $0x250] sm:$0xff]  ;;  %v141_v2 = vld [vmem:[%s3614_s1 + $0x298] sm:$0xff] }
  0x9a   :  { %43 = vadd.xlane.f32.xlu1 %v42_v28  ;;  %v40_v0 = vmul.f32 %v2139_v26, %v2139_v26  ;;  %v41_v1 = vmul.f32 %v2142_v27, %v2142_v27  ;;  %v133_v28 = vld [vmem:[%s3614_s1 + $0x258] sm:$0xff] }
  0x9b   :  { %1389 = vmatprep.subr.bf16.mxu1 %v1388_v4  ;;  %v149_v4 = vld [vmem:[%s3614_s1 + $0x2d8] sm:$0xff] }
  0x9c   :  { %v45_v29 = vadd.f32 %v41_v1, %v40_v0  ;;  %1391 = vmatpush1.bf16.msra.mxu1 %v1390_v33  ;;  %v1424_v32 = vpack.c.bf16 %v149_v4, %v141_v2  ;;  %v140_v33 = vld [vmem:[%s3614_s1 + $0x290] sm:$0xff] }
  0x9d   :  { %1393 = vmatprep.subr.bf16.mxu1 %v1392_v36  ;;  %v165_v36 = vld [vmem:[%s3614_s1 + $0x358] sm:$0xff]  ;;  %v1426_v37 = vpack.c.bf16 %v148_v34, %v140_v33  ;;  %v276_v33 = vld [vmem:[%s3614_s1 + $0x6d0] sm:$0xff] }
  0x9e   :  { %46 = vadd.xlane.f32.xlu1 %v45_v29  ;;  %v124_v29 = vld [vmem:[%s3614_s1 + $0x210] sm:$0xff]  ;;  %v1428_v38 = vpack.c.bf16 %v165_v36, %v157_v35  ;;  %v285_v35 = vld [vmem:[%s3614_s1 + $0x718] sm:$0xff] }
  0x9f   :  { %v1422_v31 = vpack.c.bf16 %v132_v30, %v124_v29  ;;  %v748_v29 = vld [vmem:[%s3616_s3 + $0x20] sm:$0xff]  ;;  %v750_v30 = vld [vmem:[%s3616_s3 + $0x30] sm:$0xff]  ;;  %v293_v36 = vld [vmem:[%s3614_s1 + $0x758] sm:$0xff] }
  0xa0   :  { %1395 = vmatpush1.bf16.msra.mxu1 %v1394_v39  ;;  %v156_v39 = vld [vmem:[%s3614_s1 + $0x310] sm:$0xff]  ;;  %v1602_v4 = vpack.c.bf16 %v750_v30, %v748_v29  ;;  %v768_v30 = vld [vmem:[%s3616_s3 + $0xc0] sm:$0xff] }
  0xa1   :  { %1397 = vmatprep.subr.bf16.mxu1 %v1396_v42  ;;  %v181_v42 = vld [vmem:[%s3614_s1 + $0x3d8] sm:$0xff]  ;;  %v1430_v43 = vpack.c.bf16 %v164_v40, %v156_v39  ;;  %v752_v39 = vld [vmem:[%s3616_s3 + $0x40] sm:$0xff]  ;;  %v754_v40 = vld [vmem:[%s3616_s3 + $0x50] sm:$0xff] }
  0xa2   :  { %v1432_v44 = vpack.c.bf16 %v181_v42, %v173_v41  ;;  %v1606_v42 = vpack.c.bf16 %v754_v40, %v752_v39  ;;  %v772_v40 = vld [vmem:[%s3616_s3 + $0xe0] sm:$0xff] }
  0xa4   :  { %1399 = vmatpush1.bf16.msra.mxu1 %v1398_v45  ;;  %v172_v45 = vld [vmem:[%s3614_s1 + $0x390] sm:$0xff] }
  0xa5   :  { %1401 = vmatprep.subr.bf16.mxu1 %v1400_v49  ;;  %v1434_v49 = vpack.c.bf16 %v180_v46, %v172_v45  ;;  %v292_v45 = vld [vmem:[%s3614_s1 + $0x750] sm:$0xff]  ;;  %v1460_v46 = vpack.c.bf16 %v293_v36, %v285_v35  ;;  %v111_v35 = vld [vmem:[%s3614_s1 + $0x1a8] sm:$0xff] }
  0xa6   :  { %v773_v36 = vld [vmem:[%s3616_s3 + $0xe8] sm:$0xff] }
  0xa8   :  { %1403 = vmatpush1.bf16.msra.mxu1 %v1402_v51  ;;  %v188_v51 = vld [vmem:[%s3614_s1 + $0x410] sm:$0xff] }
  0xa9   :  { %1405 = vmatprep.subr.bf16.mxu1 %v1404_v54  ;;  %v213_v54 = vld [vmem:[%s3614_s1 + $0x4d8] sm:$0xff] }
 0x127   :  { %v44_v55 = vpop.xlane.xlu1 %43 }
 0x128   :  { %v48_v56 = vmul.f32 0.00390625, %v44_v55  ;;  %v1438_v55 = vpack.c.bf16 %v196_v52, %v188_v51  ;;  %v756_v51 = vld [vmem:[%s3616_s3 + $0x60] sm:$0xff]  ;;  %v758_v52 = vld [vmem:[%s3616_s3 + $0x70] sm:$0xff] }
 0x12a   :  { %v50_v57 = vadd.f32 1e-05, %v48_v56  ;;  %v1440_v56 = vpack.c.bf16 %v213_v54, %v205_v53  ;;  %v1610_v54 = vpack.c.bf16 %v758_v52, %v756_v51  ;;  %v110_v52 = vld [vmem:[%s3614_s1 + $0x1a0] sm:$0xff] }
 0x12b   :  { %v47_v58 = vpop.xlane.xlu1 %46 }
 0x12c   :  { %1871 = vrsqrt.f32 %v50_v57  ;;  %v49_v59 = vmul.f32 0.00390625, %v47_v58  ;;  %v204_v57 = vld [vmem:[%s3614_s1 + $0x490] sm:$0xff] }
 0x12d   :  { %v212_v58 = vld [vmem:[%s3614_s1 + $0x4d0] sm:$0xff] }
 0x12e   :  { %v51_v60 = vadd.f32 1e-05, %v49_v59  ;;  %v221_v59 = vld [vmem:[%s3614_s1 + $0x518] sm:$0xff]  ;;  %v1442_v61 = vpack.c.bf16 %v212_v58, %v204_v57  ;;  %v308_v57 = vld [vmem:[%s3614_s1 + $0x7d0] sm:$0xff]  ;;  %v1464_v58 = vpack.c.bf16 %v309_v48, %v301_v47 }
 0x12f   :  { %v778_v48 = vld [vmem:[%s3616_s3 + $0x110] sm:$0xff] }
 0x130   :  { %1873 = vrsqrt.f32 %v51_v60  ;;  %v229_v60 = vld [vmem:[%s3614_s1 + $0x558] sm:$0xff] }
 0x131   :  { %v1444_v62 = vpack.c.bf16 %v229_v60, %v221_v59  ;;  %v63_v59 = vld [vmem:[%s3614_s1 + $0x28] sm:$0xff] }
 0x132   :  { %v71_v60 = vld [vmem:[%s3614_s1 + $0x68] sm:$0xff] }
 0x136   :  { %v1872_v5 = vpop.eup %1871 }
 0x137   :  { %v2214_v6 = vmul.f32 %v1872_v5, %v35_v21  ;;  %v2217_v7 = vmul.f32 %v1872_v5, %v2133_v20  ;;  %v100_v20 = vld [vmem:[%s3614_s1 + $0x150] sm:$0xff]  ;;  %v109_v21 = vld [vmem:[%s3614_s1 + $0x198] sm:$0xff] }
 0x138   :  { %v1414_v23 = vpack.c.bf16 %v100_v20, %v92_v19  ;;  %v1416_v24 = vpack.c.bf16 %v117_v22, %v109_v21  ;;  %v237_v5 = vld [vmem:[%s3614_s1 + $0x598] sm:$0xff]  ;;  %v744_v19 = vld [vmem:[%s3616_s3] sm:$0xff]  ;;  %v746_v20 = vld [vmem:[%s3616_s3 + $0x10] sm:$0xff] }
 0x139   :  { %420 = vmatprep.mubr.f32.mxu1 %v2214_v6  ;;  %v1598_v22 = vpack.c.bf16 %v746_v20, %v744_v19  ;;  %v764_v19 = vld [vmem:[%s3616_s3 + $0xa0] sm:$0xff]  ;;  %v766_v20 = vld [vmem:[%s3616_s3 + $0xb0] sm:$0xff] }
 0x13a   :  { %v1874_v14 = vpop.eup %1873  ;;  %421 = vmatmul.mubr.f32.vlgmr.msra.gmra.mrb[0].mxu1 %v2217_v7 }
 0x13b   :  { %1407 = vmatpush1.bf16.msra.mxu1 %v1406_v8  ;;  %v2234_v15 = vmul.f32 %v1874_v14, %v2142_v27  ;;  %v2237_v16 = vmul.f32 %v1874_v14, %v2139_v26  ;;  %v116_v26 = vld [vmem:[%s3614_s1 + $0x1d0] sm:$0xff]  ;;  %v125_v27 = vld [vmem:[%s3614_s1 + $0x218] sm:$0xff] }
 0x13c   :  { %1409 = vmatprep.subr.bf16.mxu1 %v1408_v9  ;;  %v1418_v0 = vpack.c.bf16 %v116_v26, %v108_v25  ;;  %v1420_v1 = vpack.c.bf16 %v133_v28, %v125_v27  ;;  %v245_v8 = vld [vmem:[%s3614_s1 + $0x5d8] sm:$0xff]  ;;  %v1446_v9 = vpack.c.bf16 %v228_v3, %v220_v63  ;;  %v260_v25 = vld [vmem:[%s3614_s1 + $0x650] sm:$0xff]  ;;  %v760_v63 = vld [vmem:[%s3616_s3 + $0x80] sm:$0xff] }
 0x13d   :  { %426 = vmatprep.mubr.f32.mxu1 %v2234_v15  ;;  %v1448_v12 = vpack.c.bf16 %v245_v8, %v237_v5  ;;  %v261_v14 = vld [vmem:[%s3614_s1 + $0x658] sm:$0xff]  ;;  %v762_v3 = vld [vmem:[%s3616_s3 + $0x90] sm:$0xff] }
 0x13e   :  { %427 = vmatmul.mubr.f32.gmra.mrb[2].mxu1 %v2237_v16  ;;  %v1452_v26 = vpack.c.bf16 %v261_v14, %v253_v13  ;;  %v269_v27 = vld [vmem:[%s3614_s1 + $0x698] sm:$0xff]  ;;  %v1614_v8 = vpack.c.bf16 %v762_v3, %v760_v63  ;;  %v79_v13 = vld [vmem:[%s3614_s1 + $0xa8] sm:$0xff]  ;;  %v126_v3 = vld [vmem:[%s3614_s1 + $0x220] sm:$0xff] }
 0x13f   :  { %1411 = vmatpush1.bf16.msra.mxu1 %v1410_v17  ;;  %497 = vmatprep.mubr.f32.mxu1 %v2214_v6  ;;  %v745_v17 = vld [vmem:[%s3616_s3 + $0x8] sm:$0xff]  ;;  %v277_v28 = vld [vmem:[%s3614_s1 + $0x6d8] sm:$0xff] }
 0x140   :  { %1413 = vmatprep.subr.bf16.mxu1 %v1412_v18  ;;  %v747_v18 = vld [vmem:[%s3616_s3 + $0x18] sm:$0xff]  ;;  %v1456_v34 = vpack.c.bf16 %v277_v28, %v269_v27  ;;  %v87_v14 = vld [vmem:[%s3614_s1 + $0xe8] sm:$0xff] }
 0x141   :  { %v1596_v21 = vpack.c.bf16 %v747_v18, %v745_v17  ;;  %v765_v17 = vld [vmem:[%s3616_s3 + $0xa8] sm:$0xff]  ;;  %v767_v18 = vld [vmem:[%s3616_s3 + $0xb8] sm:$0xff] }
 0x142   :  { %v95_v27 = vld [vmem:[%s3614_s1 + $0x128] sm:$0xff] }
 0x143   :  { %1415 = vmatpush1.bf16.msra.mxu1 %v1414_v23  ;;  %v1450_v23 = vpack.c.bf16 %v244_v11, %v236_v10  ;;  %1597 = vmatprep.subr.bf16.mxu0 %v1596_v21  ;;  %v62_v10 = vld [vmem:[%s3614_s1 + $0x20] sm:$0xff]  ;;  %v1616_v21 = vpack.c.bf16 %v767_v18, %v765_v17  ;;  %v769_v28 = vld [vmem:[%s3616_s3 + $0xc8] sm:$0xff] }
 0x144   :  { %1417 = vmatprep.subr.bf16.mxu1 %v1416_v24  ;;  %v252_v24 = vld [vmem:[%s3614_s1 + $0x610] sm:$0xff]  ;;  %1599 = vmatpush1.bf16.msra.mxu0 %v1598_v22  ;;  %v70_v11 = vld [vmem:[%s3614_s1 + $0x60] sm:$0xff]  ;;  %v1618_v22 = vpack.c.bf16 %v766_v20, %v764_v19  ;;  %v159_v20 = vld [vmem:[%s3614_s1 + $0x328] sm:$0xff] }
 0x145   :  { %v142_v18 = vld [vmem:[%s3614_s1 + $0x2a0] sm:$0xff] }
 0x146   :  { %v150_v19 = vld [vmem:[%s3614_s1 + $0x2e0] sm:$0xff] }
 0x147   :  { %1419 = vmatpush1.bf16.msra.mxu1 %v1418_v0  ;;  %v749_v0 = vld [vmem:[%s3616_s3 + $0x28] sm:$0xff] }
 0x148   :  { %1421 = vmatprep.subr.bf16.mxu1 %v1420_v1  ;;  %v751_v1 = vld [vmem:[%s3616_s3 + $0x38] sm:$0xff] }
 0x149   :  { %v1600_v2 = vpack.c.bf16 %v751_v1, %v749_v0  ;;  %v771_v0 = vld [vmem:[%s3616_s3 + $0xd8] sm:$0xff]  ;;  %v103_v1 = vld [vmem:[%s3614_s1 + $0x168] sm:$0xff] }
 0x14a   :  { %v1620_v29 = vpack.c.bf16 %v771_v0, %v769_v28  ;;  %v789_v28 = vld [vmem:[%s3616_s3 + $0x168] sm:$0xff]  ;;  %v791_v0 = vld [vmem:[%s3616_s3 + $0x178] sm:$0xff] }
 0x14b   :  { %1423 = vmatpush1.bf16.msra.mxu1 %v1422_v31  ;;  %v1454_v31 = vpack.c.bf16 %v260_v25, %v252_v24  ;;  %1601 = vmatprep.subr.bf16.mxu0 %v1600_v2  ;;  %v78_v24 = vld [vmem:[%s3614_s1 + $0xa0] sm:$0xff]  ;;  %v770_v2 = vld [vmem:[%s3616_s3 + $0xd0] sm:$0xff] }
 0x14c   :  { %1425 = vmatprep.subr.bf16.mxu1 %v1424_v32  ;;  %v268_v32 = vld [vmem:[%s3614_s1 + $0x690] sm:$0xff]  ;;  %1603 = vmatpush1.bf16.msra.mxu0 %v1602_v4  ;;  %v86_v25 = vld [vmem:[%s3614_s1 + $0xe0] sm:$0xff]  ;;  %v1622_v4 = vpack.c.bf16 %v770_v2, %v768_v30 }
 0x14d   :  { %v788_v30 = vld [vmem:[%s3616_s3 + $0x160] sm:$0xff]  ;;  %v790_v2 = vld [vmem:[%s3616_s3 + $0x170] sm:$0xff] }
 0x14f   :  { %1427 = vmatpush1.bf16.msra.mxu1 %v1426_v37  ;;  %v753_v37 = vld [vmem:[%s3616_s3 + $0x48] sm:$0xff] }
 0x150   :  { %1429 = vmatprep.subr.bf16.mxu1 %v1428_v38  ;;  %v755_v38 = vld [vmem:[%s3616_s3 + $0x58] sm:$0xff] }
 0x151   :  { %v1604_v41 = vpack.c.bf16 %v755_v38, %v753_v37  ;;  %v775_v37 = vld [vmem:[%s3616_s3 + $0xf8] sm:$0xff]  ;;  %v119_v38 = vld [vmem:[%s3614_s1 + $0x1e8] sm:$0xff] }
 0x152   :  { %v1624_v39 = vpack.c.bf16 %v775_v37, %v773_v36  ;;  %v1480_v51 = vpack.c.bf16 %v119_v38, %v111_v35  ;;  %v191_v35 = vld [vmem:[%s3614_s1 + $0x428] sm:$0xff]  ;;  %v795_v37 = vld [vmem:[%s3616_s3 + $0x198] sm:$0xff] }
 0x153   :  { %1431 = vmatpush1.bf16.msra.mxu1 %v1430_v43  ;;  %v1458_v43 = vpack.c.bf16 %v276_v33, %v268_v32  ;;  %1605 = vmatprep.subr.bf16.mxu0 %v1604_v41  ;;  %v94_v32 = vld [vmem:[%s3614_s1 + $0x120] sm:$0xff]  ;;  %v774_v41 = vld [vmem:[%s3616_s3 + $0xf0] sm:$0xff]  ;;  %v793_v36 = vld [vmem:[%s3616_s3 + $0x188] sm:$0xff] }
 0x154   :  { %1433 = vmatprep.subr.bf16.mxu1 %v1432_v44  ;;  %v284_v44 = vld [vmem:[%s3614_s1 + $0x710] sm:$0xff]  ;;  %1607 = vmatpush1.bf16.msra.mxu0 %v1606_v42  ;;  %v102_v33 = vld [vmem:[%s3614_s1 + $0x160] sm:$0xff]  ;;  %v1626_v42 = vpack.c.bf16 %v774_v41, %v772_v40  ;;  %v199_v38 = vld [vmem:[%s3614_s1 + $0x468] sm:$0xff] }
 0x155   :  { %v792_v40 = vld [vmem:[%s3616_s3 + $0x180] sm:$0xff]  ;;  %v794_v41 = vld [vmem:[%s3616_s3 + $0x190] sm:$0xff] }
 0x157   :  { %1435 = vmatpush1.bf16.msra.mxu1 %v1434_v49  ;;  %v757_v49 = vld [vmem:[%s3616_s3 + $0x68] sm:$0xff] }
 0x158   :  { %1437 = vmatprep.subr.bf16.mxu1 %v1436_v50  ;;  %v759_v50 = vld [vmem:[%s3616_s3 + $0x78] sm:$0xff] }
 0x159   :  { %v1608_v53 = vpack.c.bf16 %v759_v50, %v757_v49  ;;  %v781_v49 = vld [vmem:[%s3616_s3 + $0x128] sm:$0xff]  ;;  %v783_v50 = vld [vmem:[%s3616_s3 + $0x138] sm:$0xff] }
 0x15b   :  { %1439 = vmatpush1.bf16.msra.mxu1 %v1438_v55  ;;  %v1462_v55 = vpack.c.bf16 %v292_v45, %v284_v44  ;;  %1609 = vmatprep.subr.bf16.mxu0 %v1608_v53  ;;  %v779_v44 = vld [vmem:[%s3616_s3 + $0x118] sm:$0xff]  ;;  %v776_v45 = vld [vmem:[%s3616_s3 + $0x100] sm:$0xff] }
 0x15c   :  { %1441 = vmatprep.subr.bf16.mxu1 %v1440_v56  ;;  %v300_v56 = vld [vmem:[%s3614_s1 + $0x790] sm:$0xff]  ;;  %1611 = vmatpush1.bf16.msra.mxu0 %v1610_v54  ;;  %v118_v53 = vld [vmem:[%s3614_s1 + $0x1e0] sm:$0xff]  ;;  %v127_v54 = vld [vmem:[%s3614_s1 + $0x228] sm:$0xff] }
 0x15f   :  { %1443 = vmatpush1.bf16.msra.mxu1 %v1442_v61  ;;  %v761_v61 = vld [vmem:[%s3616_s3 + $0x88] sm:$0xff] }
 0x160   :  { %1445 = vmatprep.subr.bf16.mxu1 %v1444_v62  ;;  %v763_v62 = vld [vmem:[%s3616_s3 + $0x98] sm:$0xff] }
 0x161   :  { %v1612_v5 = vpack.c.bf16 %v763_v62, %v761_v61  ;;  %v785_v61 = vld [vmem:[%s3616_s3 + $0x148] sm:$0xff]  ;;  %v787_v62 = vld [vmem:[%s3616_s3 + $0x158] sm:$0xff] }
 0x163   :  { %1447 = vmatpush1.bf16.msra.mxu1 %v1446_v9  ;;  %v1466_v9 = vpack.c.bf16 %v308_v57, %v300_v56  ;;  %1613 = vmatprep.subr.bf16.mxu0 %v1612_v5  ;;  %v1630_v56 = vpack.c.bf16 %v778_v48, %v776_v45  ;;  %v1632_v57 = vpack.c.bf16 %v783_v50, %v781_v49  ;;  %v134_v5 = vld [vmem:[%s3614_s1 + $0x260] sm:$0xff]  ;;  %v797_v48 = vld [vmem:[%s3616_s3 + $0x1a8] sm:$0xff]  ;;  %v799_v49 = vld [vmem:[%s3616_s3 + $0x1b8] sm:$0xff] }
 0x164   :  { %1449 = vmatprep.subr.bf16.mxu1 %v1448_v12  ;;  %v1468_v12 = vpack.c.bf16 %v71_v60, %v63_v59  ;;  %1615 = vmatpush1.bf16.msra.mxu0 %v1614_v8  ;;  %v782_v59 = vld [vmem:[%s3616_s3 + $0x130] sm:$0xff]  ;;  %v1482_v60 = vpack.c.bf16 %v118_v53, %v110_v52  ;;  %v143_v8 = vld [vmem:[%s3614_s1 + $0x2a8] sm:$0xff]  ;;  %v198_v45 = vld [vmem:[%s3614_s1 + $0x460] sm:$0xff] }
 0x165   :  { %1617 = vmatprep.subr.bf16.mxu0 %v1616_v21  ;;  %v167_v21 = vld [vmem:[%s3614_s1 + $0x368] sm:$0xff]  ;;  %v796_v52 = vld [vmem:[%s3616_s3 + $0x1a0] sm:$0xff]  ;;  %v798_v53 = vld [vmem:[%s3616_s3 + $0x1b0] sm:$0xff] }
 0x166   :  { %v215_v50 = vld [vmem:[%s3614_s1 + $0x4e8] sm:$0xff] }
 0x167   :  { %1451 = vmatpush1.bf16.msra.mxu1 %v1450_v23  ;;  %v1470_v23 = vpack.c.bf16 %v70_v11, %v62_v10  ;;  %v1636_v11 = vpack.c.bf16 %v787_v62, %v785_v61  ;;  %v803_v61 = vld [vmem:[%s3616_s3 + $0x1d8] sm:$0xff]  ;;  %v231_v62 = vld [vmem:[%s3614_s1 + $0x568] sm:$0xff] }
 0x168   :  { %1453 = vmatprep.subr.bf16.mxu1 %v1452_v26  ;;  %v1472_v26 = vpack.c.bf16 %v87_v14, %v79_v13  ;;  %1619 = vmatpush1.bf16.msra.mxu0 %v1618_v22  ;;  %v786_v13 = vld [vmem:[%s3616_s3 + $0x150] sm:$0xff]  ;;  %v1486_v14 = vpack.c.bf16 %v134_v5, %v126_v3  ;;  %v800_v3 = vld [vmem:[%s3616_s3 + $0x1c0] sm:$0xff] }
 0x169   :  { %1621 = vmatprep.subr.bf16.mxu0 %v1620_v29  ;;  %v1640_v29 = vpack.c.bf16 %v791_v0, %v789_v28  ;;  %v802_v5 = vld [vmem:[%s3616_s3 + $0x1d0] sm:$0xff]  ;;  %v811_v28 = vld [vmem:[%s3616_s3 + $0x218] sm:$0xff]  ;;  %v255_v0 = vld [vmem:[%s3614_s1 + $0x628] sm:$0xff] }
 0x16b   :  { %1455 = vmatpush1.bf16.msra.mxu1 %v1454_v31  ;;  %v1474_v31 = vpack.c.bf16 %v86_v25, %v78_v24  ;;  %v158_v24 = vld [vmem:[%s3614_s1 + $0x320] sm:$0xff] }
 0x16c   :  { %1457 = vmatprep.subr.bf16.mxu1 %v1456_v34  ;;  %v1476_v34 = vpack.c.bf16 %v103_v1, %v95_v27  ;;  %1623 = vmatpush1.bf16.msra.mxu0 %v1622_v4  ;;  %v166_v25 = vld [vmem:[%s3614_s1 + $0x360] sm:$0xff]  ;;  %v175_v27 = vld [vmem:[%s3614_s1 + $0x3a8] sm:$0xff]  ;;  %v1642_v4 = vpack.c.bf16 %v790_v2, %v788_v30 }
 0x16d   :  { %1625 = vmatprep.subr.bf16.mxu0 %v1624_v39  ;;  %v183_v1 = vld [vmem:[%s3614_s1 + $0x3e8] sm:$0xff]  ;;  %v1644_v39 = vpack.c.bf16 %v795_v37, %v793_v36  ;;  %v270_v36 = vld [vmem:[%s3614_s1 + $0x6a0] sm:$0xff] }
 0x16e   :  { %v278_v37 = vld [vmem:[%s3614_s1 + $0x6e0] sm:$0xff] }
 0x16f   :  { %1459 = vmatpush1.bf16.msra.mxu1 %v1458_v43  ;;  %v777_v43 = vld [vmem:[%s3616_s3 + $0x108] sm:$0xff] }
 0x170   :  { %1461 = vmatprep.subr.bf16.mxu1 %v1460_v46  ;;  %v1478_v46 = vpack.c.bf16 %v102_v33, %v94_v32  ;;  %v1628_v47 = vpack.c.bf16 %v779_v44, %v777_v43  ;;  %1627 = vmatpush1.bf16.msra.mxu0 %v1626_v42  ;;  %v174_v32 = vld [vmem:[%s3614_s1 + $0x3a0] sm:$0xff]  ;;  %v1646_v42 = vpack.c.bf16 %v794_v41, %v792_v40 }
 0x171   :  { %v182_v33 = vld [vmem:[%s3614_s1 + $0x3e0] sm:$0xff]  ;;  %v1522_v40 = vpack.c.bf16 %v278_v37, %v270_v36  ;;  %v184_v36 = vld [vmem:[%s3614_s1 + $0x3f0] sm:$0xff]  ;;  %v193_v37 = vld [vmem:[%s3614_s1 + $0x438] sm:$0xff] }
 0x172   :  { %1629 = vmatprep.subr.bf16.mxu0 %v1628_v47  ;;  %v1498_v43 = vpack.c.bf16 %v182_v33, %v174_v32  ;;  %v190_v44 = vld [vmem:[%s3614_s1 + $0x420] sm:$0xff]  ;;  %v207_v47 = vld [vmem:[%s3614_s1 + $0x4a8] sm:$0xff] }
 0x173   :  { %1463 = vmatpush1.bf16.msra.mxu1 %v1462_v55  ;;  %v135_v55 = vld [vmem:[%s3614_s1 + $0x268] sm:$0xff] }
 0x174   :  { %1465 = vmatprep.subr.bf16.mxu1 %v1464_v58  ;;  %v780_v58 = vld [vmem:[%s3616_s3 + $0x120] sm:$0xff]  ;;  %v1484_v63 = vpack.c.bf16 %v135_v55, %v127_v54  ;;  %1631 = vmatpush1.bf16.msra.mxu0 %v1630_v56  ;;  %v1650_v54 = vpack.c.bf16 %v798_v53, %v796_v52  ;;  %v1502_v55 = vpack.c.bf16 %v198_v45, %v190_v44  ;;  %v271_v32 = vld [vmem:[%s3614_s1 + $0x6a8] sm:$0xff] }
 0x175   :  { %v1634_v10 = vpack.c.bf16 %v782_v59, %v780_v58  ;;  %1633 = vmatprep.subr.bf16.mxu0 %v1632_v57  ;;  %v206_v56 = vld [vmem:[%s3614_s1 + $0x4a0] sm:$0xff]  ;;  %v1504_v58 = vpack.c.bf16 %v215_v50, %v207_v47  ;;  %v223_v59 = vld [vmem:[%s3614_s1 + $0x528] sm:$0xff]  ;;  %v65_v50 = vld [vmem:[%s3614_s1 + $0x38] sm:$0xff] }
 0x176   :  { %v214_v57 = vld [vmem:[%s3614_s1 + $0x4e0] sm:$0xff]  ;;  %v279_v33 = vld [vmem:[%s3614_s1 + $0x6e8] sm:$0xff] }
 0x177   :  { %1467 = vmatpush1.bf16.msra.mxu1 %v1466_v9  ;;  %v151_v9 = vld [vmem:[%s3614_s1 + $0x2e8] sm:$0xff] }
 0x178   :  { %1469 = vmatprep.subr.bf16.mxu1 %v1468_v12  ;;  %v784_v12 = vld [vmem:[%s3616_s3 + $0x140] sm:$0xff]  ;;  %v1488_v17 = vpack.c.bf16 %v151_v9, %v143_v8  ;;  %1635 = vmatpush1.bf16.msra.mxu0 %v1634_v10  ;;  %v1654_v8 = vpack.c.bf16 %v802_v5, %v800_v3  ;;  %v1506_v9 = vpack.c.bf16 %v214_v57, %v206_v56  ;;  %v303_v44 = vld [vmem:[%s3614_s1 + $0x7a8] sm:$0xff]  ;;  %v81_v56 = vld [vmem:[%s3614_s1 + $0xb8] sm:$0xff] }
 0x179   :  { %v1638_v22 = vpack.c.bf16 %v786_v13, %v784_v12  ;;  %1637 = vmatprep.subr.bf16.mxu0 %v1636_v11  ;;  %v222_v10 = vld [vmem:[%s3614_s1 + $0x520] sm:$0xff]  ;;  %v1508_v12 = vpack.c.bf16 %v231_v62, %v223_v59  ;;  %v239_v13 = vld [vmem:[%s3614_s1 + $0x5a8] sm:$0xff]  ;;  %v89_v57 = vld [vmem:[%s3614_s1 + $0xf8] sm:$0xff] }
 0x17a   :  { %498 = vmatmul.mubr.f32.vlgmr.msra.gmra.mrb[4].mxu1 %v2217_v7  ;;  %v230_v11 = vld [vmem:[%s3614_s1 + $0x560] sm:$0xff]  ;;  %v311_v45 = vld [vmem:[%s3614_s1 + $0x7e8] sm:$0xff]  ;;  %v1536_v59 = vpack.c.bf16 %v89_v57, %v81_v56  ;;  %v97_v62 = vld [vmem:[%s3614_s1 + $0x138] sm:$0xff] }
 0x17b   :  { %503 = vmatprep.mubr.f32.mxu1 %v2234_v15  ;;  %1471 = vmatpush1.bf16.msra.mxu1 %v1470_v23  ;;  %v1490_v23 = vpack.c.bf16 %v150_v19, %v142_v18  ;;  %v247_v18 = vld [vmem:[%s3614_s1 + $0x5e8] sm:$0xff]  ;;  %v1528_v47 = vpack.c.bf16 %v311_v45, %v303_v44  ;;  %v217_v44 = vld [vmem:[%s3614_s1 + $0x4f8] sm:$0xff] }
 0x17c   :  { %1473 = vmatprep.subr.bf16.mxu1 %v1472_v26  ;;  %v1492_v26 = vpack.c.bf16 %v167_v21, %v159_v20  ;;  %1639 = vmatpush1.bf16.msra.mxu0 %v1638_v22  ;;  %v804_v20 = vld [vmem:[%s3616_s3 + $0x1e0] sm:$0xff]  ;;  %v806_v21 = vld [vmem:[%s3616_s3 + $0x1f0] sm:$0xff]  ;;  %v249_v56 = vld [vmem:[%s3614_s1 + $0x5f8] sm:$0xff] }
 0x17d   :  { %1641 = vmatprep.subr.bf16.mxu0 %v1640_v29  ;;  %v1658_v22 = vpack.c.bf16 %v806_v21, %v804_v20  ;;  %v128_v21 = vld [vmem:[%s3614_s1 + $0x230] sm:$0xff] }
 0x17e   :  { %504 = vmatmul.mubr.f32.gmra.mrb[6].mxu1 %v2237_v16 }
 0x17f   :  { %1475 = vmatpush1.bf16.msra.mxu1 %v1474_v31  ;;  %574 = vmatprep.mubr.f32.mxu1 %v2214_v6  ;;  %v1494_v31 = vpack.c.bf16 %v166_v25, %v158_v24  ;;  %v238_v24 = vld [vmem:[%s3614_s1 + $0x5a0] sm:$0xff]  ;;  %v1512_v25 = vpack.c.bf16 %v247_v18, %v239_v13  ;;  %v129_v18 = vld [vmem:[%s3614_s1 + $0x238] sm:$0xff] }
 0x180   :  { %1477 = vmatprep.subr.bf16.mxu1 %v1476_v34  ;;  %v1496_v34 = vpack.c.bf16 %v183_v1, %v175_v27  ;;  %1643 = vmatpush1.bf16.msra.mxu0 %v1642_v4  ;;  %v809_v27 = vld [vmem:[%s3616_s3 + $0x208] sm:$0xff]  ;;  %v254_v4 = vld [vmem:[%s3614_s1 + $0x620] sm:$0xff] }
 0x181   :  { %1645 = vmatprep.subr.bf16.mxu0 %v1644_v39  ;;  %v263_v1 = vld [vmem:[%s3614_s1 + $0x668] sm:$0xff]  ;;  %v1660_v29 = vpack.c.bf16 %v811_v28, %v809_v27  ;;  %v144_v27 = vld [vmem:[%s3614_s1 + $0x2b0] sm:$0xff] }
 0x182   :  { %v1516_v2 = vpack.c.bf16 %v263_v1, %v255_v0  ;;  %v295_v39 = vld [vmem:[%s3614_s1 + $0x768] sm:$0xff]  ;;  %v152_v28 = vld [vmem:[%s3614_s1 + $0x2f0] sm:$0xff]  ;;  %v161_v0 = vld [vmem:[%s3614_s1 + $0x338] sm:$0xff] }
 0x183   :  { %1479 = vmatpush1.bf16.msra.mxu1 %v1478_v46  ;;  %v1500_v46 = vpack.c.bf16 %v199_v38, %v191_v35  ;;  %v1520_v35 = vpack.c.bf16 %v279_v33, %v271_v32  ;;  %v287_v38 = vld [vmem:[%s3614_s1 + $0x728] sm:$0xff]  ;;  %v169_v1 = vld [vmem:[%s3614_s1 + $0x378] sm:$0xff] }
 0x184   :  { %1481 = vmatprep.subr.bf16.mxu1 %v1480_v51  ;;  %1647 = vmatpush1.bf16.msra.mxu0 %v1646_v42  ;;  %v1648_v51 = vpack.c.bf16 %v799_v49, %v797_v48  ;;  %v1524_v41 = vpack.c.bf16 %v295_v39, %v287_v38  ;;  %v286_v42 = vld [vmem:[%s3614_s1 + $0x720] sm:$0xff]  ;;  %v185_v32 = vld [vmem:[%s3614_s1 + $0x3f8] sm:$0xff] }
 0x185   :  { %v302_v48 = vld [vmem:[%s3614_s1 + $0x7a0] sm:$0xff]  ;;  %v201_v38 = vld [vmem:[%s3614_s1 + $0x478] sm:$0xff] }
 0x186   :  { %1649 = vmatprep.subr.bf16.mxu0 %v1648_v51  ;;  %v310_v49 = vld [vmem:[%s3614_s1 + $0x7e0] sm:$0xff]  ;;  %v73_v51 = vld [vmem:[%s3614_s1 + $0x78] sm:$0xff] }
 0x187   :  { %1483 = vmatpush1.bf16.msra.mxu1 %v1482_v60  ;;  %v801_v60 = vld [vmem:[%s3616_s3 + $0x1c8] sm:$0xff]  ;;  %v1530_v52 = vpack.c.bf16 %v310_v49, %v302_v48  ;;  %v1532_v53 = vpack.c.bf16 %v73_v51, %v65_v50  ;;  %v216_v48 = vld [vmem:[%s3614_s1 + $0x4f0] sm:$0xff]  ;;  %v225_v49 = vld [vmem:[%s3614_s1 + $0x538] sm:$0xff] }
 0x188   :  { %1485 = vmatprep.subr.bf16.mxu1 %v1484_v63  ;;  %1651 = vmatpush1.bf16.msra.mxu0 %v1650_v54  ;;  %v1652_v63 = vpack.c.bf16 %v803_v61, %v801_v60  ;;  %v64_v54 = vld [vmem:[%s3614_s1 + $0x30] sm:$0xff]  ;;  %v233_v50 = vld [vmem:[%s3614_s1 + $0x578] sm:$0xff] }
 0x189   :  { %v80_v60 = vld [vmem:[%s3614_s1 + $0xb0] sm:$0xff] }
 0x18a   :  { %1653 = vmatprep.subr.bf16.mxu0 %v1652_v63  ;;  %v88_v61 = vld [vmem:[%s3614_s1 + $0xf0] sm:$0xff]  ;;  %v105_v63 = vld [vmem:[%s3614_s1 + $0x178] sm:$0xff] }
 0x18b   :  { %1487 = vmatpush1.bf16.msra.mxu1 %v1486_v14  ;;  %v805_v14 = vld [vmem:[%s3616_s3 + $0x1e8] sm:$0xff]  ;;  %v1538_v3 = vpack.c.bf16 %v88_v61, %v80_v60  ;;  %v1540_v5 = vpack.c.bf16 %v105_v63, %v97_v62  ;;  %v248_v60 = vld [vmem:[%s3614_s1 + $0x5f0] sm:$0xff]  ;;  %v257_v61 = vld [vmem:[%s3614_s1 + $0x638] sm:$0xff] }
 0x18c   :  { %1489 = vmatprep.subr.bf16.mxu1 %v1488_v17  ;;  %v807_v17 = vld [vmem:[%s3616_s3 + $0x1f8] sm:$0xff]  ;;  %1655 = vmatpush1.bf16.msra.mxu0 %v1654_v8  ;;  %v96_v8 = vld [vmem:[%s3614_s1 + $0x130] sm:$0xff] }
 0x18d   :  { %v1656_v19 = vpack.c.bf16 %v807_v17, %v805_v14  ;;  %v112_v14 = vld [vmem:[%s3614_s1 + $0x1b0] sm:$0xff]  ;;  %v265_v62 = vld [vmem:[%s3614_s1 + $0x678] sm:$0xff] }
 0x18e   :  { %v120_v17 = vld [vmem:[%s3614_s1 + $0x1f0] sm:$0xff] }
 0x18f   :  { %1491 = vmatpush1.bf16.msra.mxu1 %v1490_v23  ;;  %v1510_v23 = vpack.c.bf16 %v230_v11, %v222_v10  ;;  %1657 = vmatprep.subr.bf16.mxu0 %v1656_v19  ;;  %v113_v10 = vld [vmem:[%s3614_s1 + $0x1b8] sm:$0xff] }
 0x190   :  { %1493 = vmatprep.subr.bf16.mxu1 %v1492_v26  ;;  %v246_v26 = vld [vmem:[%s3614_s1 + $0x5e0] sm:$0xff]  ;;  %1659 = vmatpush1.bf16.msra.mxu0 %v1658_v22  ;;  %v121_v11 = vld [vmem:[%s3614_s1 + $0x1f8] sm:$0xff]  ;;  %v136_v22 = vld [vmem:[%s3614_s1 + $0x270] sm:$0xff] }
 0x191   :  { %v1514_v30 = vpack.c.bf16 %v246_v26, %v238_v24  ;;  %1661 = vmatprep.subr.bf16.mxu0 %v1660_v29  ;;  %v1544_v13 = vpack.c.bf16 %v121_v11, %v113_v10  ;;  %v137_v19 = vld [vmem:[%s3614_s1 + $0x278] sm:$0xff]  ;;  %v1554_v29 = vpack.c.bf16 %v152_v28, %v144_v27  ;;  %v312_v27 = vld [vmem:[%s3614_s1 + $0x7f0] sm:$0xff] }
 0x192   :  { %v1548_v20 = vpack.c.bf16 %v137_v19, %v129_v18  ;;  %v153_v24 = vld [vmem:[%s3614_s1 + $0x2f8] sm:$0xff] }
 0x193   :  { %1495 = vmatpush1.bf16.msra.mxu1 %v1494_v31  ;;  %v262_v31 = vld [vmem:[%s3614_s1 + $0x660] sm:$0xff]  ;;  %v281_v10 = vld [vmem:[%s3614_s1 + $0x6f8] sm:$0xff] }
 0x194   :  { %1497 = vmatprep.subr.bf16.mxu1 %v1496_v34  ;;  %v1518_v34 = vpack.c.bf16 %v262_v31, %v254_v4  ;;  %v168_v4 = vld [vmem:[%s3614_s1 + $0x370] sm:$0xff]  ;;  %v177_v31 = vld [vmem:[%s3614_s1 + $0x3b8] sm:$0xff] }
 0x195   :  { %v297_v18 = vld [vmem:[%s3614_s1 + $0x778] sm:$0xff] }
 0x197   :  { %1499 = vmatpush1.bf16.msra.mxu1 %v1498_v43  ;;  %v294_v43 = vld [vmem:[%s3614_s1 + $0x760] sm:$0xff] }
 0x198   :  { %1501 = vmatprep.subr.bf16.mxu1 %v1500_v46  ;;  %v1526_v46 = vpack.c.bf16 %v294_v43, %v286_v42  ;;  %v200_v42 = vld [vmem:[%s3614_s1 + $0x470] sm:$0xff]  ;;  %v209_v43 = vld [vmem:[%s3614_s1 + $0x4b8] sm:$0xff] }
 0x19b   :  { %1503 = vmatpush1.bf16.msra.mxu1 %v1502_v55  ;;  %v72_v55 = vld [vmem:[%s3614_s1 + $0x70] sm:$0xff] }
 0x19c   :  { %1505 = vmatprep.subr.bf16.mxu1 %v1504_v58  ;;  %v1534_v58 = vpack.c.bf16 %v72_v55, %v64_v54  ;;  %v232_v54 = vld [vmem:[%s3614_s1 + $0x570] sm:$0xff]  ;;  %v241_v55 = vld [vmem:[%s3614_s1 + $0x5b8] sm:$0xff] }
 0x19f   :  { %1507 = vmatpush1.bf16.msra.mxu1 %v1506_v9  ;;  %v104_v9 = vld [vmem:[%s3614_s1 + $0x170] sm:$0xff] }
 0x1a0   :  { %1509 = vmatprep.subr.bf16.mxu1 %v1508_v12  ;;  %v1542_v12 = vpack.c.bf16 %v104_v9, %v96_v8  ;;  %v264_v8 = vld [vmem:[%s3614_s1 + $0x670] sm:$0xff]  ;;  %v273_v9 = vld [vmem:[%s3614_s1 + $0x6b8] sm:$0xff] }
 0x1a3   :  { %1511 = vmatpush1.bf16.msra.mxu1 %v1510_v23  ;;  %v145_v23 = vld [vmem:[%s3614_s1 + $0x2b8] sm:$0xff] }
 0x1a4   :  { %1513 = vmatprep.subr.bf16.mxu1 %v1512_v25  ;;  %v1550_v25 = vpack.c.bf16 %v136_v22, %v128_v21  ;;  %v1552_v26 = vpack.c.bf16 %v153_v24, %v145_v23  ;;  %v296_v21 = vld [vmem:[%s3614_s1 + $0x770] sm:$0xff]  ;;  %v305_v22 = vld [vmem:[%s3614_s1 + $0x7b8] sm:$0xff] }
 0x1a5   :  { %v313_v23 = vld [vmem:[%s3614_s1 + $0x7f8] sm:$0xff] }
 0x1a7   :  { %1515 = vmatpush1.bf16.msra.mxu1 %v1514_v30  ;;  %v1556_v30 = vpack.c.bf16 %v169_v1, %v161_v0  ;;  %v316_v0 = vlaneseq }
 0x1a8   :  { %1517 = vmatprep.subr.bf16.mxu1 %v1516_v2  ;;  %v160_v2 = vld [vmem:[%s3614_s1 + $0x330] sm:$0xff] }
 0x1a9   :  { %v1558_v33 = vpack.c.bf16 %v168_v4, %v160_v2  ;;  %v2997_v1 = vshrl.u32 %v316_v0, 7 }
 0x1ab   :  { %1519 = vmatpush1.bf16.msra.mxu1 %v1518_v34  ;;  %v1560_v34 = vpack.c.bf16 %v185_v32, %v177_v31  ;;  %v322_v2 = vsub.s32 1, %v2997_v1 }
 0x1ac   :  { %1521 = vmatprep.subr.bf16.mxu1 %v1520_v35  ;;  %v176_v35 = vld [vmem:[%s3614_s1 + $0x3b0] sm:$0xff] }
 0x1ad   :  { %v1562_v39 = vpack.c.bf16 %v184_v36, %v176_v35 }
 0x1af   :  { %1523 = vmatpush1.bf16.msra.mxu1 %v1522_v40  ;;  %v1564_v40 = vpack.c.bf16 %v201_v38, %v193_v37 }
 0x1b0   :  { %1525 = vmatprep.subr.bf16.mxu1 %v1524_v41  ;;  %v192_v41 = vld [vmem:[%s3614_s1 + $0x430] sm:$0xff] }
 0x1b1   :  { %v1566_v45 = vpack.c.bf16 %v200_v42, %v192_v41 }
 0x1b3   :  { %1527 = vmatpush1.bf16.msra.mxu1 %v1526_v46  ;;  %v1568_v46 = vpack.c.bf16 %v217_v44, %v209_v43  ;;  %v808_v44 = vld [vmem:[%s3616_s3 + $0x200] sm:$0xff] }
 0x1b4   :  { %1529 = vmatprep.subr.bf16.mxu1 %v1528_v47  ;;  %v208_v47 = vld [vmem:[%s3614_s1 + $0x4b0] sm:$0xff] }
 0x1b5   :  { %v1570_v51 = vpack.c.bf16 %v216_v48, %v208_v47  ;;  %v813_v48 = vld [vmem:[%s3616_s3 + $0x228] sm:$0xff] }
 0x1b7   :  { %1531 = vmatpush1.bf16.msra.mxu1 %v1530_v52  ;;  %v1572_v52 = vpack.c.bf16 %v233_v50, %v225_v49  ;;  %v815_v49 = vld [vmem:[%s3616_s3 + $0x238] sm:$0xff] }
 0x1b8   :  { %1533 = vmatprep.subr.bf16.mxu1 %v1532_v53  ;;  %v224_v53 = vld [vmem:[%s3614_s1 + $0x530] sm:$0xff] }
 0x1b9   :  { %v1574_v57 = vpack.c.bf16 %v232_v54, %v224_v53 }
 0x1ba   :  { %575 = vmatmul.mubr.f32.vlgmr.msra.gmra.mrb[8].mxu1 %v2217_v7 }
 0x1bb   :  { %580 = vmatprep.mubr.f32.mxu1 %v2234_v15  ;;  %1535 = vmatpush1.bf16.msra.mxu1 %v1534_v58  ;;  %v1576_v58 = vpack.c.bf16 %v249_v56, %v241_v55 }
 0x1bc   :  { %1537 = vmatprep.subr.bf16.mxu1 %v1536_v59  ;;  %v240_v59 = vld [vmem:[%s3614_s1 + $0x5b0] sm:$0xff] }
 0x1bd   :  { %v1578_v63 = vpack.c.bf16 %v248_v60, %v240_v59  ;;  %v814_v59 = vld [vmem:[%s3616_s3 + $0x230] sm:$0xff] }
 0x1be   :  { %581 = vmatmul.mubr.f32.gmra.mrb[10].mxu1 %v2237_v16 }
 0x1bf   :  { %1539 = vmatpush1.bf16.msra.mxu1 %v1538_v3  ;;  %651 = vmatprep.mubr.f32.mxu1 %v2214_v6  ;;  %v1546_v6 = vpack.c.bf16 %v120_v17, %v112_v14  ;;  %v1580_v3 = vpack.c.bf16 %v265_v62, %v257_v61  ;;  %v280_v14 = vld [vmem:[%s3614_s1 + $0x6f0] sm:$0xff]  ;;  %v289_v17 = vld [vmem:[%s3614_s1 + $0x738] sm:$0xff]  ;;  %v817_v62 = vld [vmem:[%s3616_s3 + $0x248] sm:$0xff] }
 0x1c0   :  { %1541 = vmatprep.subr.bf16.mxu1 %v1540_v5  ;;  %v256_v5 = vld [vmem:[%s3614_s1 + $0x630] sm:$0xff] }
 0x1c1   :  { %v1582_v11 = vpack.c.bf16 %v264_v8, %v256_v5 }
 0x1c3   :  { %1543 = vmatpush1.bf16.msra.mxu1 %v1542_v12  ;;  %v1584_v12 = vpack.c.bf16 %v281_v10, %v273_v9 }
 0x1c4   :  { %1545 = vmatprep.subr.bf16.mxu1 %v1544_v13  ;;  %v272_v13 = vld [vmem:[%s3614_s1 + $0x6b0] sm:$0xff] }
 0x1c5   :  { %v1586_v19 = vpack.c.bf16 %v280_v14, %v272_v13  ;;  %v821_v13 = vld [vmem:[%s3616_s3 + $0x268] sm:$0xff]  ;;  %v823_v14 = vld [vmem:[%s3616_s3 + $0x278] sm:$0xff] }
 0x1c7   :  { %1547 = vmatpush1.bf16.msra.mxu1 %v1546_v6  ;;  %v1588_v6 = vpack.c.bf16 %v297_v18, %v289_v17  ;;  %v1672_v18 = vpack.c.bf16 %v823_v14, %v821_v13 }
 0x1c8   :  { %1549 = vmatprep.subr.bf16.mxu1 %v1548_v20  ;;  %v288_v20 = vld [vmem:[%s3614_s1 + $0x730] sm:$0xff] }
 0x1c9   :  { %v1590_v24 = vpack.c.bf16 %v296_v21, %v288_v20  ;;  %v825_v20 = vld [vmem:[%s3616_s3 + $0x288] sm:$0xff]  ;;  %v827_v21 = vld [vmem:[%s3616_s3 + $0x298] sm:$0xff] }
 0x1cb   :  { %1551 = vmatpush1.bf16.msra.mxu1 %v1550_v25  ;;  %v1592_v25 = vpack.c.bf16 %v313_v23, %v305_v22  ;;  %v1676_v23 = vpack.c.bf16 %v827_v21, %v825_v20  ;;  %v861_v21 = vld [vmem:[%s3616_s3 + $0x3a8] sm:$0xff] }
 0x1cc   :  { %1553 = vmatprep.subr.bf16.mxu1 %v1552_v26  ;;  %v304_v26 = vld [vmem:[%s3614_s1 + $0x7b0] sm:$0xff] }
 0x1cd   :  { %v1594_v28 = vpack.c.bf16 %v312_v27, %v304_v26  ;;  %v829_v26 = vld [vmem:[%s3616_s3 + $0x2a8] sm:$0xff]  ;;  %v831_v27 = vld [vmem:[%s3616_s3 + $0x2b8] sm:$0xff] }
 0x1ce   :  { %v1680_v0 = vpack.c.bf16 %v831_v27, %v829_v26 }
 0x1cf   :  { %1555 = vmatpush1.bf16.msra.mxu1 %v1554_v29  ;;  %v318_v29 = vsub.s32 0, %v2997_v1 }
 0x1d0   :  { %1557 = vmatprep.subr.bf16.mxu1 %v1556_v30  ;;  %v3003_v30 = vld [vmem:[%s3615_s2] sm:$0xff] }
 0x1d3   :  { %1559 = vmatpush1.bf16.msra.mxu1 %v1558_v33 }
 0x1d4   :  { %1561 = vmatprep.subr.bf16.mxu1 %v1560_v34 }
 0x1d7   :  { %1563 = vmatpush1.bf16.msra.mxu1 %v1562_v39 }
 0x1d8   :  { %1565 = vmatprep.subr.bf16.mxu1 %v1564_v40 }
 0x1db   :  { %1567 = vmatpush1.bf16.msra.mxu1 %v1566_v45  ;;  %v810_v45 = vld [vmem:[%s3616_s3 + $0x210] sm:$0xff] }
 0x1dc   :  { %1569 = vmatprep.subr.bf16.mxu1 %v1568_v46  ;;  %v1662_v53 = vpack.c.bf16 %v810_v45, %v808_v44  ;;  %v840_v45 = vld [vmem:[%s3616_s3 + $0x300] sm:$0xff] }
 0x1df   :  { %1571 = vmatpush1.bf16.msra.mxu1 %v1570_v51 }
 0x1e0   :  { %1573 = vmatprep.subr.bf16.mxu1 %v1572_v52 }
 0x1e3   :  { %1575 = vmatpush1.bf16.msra.mxu1 %v1574_v57  ;;  %v1664_v57 = vpack.c.bf16 %v815_v49, %v813_v48  ;;  %v847_v48 = vld [vmem:[%s3616_s3 + $0x338] sm:$0xff] }
 0x1e4   :  { %1577 = vmatprep.subr.bf16.mxu1 %v1576_v58  ;;  %v812_v58 = vld [vmem:[%s3616_s3 + $0x220] sm:$0xff] }
 0x1e5   :  { %v1666_v8 = vpack.c.bf16 %v814_v59, %v812_v58  ;;  %v850_v58 = vld [vmem:[%s3616_s3 + $0x350] sm:$0xff]  ;;  %v326_v59 = vsub.s32 2, %v2997_v1 }
 0x1e7   :  { %1579 = vmatpush1.bf16.msra.mxu1 %v1578_v63  ;;  %v819_v63 = vld [vmem:[%s3616_s3 + $0x258] sm:$0xff] }
 0x1e8   :  { %1581 = vmatprep.subr.bf16.mxu1 %v1580_v3  ;;  %v1668_v10 = vpack.c.bf16 %v819_v63, %v817_v62  ;;  %v330_v62 = vsub.s32 3, %v2997_v1 }
 0x1eb   :  { %1583 = vmatpush1.bf16.msra.mxu1 %v1582_v11  ;;  %v816_v11 = vld [vmem:[%s3616_s3 + $0x240] sm:$0xff] }
 0x1ec   :  { %1585 = vmatprep.subr.bf16.mxu1 %v1584_v12  ;;  %v818_v12 = vld [vmem:[%s3616_s3 + $0x250] sm:$0xff] }
 0x1ed   :  { %v1670_v17 = vpack.c.bf16 %v818_v12, %v816_v11  ;;  %v859_v11 = vld [vmem:[%s3616_s3 + $0x398] sm:$0xff]  ;;  %v331_v12 = vrot.slane %v3003_v30, %v330_v62 }
 0x1ef   :  { %1587 = vmatpush1.bf16.msra.mxu1 %v1586_v19  ;;  %v820_v19 = vld [vmem:[%s3616_s3 + $0x260] sm:$0xff] }
 0x1f0   :  { %1589 = vmatprep.subr.bf16.mxu1 %v1588_v6  ;;  %v822_v6 = vld [vmem:[%s3616_s3 + $0x270] sm:$0xff] }
 0x1f1   :  { %v1674_v22 = vpack.c.bf16 %v822_v6, %v820_v19  ;;  %v858_v19 = vld [vmem:[%s3616_s3 + $0x390] sm:$0xff] }
 0x1f3   :  { %1591 = vmatpush1.bf16.msra.mxu1 %v1590_v24  ;;  %v824_v24 = vld [vmem:[%s3616_s3 + $0x280] sm:$0xff] }
 0x1f4   :  { %1593 = vmatprep.subr.bf16.mxu1 %v1592_v25  ;;  %v826_v25 = vld [vmem:[%s3616_s3 + $0x290] sm:$0xff] }
 0x1f7   :  { %1595 = vmatpush1.bf16.msra.mxu1 %v1594_v28  ;;  %v1678_v28 = vpack.c.bf16 %v826_v25, %v824_v24 }
 0x1fa   :  { %652 = vmatmul.mubr.f32.vlgmr.msra.gmra.mrb[12].mxu1 %v2217_v7  ;;  %v319_v7 = vrot.slane %v3003_v30, %v318_v29 }
 0x1fb   :  { %657 = vmatprep.mubr.f32.mxu1 %v2234_v15  ;;  %v323_v15 = vrot.slane %v3003_v30, %v322_v2 }
 0x1fe   :  { %658 = vmatmul.mubr.f32.gmra.mrb[14].mxu1 %v2237_v16 }
 0x20d   :  { %v422_v16 = vpop.f32.mrb[0].mxu1 }
 0x20e   :  { %v423_v4 = vadd.f32 %v422_v16, %v319_v7  ;;  %v424_v31 = vpop.f32.mrb[1].mxu1  ;;  %v833_v16 = vld [vmem:[%s3616_s3 + $0x2c8] sm:$0xff] }
 0x20f   :  { %v425_v32 = vadd.f32 %v424_v31, %v323_v15 }
 0x210   :  { %v680_v33 = vmul.f32 0.70710677, %v423_v4  ;;  %v664_v50 = vmul.f32 0.5, %v423_v4  ;;  %v835_v4 = vld [vmem:[%s3616_s3 + $0x2d8] sm:$0xff] }
 0x211   :  { %v681_v34 = vmul.f32 0.70710677, %v425_v32  ;;  %v428_v35 = vpop.f32.mrb[2].mxu1  ;;  %v665_v46 = vmul.f32 0.5, %v425_v32  ;;  %v1684_v32 = vpack.c.bf16 %v835_v4, %v833_v16  ;;  %v865_v4 = vld [vmem:[%s3616_s3 + $0x3c8] sm:$0xff] }
 0x212   :  { %1875 = verf.f32 %v680_v33  ;;  %v429_v36 = vadd.f32 %v428_v35, %v319_v7  ;;  %v430_v37 = vpop.f32.mrb[3].mxu1  ;;  %v828_v7 = vld [vmem:[%s3616_s3 + $0x2a0] sm:$0xff]  ;;  %v837_v35 = vld [vmem:[%s3616_s3 + $0x2e8] sm:$0xff] }
 0x213   :  { %1877 = verf.f32 %v681_v34  ;;  %v431_v38 = vadd.f32 %v430_v37, %v323_v15  ;;  %v830_v15 = vld [vmem:[%s3616_s3 + $0x2b0] sm:$0xff]  ;;  %v832_v33 = vld [vmem:[%s3616_s3 + $0x2c0] sm:$0xff] }
 0x214   :  { %v688_v39 = vmul.f32 0.70710677, %v429_v36  ;;  %v672_v3 = vmul.f32 0.5, %v429_v36  ;;  %v1682_v31 = vpack.c.bf16 %v830_v15, %v828_v7  ;;  %v834_v34 = vld [vmem:[%s3616_s3 + $0x2d0] sm:$0xff]  ;;  %v839_v36 = vld [vmem:[%s3616_s3 + $0x2f8] sm:$0xff] }
 0x215   :  { %v689_v40 = vmul.f32 0.70710677, %v431_v38  ;;  %v673_v60 = vmul.f32 0.5, %v431_v38  ;;  %v1686_v37 = vpack.c.bf16 %v834_v34, %v832_v33  ;;  %v1688_v38 = vpack.c.bf16 %v839_v36, %v837_v35  ;;  %v862_v7 = vld [vmem:[%s3616_s3 + $0x3b0] sm:$0xff] }
 0x216   :  { %1879 = verf.f32 %v688_v39  ;;  %v836_v39 = vld [vmem:[%s3616_s3 + $0x2e0] sm:$0xff] }
 0x217   :  { %1881 = verf.f32 %v689_v40  ;;  %v838_v40 = vld [vmem:[%s3616_s3 + $0x2f0] sm:$0xff] }
 0x21c   :  { %v1876_v41 = vpop.eup %1875 }
 0x21d   :  { %v1878_v42 = vpop.eup %1877  ;;  %v712_v43 = vadd.f32 1.0, %v1876_v41  ;;  %v841_v41 = vld [vmem:[%s3616_s3 + $0x308] sm:$0xff] }
 0x21e   :  { %v713_v47 = vadd.f32 1.0, %v1878_v42  ;;  %v843_v42 = vld [vmem:[%s3616_s3 + $0x318] sm:$0xff] }
 0x21f   :  { %v728_v56 = vmul.f32 %v712_v43, %v664_v50  ;;  %v1690_v43 = vpack.c.bf16 %v838_v40, %v836_v39  ;;  %v1692_v44 = vpack.c.bf16 %v843_v42, %v841_v41  ;;  %v869_v39 = vld [vmem:[%s3616_s3 + $0x3e8] sm:$0xff]  ;;  %v871_v40 = vld [vmem:[%s3616_s3 + $0x3f8] sm:$0xff] }
 0x220   :  { %v1880_v51 = vpop.eup %1879  ;;  %v729_v52 = vmul.f32 %v713_v47, %v665_v46  ;;  %v842_v46 = vld [vmem:[%s3616_s3 + $0x310] sm:$0xff]  ;;  %v845_v47 = vld [vmem:[%s3616_s3 + $0x328] sm:$0xff]  ;;  %v1720_v42 = vpack.c.bf16 %v871_v40, %v869_v39 }
 0x221   :  { %v1882_v54 = vpop.eup %1881  ;;  %v720_v55 = vadd.f32 1.0, %v1880_v51  ;;  %v1694_v49 = vpack.c.bf16 %v842_v46, %v840_v45  ;;  %v1696_v50 = vpack.c.bf16 %v847_v48, %v845_v47  ;;  %v844_v51 = vld [vmem:[%s3616_s3 + $0x320] sm:$0xff]  ;;  %v873_v45 = vld [vmem:[%s3616_s3 + $0x408] sm:$0xff]  ;;  %v875_v46 = vld [vmem:[%s3616_s3 + $0x418] sm:$0xff] }
 0x222   :  { %v721_v61 = vadd.f32 1.0, %v1882_v54  ;;  %1076 = vmatprep.mubr.f32.mxu0 %v729_v52  ;;  %v846_v52 = vld [vmem:[%s3616_s3 + $0x330] sm:$0xff]  ;;  %v851_v54 = vld [vmem:[%s3616_s3 + $0x358] sm:$0xff] }
 0x223   :  { %1077 = vmatmul.mubr.f32.vlgmr.msra.gmra.mrb[0].mxu0 %v728_v56  ;;  %v736_v9 = vmul.f32 %v720_v55, %v672_v3  ;;  %v1698_v55 = vpack.c.bf16 %v846_v52, %v844_v51  ;;  %v1724_v51 = vpack.c.bf16 %v875_v46, %v873_v45  ;;  %v872_v52 = vld [vmem:[%s3616_s3 + $0x400] sm:$0xff] }
 0x224   :  { %1663 = vmatpush1.bf16.msra.mxu0 %v1662_v53  ;;  %v737_v5 = vmul.f32 %v721_v61, %v673_v60  ;;  %v849_v53 = vld [vmem:[%s3616_s3 + $0x348] sm:$0xff]  ;;  %v855_v61 = vld [vmem:[%s3616_s3 + $0x378] sm:$0xff] }
 0x225   :  { %1665 = vmatprep.subr.bf16.mxu0 %v1664_v57  ;;  %v1700_v56 = vpack.c.bf16 %v851_v54, %v849_v53  ;;  %v848_v57 = vld [vmem:[%s3616_s3 + $0x340] sm:$0xff]  ;;  %v853_v60 = vld [vmem:[%s3616_s3 + $0x368] sm:$0xff]  ;;  %v874_v53 = vld [vmem:[%s3616_s3 + $0x410] sm:$0xff] }
 0x226   :  { %1082 = vmatprep.mubr.f32.mxu0 %v737_v5  ;;  %v1702_v63 = vpack.c.bf16 %v850_v58, %v848_v57  ;;  %v1704_v3 = vpack.c.bf16 %v855_v61, %v853_v60  ;;  %v852_v5 = vld [vmem:[%s3616_s3 + $0x360] sm:$0xff]  ;;  %v879_v57 = vld [vmem:[%s3616_s3 + $0x438] sm:$0xff]  ;;  %v1726_v61 = vpack.c.bf16 %v874_v53, %v872_v52 }
 0x227   :  { %1083 = vmatmul.mubr.f32.gmra.mrb[2].mxu0 %v736_v9  ;;  %v327_v9 = vrot.slane %v3003_v30, %v326_v59  ;;  %v904_v53 = vld [vmem:[%s3616_s3 + $0x500] sm:$0xff] }
 0x228   :  { %1667 = vmatpush1.bf16.msra.mxu0 %v1666_v8  ;;  %v854_v8 = vld [vmem:[%s3616_s3 + $0x370] sm:$0xff] }
 0x229   :  { %1669 = vmatprep.subr.bf16.mxu0 %v1668_v10  ;;  %v857_v10 = vld [vmem:[%s3616_s3 + $0x388] sm:$0xff]  ;;  %v1706_v13 = vpack.c.bf16 %v854_v8, %v852_v5  ;;  %v876_v8 = vld [vmem:[%s3616_s3 + $0x420] sm:$0xff] }
 0x22c   :  { %1671 = vmatpush1.bf16.msra.mxu0 %v1670_v17  ;;  %v1708_v17 = vpack.c.bf16 %v859_v11, %v857_v10 }
 0x22d   :  { %1673 = vmatprep.subr.bf16.mxu0 %v1672_v18  ;;  %v856_v18 = vld [vmem:[%s3616_s3 + $0x380] sm:$0xff] }
 0x22e   :  { %v1710_v25 = vpack.c.bf16 %v858_v19, %v856_v18 }
 0x230   :  { %1675 = vmatpush1.bf16.msra.mxu0 %v1674_v22  ;;  %v863_v22 = vld [vmem:[%s3616_s3 + $0x3b8] sm:$0xff] }
 0x231   :  { %1677 = vmatprep.subr.bf16.mxu0 %v1676_v23 }
 0x234   :  { %1679 = vmatpush1.bf16.msra.mxu0 %v1678_v28  ;;  %v1712_v28 = vpack.c.bf16 %v863_v22, %v861_v21  ;;  %v882_v21 = vld [vmem:[%s3616_s3 + $0x450] sm:$0xff]  ;;  %v885_v22 = vld [vmem:[%s3616_s3 + $0x468] sm:$0xff] }
 0x235   :  { %1681 = vmatprep.subr.bf16.mxu0 %v1680_v0  ;;  %v860_v0 = vld [vmem:[%s3616_s3 + $0x3a0] sm:$0xff] }
 0x236   :  { %v1714_v34 = vpack.c.bf16 %v862_v7, %v860_v0  ;;  %v891_v0 = vld [vmem:[%s3616_s3 + $0x498] sm:$0xff] }
 0x238   :  { %1683 = vmatpush1.bf16.msra.mxu0 %v1682_v31  ;;  %v867_v31 = vld [vmem:[%s3616_s3 + $0x3d8] sm:$0xff] }
 0x239   :  { %1685 = vmatprep.subr.bf16.mxu0 %v1684_v32  ;;  %v1716_v36 = vpack.c.bf16 %v867_v31, %v865_v4  ;;  %v890_v4 = vld [vmem:[%s3616_s3 + $0x490] sm:$0xff]  ;;  %v893_v31 = vld [vmem:[%s3616_s3 + $0x4a8] sm:$0xff] }
 0x23c   :  { %1687 = vmatpush1.bf16.msra.mxu0 %v1686_v37  ;;  %v864_v37 = vld [vmem:[%s3616_s3 + $0x3c0] sm:$0xff] }
 0x23d   :  { %1689 = vmatprep.subr.bf16.mxu0 %v1688_v38  ;;  %v866_v38 = vld [vmem:[%s3616_s3 + $0x3d0] sm:$0xff] }
 0x23e   :  { %v1718_v41 = vpack.c.bf16 %v866_v38, %v864_v37  ;;  %v897_v37 = vld [vmem:[%s3616_s3 + $0x4c8] sm:$0xff]  ;;  %v899_v38 = vld [vmem:[%s3616_s3 + $0x4d8] sm:$0xff] }
 0x23f   :  { %v1748_v40 = vpack.c.bf16 %v899_v38, %v897_v37  ;;  %v929_v38 = vld [vmem:[%s3616_s3 + $0x5c8] sm:$0xff] }
 0x240   :  { %1691 = vmatpush1.bf16.msra.mxu0 %v1690_v43  ;;  %v868_v43 = vld [vmem:[%s3616_s3 + $0x3e0] sm:$0xff] }
 0x241   :  { %1693 = vmatprep.subr.bf16.mxu0 %v1692_v44  ;;  %v870_v44 = vld [vmem:[%s3616_s3 + $0x3f0] sm:$0xff] }
 0x242   :  { %v1722_v48 = vpack.c.bf16 %v870_v44, %v868_v43  ;;  %v901_v43 = vld [vmem:[%s3616_s3 + $0x4e8] sm:$0xff]  ;;  %v903_v44 = vld [vmem:[%s3616_s3 + $0x4f8] sm:$0xff] }
 0x243   :  { %v1752_v46 = vpack.c.bf16 %v903_v44, %v901_v43 }
 0x244   :  { %1695 = vmatpush1.bf16.msra.mxu0 %v1694_v49 }
 0x245   :  { %1697 = vmatprep.subr.bf16.mxu0 %v1696_v50 }
 0x248   :  { %1699 = vmatpush1.bf16.msra.mxu0 %v1698_v55 }
 0x249   :  { %1701 = vmatprep.subr.bf16.mxu0 %v1700_v56  ;;  %v877_v56 = vld [vmem:[%s3616_s3 + $0x428] sm:$0xff] }
 0x24a   :  { %v1728_v5 = vpack.c.bf16 %v879_v57, %v877_v56  ;;  %v911_v56 = vld [vmem:[%s3616_s3 + $0x538] sm:$0xff] }
 0x24c   :  { %1703 = vmatpush1.bf16.msra.mxu0 %v1702_v63 }
 0x24d   :  { %v499_v14 = vpop.f32.mrb[4].mxu1  ;;  %1705 = vmatprep.subr.bf16.mxu0 %v1704_v3 }
 0x24e   :  { %v500_v6 = vadd.f32 %v499_v14, %v327_v9  ;;  %v501_v20 = vpop.f32.mrb[5].mxu1 }
 0x24f   :  { %v502_v23 = vadd.f32 %v501_v20, %v331_v12  ;;  %v880_v20 = vld [vmem:[%s3616_s3 + $0x440] sm:$0xff] }
 0x250   :  { %v682_v24 = vmul.f32 0.70710677, %v500_v6  ;;  %1707 = vmatpush1.bf16.msra.mxu0 %v1706_v13  ;;  %v666_v58 = vmul.f32 0.5, %v500_v6  ;;  %v883_v13 = vld [vmem:[%s3616_s3 + $0x458] sm:$0xff] }
 0x251   :  { %v683_v26 = vmul.f32 0.70710677, %v502_v23  ;;  %v505_v27 = vpop.f32.mrb[6].mxu1  ;;  %1709 = vmatprep.subr.bf16.mxu0 %v1708_v17  ;;  %v667_v54 = vmul.f32 0.5, %v502_v23  ;;  %v887_v23 = vld [vmem:[%s3616_s3 + $0x478] sm:$0xff] }
 0x252   :  { %1883 = verf.f32 %v682_v24  ;;  %v506_v15 = vadd.f32 %v505_v27, %v327_v9  ;;  %v507_v16 = vpop.f32.mrb[7].mxu1  ;;  %v878_v9 = vld [vmem:[%s3616_s3 + $0x430] sm:$0xff]  ;;  %v1734_v24 = vpack.c.bf16 %v882_v21, %v880_v20  ;;  %v923_v20 = vld [vmem:[%s3616_s3 + $0x598] sm:$0xff] }
 0x253   :  { %1885 = verf.f32 %v683_v26  ;;  %v508_v32 = vadd.f32 %v507_v16, %v331_v12  ;;  %v881_v12 = vld [vmem:[%s3616_s3 + $0x448] sm:$0xff]  ;;  %v1730_v18 = vpack.c.bf16 %v878_v9, %v876_v8  ;;  %v884_v26 = vld [vmem:[%s3616_s3 + $0x460] sm:$0xff]  ;;  %v886_v27 = vld [vmem:[%s3616_s3 + $0x470] sm:$0xff]  ;;  %v334_v9 = vsub.s32 4, %v2997_v1 }
 0x254   :  { %v690_v33 = vmul.f32 0.70710677, %v506_v15  ;;  %1711 = vmatpush1.bf16.msra.mxu0 %v1710_v25  ;;  %v674_v14 = vmul.f32 0.5, %v506_v15  ;;  %v1732_v6 = vpack.c.bf16 %v883_v13, %v881_v12  ;;  %v1736_v25 = vpack.c.bf16 %v887_v23, %v885_v22  ;;  %v888_v16 = vld [vmem:[%s3616_s3 + $0x480] sm:$0xff]  ;;  %v914_v8 = vld [vmem:[%s3616_s3 + $0x550] sm:$0xff] }
 0x255   :  { %v691_v35 = vmul.f32 0.70710677, %v508_v32  ;;  %1713 = vmatprep.subr.bf16.mxu0 %v1712_v28  ;;  %v675_v10 = vmul.f32 0.5, %v508_v32  ;;  %v889_v28 = vld [vmem:[%s3616_s3 + $0x488] sm:$0xff]  ;;  %v1738_v7 = vpack.c.bf16 %v886_v27, %v884_v26  ;;  %v895_v32 = vld [vmem:[%s3616_s3 + $0x4b8] sm:$0xff]  ;;  %v338_v12 = vsub.s32 5, %v2997_v1 }
 0x256   :  { %1887 = verf.f32 %v690_v33  ;;  %v1740_v15 = vpack.c.bf16 %v891_v0, %v889_v28  ;;  %v1742_v33 = vpack.c.bf16 %v890_v4, %v888_v16  ;;  %v922_v26 = vld [vmem:[%s3616_s3 + $0x590] sm:$0xff]  ;;  %v925_v0 = vld [vmem:[%s3616_s3 + $0x5a8] sm:$0xff] }
 0x257   :  { %1889 = verf.f32 %v691_v35  ;;  %v892_v35 = vld [vmem:[%s3616_s3 + $0x4a0] sm:$0xff]  ;;  %v339_v21 = vrot.slane %v3003_v30, %v338_v12 }
 0x258   :  { %1715 = vmatpush1.bf16.msra.mxu0 %v1714_v34  ;;  %v1744_v34 = vpack.c.bf16 %v895_v32, %v893_v31 }
 0x259   :  { %1717 = vmatprep.subr.bf16.mxu0 %v1716_v36  ;;  %v894_v36 = vld [vmem:[%s3616_s3 + $0x4b0] sm:$0xff] }
 0x25a   :  { %v1746_v39 = vpack.c.bf16 %v894_v36, %v892_v35  ;;  %v926_v35 = vld [vmem:[%s3616_s3 + $0x5b0] sm:$0xff] }
 0x25c   :  { %v1884_v47 = vpop.eup %1883  ;;  %1719 = vmatpush1.bf16.msra.mxu0 %v1718_v41  ;;  %v896_v41 = vld [vmem:[%s3616_s3 + $0x4c0] sm:$0xff] }
 0x25d   :  { %v1886_v49 = vpop.eup %1885  ;;  %v714_v50 = vadd.f32 1.0, %v1884_v47  ;;  %1721 = vmatprep.subr.bf16.mxu0 %v1720_v42  ;;  %v898_v42 = vld [vmem:[%s3616_s3 + $0x4d0] sm:$0xff]  ;;  %v900_v47 = vld [vmem:[%s3616_s3 + $0x4e0] sm:$0xff] }
 0x25e   :  { %v715_v55 = vadd.f32 1.0, %v1886_v49  ;;  %v1750_v45 = vpack.c.bf16 %v898_v42, %v896_v41  ;;  %v905_v49 = vld [vmem:[%s3616_s3 + $0x508] sm:$0xff] }
 0x25f   :  { %v730_v63 = vmul.f32 %v714_v50, %v666_v58  ;;  %v907_v50 = vld [vmem:[%s3616_s3 + $0x518] sm:$0xff] }
 0x260   :  { %v1888_v59 = vpop.eup %1887  ;;  %1723 = vmatpush1.bf16.msra.mxu0 %v1722_v48  ;;  %v731_v60 = vmul.f32 %v715_v55, %v667_v54  ;;  %v902_v48 = vld [vmem:[%s3616_s3 + $0x4f0] sm:$0xff]  ;;  %v1756_v52 = vpack.c.bf16 %v907_v50, %v905_v49  ;;  %v909_v55 = vld [vmem:[%s3616_s3 + $0x528] sm:$0xff] }
 0x261   :  { %v1890_v62 = vpop.eup %1889  ;;  %v722_v3 = vadd.f32 1.0, %v1888_v59  ;;  %1725 = vmatprep.subr.bf16.mxu0 %v1724_v51  ;;  %v1754_v51 = vpack.c.bf16 %v902_v48, %v900_v47  ;;  %v906_v54 = vld [vmem:[%s3616_s3 + $0x510] sm:$0xff]  ;;  %v1760_v58 = vpack.c.bf16 %v911_v56, %v909_v55  ;;  %v908_v59 = vld [vmem:[%s3616_s3 + $0x520] sm:$0xff]  ;;  %v933_v47 = vld [vmem:[%s3616_s3 + $0x5e8] sm:$0xff] }
 0x262   :  { %v723_v11 = vadd.f32 1.0, %v1890_v62  ;;  %1153 = vmatprep.mubr.f32.mxu0 %v731_v60  ;;  %v1758_v57 = vpack.c.bf16 %v906_v54, %v904_v53  ;;  %v910_v60 = vld [vmem:[%s3616_s3 + $0x530] sm:$0xff]  ;;  %v915_v62 = vld [vmem:[%s3616_s3 + $0x558] sm:$0xff]  ;;  %v937_v53 = vld [vmem:[%s3616_s3 + $0x608] sm:$0xff] }
 0x263   :  { %1154 = vmatmul.mubr.f32.vlgmr.msra.gmra.mrb[0].mxu0 %v730_v63  ;;  %v738_v19 = vmul.f32 %v722_v3, %v674_v14  ;;  %v1762_v63 = vpack.c.bf16 %v910_v60, %v908_v59  ;;  %v935_v48 = vld [vmem:[%s3616_s3 + $0x5f8] sm:$0xff]  ;;  %v936_v60 = vld [vmem:[%s3616_s3 + $0x600] sm:$0xff] }
 0x264   :  { %1727 = vmatpush1.bf16.msra.mxu0 %v1726_v61  ;;  %v739_v17 = vmul.f32 %v723_v11, %v675_v10  ;;  %v913_v61 = vld [vmem:[%s3616_s3 + $0x548] sm:$0xff]  ;;  %v919_v11 = vld [vmem:[%s3616_s3 + $0x578] sm:$0xff]  ;;  %v1784_v50 = vpack.c.bf16 %v935_v48, %v933_v47 }
 0x265   :  { %1729 = vmatprep.subr.bf16.mxu0 %v1728_v5  ;;  %v1764_v3 = vpack.c.bf16 %v915_v62, %v913_v61  ;;  %v912_v5 = vld [vmem:[%s3616_s3 + $0x540] sm:$0xff]  ;;  %v917_v10 = vld [vmem:[%s3616_s3 + $0x568] sm:$0xff]  ;;  %v939_v54 = vld [vmem:[%s3616_s3 + $0x618] sm:$0xff] }
 0x266   :  { %1159 = vmatprep.mubr.f32.mxu0 %v739_v17  ;;  %v1766_v13 = vpack.c.bf16 %v914_v8, %v912_v5  ;;  %v1768_v14 = vpack.c.bf16 %v919_v11, %v917_v10  ;;  %v916_v17 = vld [vmem:[%s3616_s3 + $0x560] sm:$0xff]  ;;  %v1788_v59 = vpack.c.bf16 %v939_v54, %v937_v53  ;;  %v938_v61 = vld [vmem:[%s3616_s3 + $0x610] sm:$0xff]  ;;  %v943_v5 = vld [vmem:[%s3616_s3 + $0x638] sm:$0xff] }
 0x267   :  { %1160 = vmatmul.mubr.f32.gmra.mrb[2].mxu0 %v738_v19  ;;  %v335_v19 = vrot.slane %v3003_v30, %v334_v9  ;;  %v1790_v11 = vpack.c.bf16 %v938_v61, %v936_v60  ;;  %v968_v61 = vld [vmem:[%s3616_s3 + $0x700] sm:$0xff] }
 0x268   :  { %1731 = vmatpush1.bf16.msra.mxu0 %v1730_v18  ;;  %v918_v18 = vld [vmem:[%s3616_s3 + $0x570] sm:$0xff] }
 0x269   :  { %1733 = vmatprep.subr.bf16.mxu0 %v1732_v6  ;;  %v921_v6 = vld [vmem:[%s3616_s3 + $0x588] sm:$0xff]  ;;  %v1770_v22 = vpack.c.bf16 %v918_v18, %v916_v17  ;;  %v940_v18 = vld [vmem:[%s3616_s3 + $0x620] sm:$0xff] }
 0x26c   :  { %1735 = vmatpush1.bf16.msra.mxu0 %v1734_v24  ;;  %v1772_v24 = vpack.c.bf16 %v923_v20, %v921_v6 }
 0x26d   :  { %1737 = vmatprep.subr.bf16.mxu0 %v1736_v25  ;;  %v920_v25 = vld [vmem:[%s3616_s3 + $0x580] sm:$0xff] }
 0x26e   :  { %v1774_v4 = vpack.c.bf16 %v922_v26, %v920_v25 }
 0x270   :  { %1739 = vmatpush1.bf16.msra.mxu0 %v1738_v7  ;;  %v927_v7 = vld [vmem:[%s3616_s3 + $0x5b8] sm:$0xff] }
 0x271   :  { %1741 = vmatprep.subr.bf16.mxu0 %v1740_v15 }
 0x274   :  { %1743 = vmatpush1.bf16.msra.mxu0 %v1742_v33  ;;  %v1776_v33 = vpack.c.bf16 %v927_v7, %v925_v0  ;;  %v946_v0 = vld [vmem:[%s3616_s3 + $0x650] sm:$0xff]  ;;  %v949_v7 = vld [vmem:[%s3616_s3 + $0x668] sm:$0xff] }
 0x275   :  { %1745 = vmatprep.subr.bf16.mxu0 %v1744_v34  ;;  %v924_v34 = vld [vmem:[%s3616_s3 + $0x5a0] sm:$0xff] }
 0x276   :  { %v1778_v42 = vpack.c.bf16 %v926_v35, %v924_v34  ;;  %v955_v34 = vld [vmem:[%s3616_s3 + $0x698] sm:$0xff] }
 0x278   :  { %1747 = vmatpush1.bf16.msra.mxu0 %v1746_v39  ;;  %v931_v39 = vld [vmem:[%s3616_s3 + $0x5d8] sm:$0xff] }
 0x279   :  { %1749 = vmatprep.subr.bf16.mxu0 %v1748_v40  ;;  %v1780_v44 = vpack.c.bf16 %v931_v39, %v929_v38  ;;  %v954_v38 = vld [vmem:[%s3616_s3 + $0x690] sm:$0xff]  ;;  %v957_v39 = vld [vmem:[%s3616_s3 + $0x6a8] sm:$0xff] }
 0x27c   :  { %1751 = vmatpush1.bf16.msra.mxu0 %v1750_v45  ;;  %v928_v45 = vld [vmem:[%s3616_s3 + $0x5c0] sm:$0xff] }
 0x27d   :  { %1753 = vmatprep.subr.bf16.mxu0 %v1752_v46  ;;  %v930_v46 = vld [vmem:[%s3616_s3 + $0x5d0] sm:$0xff] }
 0x27e   :  { %v1782_v49 = vpack.c.bf16 %v930_v46, %v928_v45  ;;  %v961_v45 = vld [vmem:[%s3616_s3 + $0x6c8] sm:$0xff]  ;;  %v963_v46 = vld [vmem:[%s3616_s3 + $0x6d8] sm:$0xff] }
 0x27f   :  { %v1812_v48 = vpack.c.bf16 %v963_v46, %v961_v45  ;;  %v993_v45 = vld [vmem:[%s3616_s3 + $0x7c8] sm:$0xff]  ;;  %v995_v46 = vld [vmem:[%s3616_s3 + $0x7d8] sm:$0xff] }
 0x280   :  { %1755 = vmatpush1.bf16.msra.mxu0 %v1754_v51  ;;  %v932_v51 = vld [vmem:[%s3616_s3 + $0x5e0] sm:$0xff] }
 0x281   :  { %1757 = vmatprep.subr.bf16.mxu0 %v1756_v52  ;;  %v934_v52 = vld [vmem:[%s3616_s3 + $0x5f0] sm:$0xff] }
 0x282   :  { %v1786_v56 = vpack.c.bf16 %v934_v52, %v932_v51  ;;  %v965_v51 = vld [vmem:[%s3616_s3 + $0x6e8] sm:$0xff]  ;;  %v967_v52 = vld [vmem:[%s3616_s3 + $0x6f8] sm:$0xff] }
 0x283   :  { %v1816_v54 = vpack.c.bf16 %v967_v52, %v965_v51  ;;  %v1844_v51 = vpack.c.bf16 %v995_v46, %v993_v45  ;;  %v992_v52 = vld [vmem:[%s3616_s3 + $0x7c0] sm:$0xff] }
 0x284   :  { %1759 = vmatpush1.bf16.msra.mxu0 %v1758_v57 }
 0x285   :  { %1761 = vmatprep.subr.bf16.mxu0 %v1760_v58 }
 0x288   :  { %1763 = vmatpush1.bf16.msra.mxu0 %v1762_v63 }
 0x289   :  { %1765 = vmatprep.subr.bf16.mxu0 %v1764_v3  ;;  %v941_v3 = vld [vmem:[%s3616_s3 + $0x628] sm:$0xff] }
 0x28a   :  { %v1792_v17 = vpack.c.bf16 %v943_v5, %v941_v3  ;;  %v975_v3 = vld [vmem:[%s3616_s3 + $0x738] sm:$0xff] }
 0x28c   :  { %1767 = vmatpush1.bf16.msra.mxu0 %v1766_v13 }
 0x28d   :  { %v576_v23 = vpop.f32.mrb[8].mxu1  ;;  %1769 = vmatprep.subr.bf16.mxu0 %v1768_v14 }
 0x28e   :  { %v577_v27 = vadd.f32 %v576_v23, %v335_v19  ;;  %v578_v28 = vpop.f32.mrb[9].mxu1 }
 0x28f   :  { %v579_v15 = vadd.f32 %v578_v28, %v339_v21  ;;  %v944_v28 = vld [vmem:[%s3616_s3 + $0x640] sm:$0xff] }
 0x290   :  { %v684_v16 = vmul.f32 0.70710677, %v577_v27  ;;  %1771 = vmatpush1.bf16.msra.mxu0 %v1770_v22  ;;  %v668_v8 = vmul.f32 0.5, %v577_v27  ;;  %v947_v22 = vld [vmem:[%s3616_s3 + $0x658] sm:$0xff] }
 0x291   :  { %v685_v31 = vmul.f32 0.70710677, %v579_v15  ;;  %v582_v32 = vpop.f32.mrb[10].mxu1  ;;  %1773 = vmatprep.subr.bf16.mxu0 %v1772_v24  ;;  %v669_v62 = vmul.f32 0.5, %v579_v15  ;;  %v951_v15 = vld [vmem:[%s3616_s3 + $0x678] sm:$0xff] }
 0x292   :  { %1891 = verf.f32 %v684_v16  ;;  %v583_v36 = vadd.f32 %v582_v32, %v335_v19  ;;  %v584_v37 = vpop.f32.mrb[11].mxu1  ;;  %v942_v19 = vld [vmem:[%s3616_s3 + $0x630] sm:$0xff]  ;;  %v1798_v16 = vpack.c.bf16 %v946_v0, %v944_v28  ;;  %v987_v28 = vld [vmem:[%s3616_s3 + $0x798] sm:$0xff] }
 0x293   :  { %1893 = verf.f32 %v685_v31  ;;  %v585_v40 = vadd.f32 %v584_v37, %v339_v21  ;;  %v945_v21 = vld [vmem:[%s3616_s3 + $0x648] sm:$0xff]  ;;  %v1794_v25 = vpack.c.bf16 %v942_v19, %v940_v18  ;;  %v948_v31 = vld [vmem:[%s3616_s3 + $0x660] sm:$0xff]  ;;  %v950_v32 = vld [vmem:[%s3616_s3 + $0x670] sm:$0xff]  ;;  %v342_v19 = vsub.s32 6, %v2997_v1 }
 0x294   :  { %v692_v41 = vmul.f32 0.70710677, %v583_v36  ;;  %1775 = vmatpush1.bf16.msra.mxu0 %v1774_v4  ;;  %v676_v23 = vmul.f32 0.5, %v583_v36  ;;  %v1796_v27 = vpack.c.bf16 %v947_v22, %v945_v21  ;;  %v1800_v4 = vpack.c.bf16 %v951_v15, %v949_v7  ;;  %v952_v37 = vld [vmem:[%s3616_s3 + $0x680] sm:$0xff]  ;;  %v978_v18 = vld [vmem:[%s3616_s3 + $0x750] sm:$0xff] }
 0x295   :  { %v693_v43 = vmul.f32 0.70710677, %v585_v40  ;;  %1777 = vmatprep.subr.bf16.mxu0 %v1776_v33  ;;  %v677_v6 = vmul.f32 0.5, %v585_v40  ;;  %v953_v33 = vld [vmem:[%s3616_s3 + $0x688] sm:$0xff]  ;;  %v1802_v35 = vpack.c.bf16 %v950_v32, %v948_v31  ;;  %v959_v40 = vld [vmem:[%s3616_s3 + $0x6b8] sm:$0xff]  ;;  %v346_v21 = vsub.s32 7, %v2997_v1 }
 0x296   :  { %1895 = verf.f32 %v692_v41  ;;  %v1804_v36 = vpack.c.bf16 %v955_v34, %v953_v33  ;;  %v1806_v41 = vpack.c.bf16 %v954_v38, %v952_v37  ;;  %v986_v31 = vld [vmem:[%s3616_s3 + $0x790] sm:$0xff]  ;;  %v989_v34 = vld [vmem:[%s3616_s3 + $0x7a8] sm:$0xff] }
 0x297   :  { %1897 = verf.f32 %v693_v43  ;;  %v956_v43 = vld [vmem:[%s3616_s3 + $0x6a0] sm:$0xff]  ;;  %v347_v0 = vrot.slane %v3003_v30, %v346_v21 }
 0x298   :  { %1779 = vmatpush1.bf16.msra.mxu0 %v1778_v42  ;;  %v1808_v42 = vpack.c.bf16 %v959_v40, %v957_v39 }
 0x299   :  { %1781 = vmatprep.subr.bf16.mxu0 %v1780_v44  ;;  %v958_v44 = vld [vmem:[%s3616_s3 + $0x6b0] sm:$0xff] }
 0x29a   :  { %v1810_v47 = vpack.c.bf16 %v958_v44, %v956_v43 }
 0x29c   :  { %v1892_v55 = vpop.eup %1891  ;;  %1783 = vmatpush1.bf16.msra.mxu0 %v1782_v49  ;;  %v960_v49 = vld [vmem:[%s3616_s3 + $0x6c0] sm:$0xff] }
 0x29d   :  { %v1894_v57 = vpop.eup %1893  ;;  %v716_v58 = vadd.f32 1.0, %v1892_v55  ;;  %1785 = vmatprep.subr.bf16.mxu0 %v1784_v50  ;;  %v962_v50 = vld [vmem:[%s3616_s3 + $0x6d0] sm:$0xff]  ;;  %v964_v55 = vld [vmem:[%s3616_s3 + $0x6e0] sm:$0xff] }
 0x29e   :  { %v717_v63 = vadd.f32 1.0, %v1894_v57  ;;  %v1814_v53 = vpack.c.bf16 %v962_v50, %v960_v49  ;;  %v969_v57 = vld [vmem:[%s3616_s3 + $0x708] sm:$0xff] }
 0x29f   :  { %v732_v13 = vmul.f32 %v716_v58, %v668_v8  ;;  %v971_v58 = vld [vmem:[%s3616_s3 + $0x718] sm:$0xff] }
 0x2a0   :  { %v1896_v9 = vpop.eup %1895  ;;  %1787 = vmatpush1.bf16.msra.mxu0 %v1786_v56  ;;  %v733_v10 = vmul.f32 %v717_v63, %v669_v62  ;;  %v966_v56 = vld [vmem:[%s3616_s3 + $0x6f0] sm:$0xff]  ;;  %v1820_v60 = vpack.c.bf16 %v971_v58, %v969_v57  ;;  %v973_v63 = vld [vmem:[%s3616_s3 + $0x728] sm:$0xff]  ;;  %v996_v58 = vld [vmem:[%s3616_s3 + $0x7e0] sm:$0xff] }
 0x2a1   :  { %v1898_v12 = vpop.eup %1897  ;;  %v724_v14 = vadd.f32 1.0, %v1896_v9  ;;  %1789 = vmatprep.subr.bf16.mxu0 %v1788_v59  ;;  %v1818_v59 = vpack.c.bf16 %v966_v56, %v964_v55  ;;  %v970_v62 = vld [vmem:[%s3616_s3 + $0x710] sm:$0xff]  ;;  %v1824_v8 = vpack.c.bf16 %v975_v3, %v973_v63  ;;  %v972_v9 = vld [vmem:[%s3616_s3 + $0x720] sm:$0xff]  ;;  %v999_v55 = vld [vmem:[%s3616_s3 + $0x7f8] sm:$0xff] }
 0x2a2   :  { %v725_v20 = vadd.f32 1.0, %v1898_v12  ;;  %1230 = vmatprep.mubr.f32.mxu0 %v733_v10  ;;  %v1822_v5 = vpack.c.bf16 %v970_v62, %v968_v61  ;;  %v974_v10 = vld [vmem:[%s3616_s3 + $0x730] sm:$0xff]  ;;  %v979_v12 = vld [vmem:[%s3616_s3 + $0x758] sm:$0xff] }
 0x2a3   :  { %1231 = vmatmul.mubr.f32.vlgmr.msra.gmra.mrb[0].mxu0 %v732_v13  ;;  %v740_v26 = vmul.f32 %v724_v14, %v676_v23  ;;  %v1826_v13 = vpack.c.bf16 %v974_v10, %v972_v9 }
 0x2a4   :  { %1791 = vmatpush1.bf16.msra.mxu0 %v1790_v11  ;;  %v741_v24 = vmul.f32 %v725_v20, %v677_v6  ;;  %v977_v11 = vld [vmem:[%s3616_s3 + $0x748] sm:$0xff]  ;;  %v983_v20 = vld [vmem:[%s3616_s3 + $0x778] sm:$0xff] }
 0x2a5   :  { %1793 = vmatprep.subr.bf16.mxu0 %v1792_v17  ;;  %v1828_v14 = vpack.c.bf16 %v979_v12, %v977_v11  ;;  %v976_v17 = vld [vmem:[%s3616_s3 + $0x740] sm:$0xff]  ;;  %v981_v6 = vld [vmem:[%s3616_s3 + $0x768] sm:$0xff] }
 0x2a6   :  { %1236 = vmatprep.mubr.f32.mxu0 %v741_v24  ;;  %v1830_v22 = vpack.c.bf16 %v978_v18, %v976_v17  ;;  %v1832_v23 = vpack.c.bf16 %v983_v20, %v981_v6  ;;  %v980_v24 = vld [vmem:[%s3616_s3 + $0x760] sm:$0xff] }
 0x2a7   :  { %1237 = vmatmul.mubr.f32.gmra.mrb[2].mxu0 %v740_v26  ;;  %v343_v26 = vrot.slane %v3003_v30, %v342_v19  ;;  %v991_v30 = vld [vmem:[%s3616_s3 + $0x7b8] sm:$0xff]  ;;  %v1000_v20 = vld [vmem:[%s3617_s4] sm:$0x3]  ;;  %s1907_s4 = scalar_lea.vmem %s1330_s12, 512 }
 0x2a8   :  { %1795 = vmatpush1.bf16.msra.mxu0 %v1794_v25  ;;  %v982_v25 = vld [vmem:[%s3616_s3 + $0x770] sm:$0xff]  ;;  %v1840_v40 = vpack.c.bf16 %v991_v30, %v989_v34  ;;  %v1005_v21 = vrot.slane %v1000_v20, %v318_v29  ;;  %p1908_p0 = scmp.ne.s32.totalorder %s1330_s12, %s1907_s4  ;;  %p1913_p2 = scmp.lt.s32.totalorder %s1907_s4, %s1907_s4 }
 0x2a9   :  { %1797 = vmatprep.subr.bf16.mxu0 %v1796_v27  ;;  %v985_v27 = vld [vmem:[%s3616_s3 + $0x788] sm:$0xff]  ;;  %v1834_v7 = vpack.c.bf16 %v982_v25, %v980_v24 }
 0x2aa   :  { %p1914_p3 = por %p1913_p2, %p1912_p1 }
 0x2ac   :  { %1799 = vmatpush1.bf16.msra.mxu0 %v1798_v16  ;;  %v1836_v16 = vpack.c.bf16 %v987_v28, %v985_v27  ;;  %p1915_p4 = pnand %p1914_p3, %p1908_p0 }
 0x2ad   :  { %1801 = vmatprep.subr.bf16.mxu0 %v1800_v4  ;;  %v984_v4 = vld [vmem:[%s3616_s3 + $0x780] sm:$0xff] }
 0x2ae   :  { %v1838_v37 = vpack.c.bf16 %v986_v31, %v984_v4 }
 0x2b0   :  { %1803 = vmatpush1.bf16.msra.mxu0 %v1802_v35 }
 0x2b1   :  { %1805 = vmatprep.subr.bf16.mxu0 %v1804_v36 }
 0x2b4   :  { %1807 = vmatpush1.bf16.msra.mxu0 %v1806_v41  ;;  %v988_v41 = vld [vmem:[%s3616_s3 + $0x7a0] sm:$0xff] }
 0x2b5   :  { %1809 = vmatprep.subr.bf16.mxu0 %v1808_v42  ;;  %v990_v42 = vld [vmem:[%s3616_s3 + $0x7b0] sm:$0xff] }
 0x2b6   :  { %v1842_v49 = vpack.c.bf16 %v990_v42, %v988_v41 }
 0x2b8   :  { %1811 = vmatpush1.bf16.msra.mxu0 %v1810_v47 }
 0x2b9   :  { %1813 = vmatprep.subr.bf16.mxu0 %v1812_v48 }
 0x2bc   :  { %1815 = vmatpush1.bf16.msra.mxu0 %v1814_v53  ;;  %v994_v53 = vld [vmem:[%s3616_s3 + $0x7d0] sm:$0xff] }
 0x2bd   :  { %1817 = vmatprep.subr.bf16.mxu0 %v1816_v54  ;;  %v997_v54 = vld [vmem:[%s3616_s3 + $0x7e8] sm:$0xff]  ;;  %v1846_v56 = vpack.c.bf16 %v994_v53, %v992_v52 }
 0x2be   :  { %v1848_v57 = vpack.c.bf16 %v999_v55, %v997_v54 }
 0x2c0   :  { %1819 = vmatpush1.bf16.msra.mxu0 %v1818_v59  ;;  %v998_v59 = vld [vmem:[%s3616_s3 + $0x7f0] sm:$0xff] }
 0x2c1   :  { %1821 = vmatprep.subr.bf16.mxu0 %v1820_v60  ;;  %v1850_v61 = vpack.c.bf16 %v998_v59, %v996_v58 }
 0x2c4   :  { %1823 = vmatpush1.bf16.msra.mxu0 %v1822_v5 }
 0x2c5   :  { %1825 = vmatprep.subr.bf16.mxu0 %v1824_v8 }
 0x2c8   :  { %1827 = vmatpush1.bf16.msra.mxu0 %v1826_v13 }
 0x2c9   :  { %1829 = vmatprep.subr.bf16.mxu0 %v1828_v14 }
 0x2cc   :  { %1831 = vmatpush1.bf16.msra.mxu0 %v1830_v22  ;;  %v1009_v22 = vrot.slane %v1000_v20, %v322_v2 }
 0x2cd   :  { %v653_v15 = vpop.f32.mrb[12].mxu1  ;;  %1833 = vmatprep.subr.bf16.mxu0 %v1832_v23 }
 0x2ce   :  { %v654_v32 = vadd.f32 %v653_v15, %v343_v26  ;;  %v655_v33 = vpop.f32.mrb[13].mxu1 }
 0x2cf   :  { %v656_v35 = vadd.f32 %v655_v33, %v347_v0 }
 0x2d0   :  { %v686_v36 = vmul.f32 0.70710677, %v654_v32  ;;  %1835 = vmatpush1.bf16.msra.mxu0 %v1834_v7  ;;  %v670_v8 = vmul.f32 0.5, %v654_v32 }
 0x2d1   :  { %v687_v38 = vmul.f32 0.70710677, %v656_v35  ;;  %v659_v39 = vpop.f32.mrb[14].mxu1  ;;  %1837 = vmatprep.subr.bf16.mxu0 %v1836_v16  ;;  %v671_v3 = vmul.f32 0.5, %v656_v35 }
 0x2d2   :  { %1899 = verf.f32 %v686_v36  ;;  %v660_v43 = vadd.f32 %v659_v39, %v343_v26  ;;  %v661_v44 = vpop.f32.mrb[15].mxu1 }
 0x2d3   :  { %1901 = verf.f32 %v687_v38  ;;  %v662_v47 = vadd.f32 %v661_v44, %v347_v0 }
 0x2d4   :  { %v694_v48 = vmul.f32 0.70710677, %v660_v43  ;;  %1839 = vmatpush1.bf16.msra.mxu0 %v1838_v37  ;;  %v678_v18 = vmul.f32 0.5, %v660_v43 }
 0x2d5   :  { %v695_v50 = vmul.f32 0.70710677, %v662_v47  ;;  %1841 = vmatprep.subr.bf16.mxu0 %v1840_v40  ;;  %v679_v14 = vmul.f32 0.5, %v662_v47 }
 0x2d6   :  { %1903 = verf.f32 %v694_v48 }
 0x2d7   :  { %1905 = verf.f32 %v695_v50 }
 0x2d8   :  { %1843 = vmatpush1.bf16.msra.mxu0 %v1842_v49 }
 0x2d9   :  { %1845 = vmatprep.subr.bf16.mxu0 %v1844_v51 }
 0x2dc   :  { %v1900_v60 = vpop.eup %1899  ;;  %1847 = vmatpush1.bf16.msra.mxu0 %v1846_v56 }
 0x2dd   :  { %v1902_v62 = vpop.eup %1901  ;;  %v718_v63 = vadd.f32 1.0, %v1900_v60  ;;  %1849 = vmatprep.subr.bf16.mxu0 %v1848_v57 }
 0x2de   :  { %v719_v5 = vadd.f32 1.0, %v1902_v62 }
 0x2df   :  { %v734_v12 = vmul.f32 %v718_v63, %v670_v8 }
 0x2e0   :  { %v1904_v9 = vpop.eup %1903  ;;  %1851 = vmatpush1.bf16.msra.mxu0 %v1850_v61  ;;  %v735_v10 = vmul.f32 %v719_v5, %v671_v3 }
 0x2e1   :  { %v1906_v11 = vpop.eup %1905  ;;  %v726_v13 = vadd.f32 1.0, %v1904_v9 }
 0x2e2   :  { %v727_v17 = vadd.f32 1.0, %v1906_v11  ;;  %1307 = vmatprep.mubr.f32.mxu0 %v735_v10 }
 0x2e3   :  { %1308 = vmatmul.mubr.f32.vlgmr.msra.gmra.mrb[0].mxu0 %v734_v12  ;;  %v742_v6 = vmul.f32 %v726_v13, %v678_v18 }
 0x2e4   :  { %v743_v19 = vmul.f32 %v727_v17, %v679_v14 }
 0x2e6   :  { %1313 = vmatprep.mubr.f32.mxu0 %v743_v19 }
 0x2e7   :  { %1314 = vmatmul.mubr.f32.gmra.mrb[2].mxu0 %v742_v6 }
 0x3b6   :  { %v1309_v23 = vpop.f32.mrb[0].mxu0 }
 0x3b7   :  { %v1852_v24 = vadd.f32 %v1309_v23, %v1005_v21  ;;  %v1311_v25 = vpop.f32.mrb[1].mxu0 }
 0x3b8   :  { %v1853_v26 = vadd.f32 %v1311_v25, %v1009_v22 }
 0x3b9   :  { %1320 = vst [vmem:[#allocation2] sm:$0xff] %v1852_v24 }
 0x3ba   :  { %1321 = vst [vmem:[#allocation2 + $0x8] sm:$0xff] %v1853_v26  ;;  %v1315_v27 = vpop.f32.mrb[2].mxu0 }
 0x3bb   :  { %v1854_v28 = vadd.f32 %v1315_v27, %v1005_v21  ;;  %v1317_v0 = vpop.f32.mrb[3].mxu0 }
 0x3bc   :  { %v1855_v7 = vadd.f32 %v1317_v0, %v1009_v22 }
 0x3bd   :  { %1322 = vst [vmem:[#allocation2 + $0x10] sm:$0xff] %v1854_v28 }
 0x3be   :  { %1323 = vst [vmem:[#allocation2 + $0x18] sm:$0xff] %v1855_v7 }
 0x3bf   :  { %1918 = shalt.err (!%p1915_p4)
}
 0x3c0   :  { %s1919_s15 = scalar_lea.hbm %s3618_s5, 512 }
 0x3c1   :  { %p1920_p5 = scmp.ne.s32.totalorder %s3618_s5, %s1919_s15  ;;  %p1923_p6 = scmp.lt.u32.totalorder %s1919_s15, %s3618_s5 }
 0x3c3   :  { %p1925_p7 = pnand %p1923_p6, %p1920_p5 }
 0x3c5   :  { %1928 = shalt.err (!%p1925_p7)
}
 0x3c6   :  { %s1932_s20 = smov 256   ;;  %s1933_s21 = smov 16  }
 0x3c7   :  { %1335 = dma.vmem_to_hbm [thread:$0]  %s1330_s12, 512, %s3618_s5, [#allocation3], %s1932_s20, %s1932_s20, %s1933_s21  }
 0x3c8   :  { %1929 = dma.done.wait [#allocation3], 512  }
 0x3c9   :  { %1930 = vsyncadd [#allocation3], 4294966784 }
 0x3ca   :  { %1339 = vsyncpa [#allocation3], 1 }

</bundles_post_ra>
